<compile_context>
chip_gen: v5e
topology: v5e:2x2
jax: 0.10.0
libtpu: 0.0.40
codegen_flags: <defaults>
</compile_context>

<pallas_src>
import math

import jax
import jax.numpy as jnp
from jax.experimental import pallas as pl
from jax.experimental.pallas import tpu as pltpu


D_IN = 128
D_HID = 512
D_OUT = 1695
D_OUT_PAD = 1792      # 14 * 128: lane-dense output / MXU-friendly N
SUB_ALIGN = 16        # bf16 sublane packing


def _round_up(x, m):
    return ((x + m - 1) // m) * m


def vae_decoder_kernel(z_ref, w1_ref, b1_ref, w2_ref, b2_ref, o_ref):
    # Linear(128 -> 512) + ReLU. bf16 operands, fp32 MXU accumulation.
    h = jnp.dot(z_ref[...], w1_ref[...], preferred_element_type=jnp.float32)
    h = jnp.maximum(h + b1_ref[...], 0.0)
    # TODO(synk): Dropout(p=0.1) is identity in eval mode (no RNG emitted);
    # training-mode dropout would use pltpu.prng_seed + pltpu.stateful_bernoulli.
    # Linear(512 -> 1792 padded) + ReLU; padded columns are zero-weight/zero-bias.
    o = jnp.dot(h.astype(jnp.bfloat16), w2_ref[...],
                preferred_element_type=jnp.float32)
    o_ref[...] = jnp.maximum(o + b2_ref[...], 0.0).astype(o_ref.dtype)


def prepare_params(w1, b1, w2, b2):
    """One-time weight preparation (cast + zero-pad). Call once and reuse.

    w1: (128,512), b1: (1,512) or (512,), w2: (512,1695), b2: (1,1695) or (1695,).
    """
    b1 = jnp.reshape(b1, (1, D_HID)).astype(jnp.float32)
    b2 = jnp.reshape(b2, (1, D_OUT)).astype(jnp.float32)
    w1_bf = w1.astype(jnp.bfloat16)
    w2_bf = jnp.zeros((D_HID, D_OUT_PAD), jnp.bfloat16).at[:, :D_OUT].set(
        w2.astype(jnp.bfloat16))
    b2_pad = jnp.zeros((1, D_OUT_PAD), jnp.float32).at[:, :D_OUT].set(b2)
    # TODO(synk): generation-specific low-precision weight paths (fp8 on v7x,
    # int8/int4 on v5e/v6e with per-channel scales) for the weight-DMA-bound
    # small-batch regime.
    return w1_bf, b1, w2_bf, b2_pad


def _pick_batch_tile(b_aligned, max_batch_tile):
    """Sublane-aligned batch tile; >=2 tiles whenever possible (v7x megacore)."""
    if b_aligned < 2 * SUB_ALIGN:
        return b_aligned
    half = _round_up(pl.cdiv(b_aligned, 2), SUB_ALIGN)
    return min(max_batch_tile, half)


def vae_decoder(z, prepared, *, max_batch_tile=512, out_dtype=jnp.bfloat16):
    """z: (B, 128) fp32.  prepared: output of prepare_params()."""
    w1_bf, b1_f, w2_bf, b2_f = prepared
    B = z.shape[0]

    # --- batch padding / tile selection (sublane-aligned for bf16) ---
    b_aligned = _round_up(max(B, SUB_ALIGN), SUB_ALIGN)
    tb = _pick_batch_tile(b_aligned, max_batch_tile)
    b_pad = _round_up(b_aligned, tb)
    num_tiles = b_pad // tb

    # --- activation cast + batch zero-pad (cheap: 128-wide rows only) ---
    z_bf = jnp.zeros((b_pad, D_IN), jnp.bfloat16).at[:B].set(
        z.astype(jnp.bfloat16))

    out_itemsize = jnp.dtype(out_dtype).itemsize
    flops = 2 * b_pad * (D_IN * D_HID + D_HID * D_OUT_PAD)
    bytes_accessed = (
        z_bf.size * 2 + w1_bf.size * 2 + w2_bf.size * 2
        + b1_f.size * 4 + b2_f.size * 4
        + b_pad * D_OUT_PAD * out_itemsize
    )

    # Right-sized VMEM request: double-buffered z/out tiles, single-buffered
    # resident weights, plus headroom for compiler-internal scratch.
    vmem_bytes = (
        2 * (tb * D_IN * 2)                       # z tile, 2 buffers, bf16
        + 2 * (tb * D_OUT_PAD * out_itemsize)     # out tile, 2 buffers
        + (D_IN * D_HID + D_HID * D_OUT_PAD) * 2  # w1 + w2, bf16, 1 buffer
        + (D_HID + D_OUT_PAD) * 4                 # biases, fp32
    )
    vmem_limit = min(_round_up(vmem_bytes + (4 << 20), 1 << 20), 32 << 20)

    resident = dict(pipeline_mode=pl.Buffered(1))  # constant index map => 1 buffer

    out = pl.pallas_call(
        vae_decoder_kernel,
        out_shape=jax.ShapeDtypeStruct((b_pad, D_OUT_PAD), out_dtype),
        grid_spec=pltpu.PrefetchScalarGridSpec(
            num_scalar_prefetch=0,
            grid=(num_tiles,),
            in_specs=[
                pl.BlockSpec((tb, D_IN), lambda i: (i, 0)),                  # z tile
                pl.BlockSpec((D_IN, D_HID), lambda i: (0, 0), **resident),   # w1
                pl.BlockSpec((1, D_HID), lambda i: (0, 0), **resident),      # b1
                pl.BlockSpec((D_HID, D_OUT_PAD), lambda i: (0, 0), **resident),  # w2
                pl.BlockSpec((1, D_OUT_PAD), lambda i: (0, 0), **resident),  # b2
            ],
            out_specs=pl.BlockSpec((tb, D_OUT_PAD), lambda i: (i, 0)),
        ),
        compiler_params=pltpu.CompilerParams(
            dimension_semantics=("parallel",),
            vmem_limit_bytes=vmem_limit,
        ),
        cost_estimate=pl.CostEstimate(
            flops=flops, transcendentals=0, bytes_accessed=bytes_accessed),
    )(z_bf, w1_bf, b1_f, w2_bf, b2_f)

    # Drop batch padding and the padded (zero) output lanes outside the kernel.
    return out[:B, :D_OUT]


def init_params(key):
    """Deterministic init matching nn.Linear's U(-1/sqrt(fan_in), 1/sqrt(fan_in))."""
    k1, k2, k3, k4 = jax.random.split(key, 4)
    bnd1 = 1.0 / math.sqrt(D_IN)
    bnd2 = 1.0 / math.sqrt(D_HID)
    # Stored as (in, out) = transpose of PyTorch's (out, in) weight.
    w1 = jax.random.uniform(k1, (D_IN, D_HID), jnp.float32, -bnd1, bnd1)
    b1 = jax.random.uniform(k2, (1, D_HID), jnp.float32, -bnd1, bnd1)
    w2 = jax.random.uniform(k3, (D_HID, D_OUT), jnp.float32, -bnd2, bnd2)
    b2 = jax.random.uniform(k4, (1, D_OUT), jnp.float32, -bnd2, bnd2)
    return w1, b1, w2, b2


def reference(z, w1, b1, w2, b2):
    h = jnp.maximum(z @ w1 + b1, 0.0)
    return jnp.maximum(h @ w2 + b2, 0.0)


if __name__ == "__main__":
    key = jax.random.PRNGKey(0)
    kz, kp = jax.random.split(key)

    B = 8  # small batch
    z = jax.random.normal(kz, (B, D_IN), jnp.float32)
    w1, b1, w2, b2 = init_params(kp)

    # One-time weight preparation (amortized across calls in real serving).
    prepared = jax.block_until_ready(prepare_params(w1, b1, w2, b2))

    out = vae_decoder(z, prepared)
    out = jax.block_until_ready(out)

    ref = reference(z, w1, b1, w2, b2)
    assert out.shape == (B, D_OUT)
    # bf16 weight/activation/output quantization -> loosened tolerance vs fp32 ref.
    assert jnp.allclose(out.astype(jnp.float32), ref, atol=5e-2, rtol=5e-2)

    # Also exercise a multi-tile batch (>=2 grid tiles / megacore path).
    B2 = 96
    z2 = jax.random.normal(kz, (B2, D_IN), jnp.float32)
    out2 = jax.block_until_ready(vae_decoder(z2, prepared))
    ref2 = reference(z2, w1, b1, w2, b2)
    assert out2.shape == (B2, D_OUT)
    assert jnp.allclose(out2.astype(jnp.float32), ref2, atol=5e-2, rtol=5e-2)

    print("KERNEL_OK")
</pallas_src>

<mosaic_0001>
module attributes {stable_mosaic.version = 11 : i64} {
  func.func @vae_decoder_kernel(%arg0: i32, %arg1: memref<16x128xbf16, #tpu.memory_space<vmem>>, %arg2: memref<128x512xbf16, #tpu.memory_space<vmem>>, %arg3: memref<1x512xf32, #tpu.memory_space<vmem>>, %arg4: memref<512x1792xbf16, #tpu.memory_space<vmem>>, %arg5: memref<1x1792xf32, #tpu.memory_space<vmem>>, %arg6: memref<16x1792xbf16, #tpu.memory_space<vmem>>) attributes {dimension_semantics = [#tpu.dimension_semantics<parallel>], iteration_bounds = array<i64: 1>, scalar_prefetch = 0 : i64, scratch_operands = 0 : i64, tpu.core_type = #tpu.core_type<tc>, window_params = [{transform_indices = @transform_0, window_bounds = array<i64: 16, 128>}, {pipeline_mode = #tpu.pipeline_mode<synchronous>, transform_indices = @transform_1, window_bounds = array<i64: 128, 512>}, {pipeline_mode = #tpu.pipeline_mode<synchronous>, transform_indices = @transform_2, window_bounds = array<i64: 1, 512>}, {pipeline_mode = #tpu.pipeline_mode<synchronous>, transform_indices = @transform_3, window_bounds = array<i64: 512, 1792>}, {pipeline_mode = #tpu.pipeline_mode<synchronous>, transform_indices = @transform_4, window_bounds = array<i64: 1, 1792>}, {transform_indices = @transform_5, window_bounds = array<i64: 16, 1792>}]} {
    %c0 = arith.constant 0 : index
    %c0_0 = arith.constant 0 : index
    %0 = vector.load %arg1[%c0, %c0_0] : memref<16x128xbf16, #tpu.memory_space<vmem>>, vector<16x128xbf16>
    %c0_1 = arith.constant 0 : index
    %c0_2 = arith.constant 0 : index
    %1 = vector.load %arg2[%c0_1, %c0_2] : memref<128x512xbf16, #tpu.memory_space<vmem>>, vector<128x512xbf16>
    %cst = arith.constant dense<0.000000e+00> : vector<16x512xf32>
    %2 = tpu.matmul %0, %1, %cst {dimension_numbers = #tpu.dot_dimension_numbers<[1], [0], [0], [1], [0, 0, 1, 1], [], []>} : vector<16x128xbf16>, vector<128x512xbf16>, vector<16x512xf32> -> vector<16x512xf32>
    %c0_3 = arith.constant 0 : index
    %c0_4 = arith.constant 0 : index
    %3 = vector.load %arg3[%c0_3, %c0_4] : memref<1x512xf32, #tpu.memory_space<vmem>>, vector<1x512xf32>
    %4 = vector.broadcast %3 : vector<1x512xf32> to vector<16x512xf32>
    %5 = arith.addf %2, %4 : vector<16x512xf32>
    %cst_5 = arith.constant 0.000000e+00 : f32
    %6 = vector.broadcast %cst_5 : f32 to vector<16x512xf32>
    %7 = arith.maximumf %5, %6 : vector<16x512xf32>
    %8 = arith.truncf %7 : vector<16x512xf32> to vector<16x512xbf16>
    %c0_6 = arith.constant 0 : index
    %c0_7 = arith.constant 0 : index
    %9 = vector.load %arg4[%c0_6, %c0_7] : memref<512x1792xbf16, #tpu.memory_space<vmem>>, vector<512x1792xbf16>
    %cst_8 = arith.constant dense<0.000000e+00> : vector<16x1792xf32>
    %10 = tpu.matmul %8, %9, %cst_8 {dimension_numbers = #tpu.dot_dimension_numbers<[1], [0], [0], [1], [0, 0, 1, 1], [], []>} : vector<16x512xbf16>, vector<512x1792xbf16>, vector<16x1792xf32> -> vector<16x1792xf32>
    %c0_9 = arith.constant 0 : index
    %c0_10 = arith.constant 0 : index
    %11 = vector.load %arg5[%c0_9, %c0_10] : memref<1x1792xf32, #tpu.memory_space<vmem>>, vector<1x1792xf32>
    %12 = vector.broadcast %11 : vector<1x1792xf32> to vector<16x1792xf32>
    %13 = arith.addf %10, %12 : vector<16x1792xf32>
    %cst_11 = arith.constant 0.000000e+00 : f32
    %14 = vector.broadcast %cst_11 : f32 to vector<16x1792xf32>
    %15 = arith.maximumf %13, %14 : vector<16x1792xf32>
    %16 = arith.truncf %15 : vector<16x1792xf32> to vector<16x1792xbf16>
    %c0_12 = arith.constant 0 : index
    %c0_13 = arith.constant 0 : index
    %17 = vector.load %arg6[%c0_12, %c0_13] : memref<16x1792xbf16, #tpu.memory_space<vmem>>, vector<16x1792xbf16>
    tpu.vector_store %arg6[%c0_12, %c0_13], %16 {strides = array<i32>} : memref<16x1792xbf16, #tpu.memory_space<vmem>>, vector<16x1792xbf16>,
    return
  }
  func.func @transform_0(%arg0: i32) -> (i32, i32) {
    %c0_i32 = arith.constant 0 : i32
    %c0_i32_0 = arith.constant 0 : i32
    return %arg0, %c0_i32 : i32, i32
  }
  func.func @transform_1(%arg0: i32) -> (i32, i32) {
    %c0_i32 = arith.constant 0 : i32
    %c0_i32_0 = arith.constant 0 : i32
    %c0_i32_1 = arith.constant 0 : i32
    return %c0_i32, %c0_i32_0 : i32, i32
  }
  func.func @transform_2(%arg0: i32) -> (i32, i32) {
    %c0_i32 = arith.constant 0 : i32
    %c0_i32_0 = arith.constant 0 : i32
    %c0_i32_1 = arith.constant 0 : i32
    return %c0_i32, %c0_i32_0 : i32, i32
  }
  func.func @transform_3(%arg0: i32) -> (i32, i32) {
    %c0_i32 = arith.constant 0 : i32
    %c0_i32_0 = arith.constant 0 : i32
    %c0_i32_1 = arith.constant 0 : i32
    return %c0_i32, %c0_i32_0 : i32, i32
  }
  func.func @transform_4(%arg0: i32) -> (i32, i32) {
    %c0_i32 = arith.constant 0 : i32
    %c0_i32_0 = arith.constant 0 : i32
    %c0_i32_1 = arith.constant 0 : i32
    return %c0_i32, %c0_i32_0 : i32, i32
  }
  func.func @transform_5(%arg0: i32) -> (i32, i32) {
    %c0_i32 = arith.constant 0 : i32
    %c0_i32_0 = arith.constant 0 : i32
    return %arg0, %c0_i32 : i32, i32
  }
}

</mosaic_0001>

<bundles_post_ra>
// kernel: tpu_custom_call.1
= control target key start
LH: loop header
LB: loop body
LE: loop exit
PB: predicated region body
PF: predicated region fallthrough
CT: control target
= control target key end

     0   :  { %10 = vsyncpa [#allocation3], 0  ;;  %s6790_s0 = inlined_call_operand.hbm [shape: bf16[16,128], index: 0, kind: input, shape index: {}]   ;;  %s6791_s1 = inlined_call_operand.hbm [shape: bf16[128,512], index: 1, kind: input, shape index: {}]   ;;  %s6792_s2 = inlined_call_operand.hbm [shape: f32[1,512], index: 2, kind: input, shape index: {}]   ;;  %s6793_s3 = inlined_call_operand.hbm [shape: bf16[512,1792], index: 3, kind: input, shape index: {}]   ;;  %s6794_s4 = inlined_call_operand.hbm [shape: f32[1,1792], index: 4, kind: input, shape index: {}]   ;;  %s6795_s5 = inlined_call_operand.hbm [shape: bf16[16,1792], index: 5, kind: output, shape index: {}]  }
   0x1   :  { %11 = vsyncpa [#allocation6], 0 }
   0x2   :  { %12 = vsyncpa [#allocation9], 0  ;;  %s31_s20 = sshll.u32 %s6791_s1, 4  ;;  %s32_s20 = int_to_ptr.hbm [resolvable:$true] %s31_s20 }
   0x3   :  { %13 = vsyncpa [#allocation4], 0  ;;  %s6524_s21 = smov [#allocation5]   ;;  %s55_s25 = sshll.u32 %s6793_s3, 4  ;;  %s56_s25 = int_to_ptr.hbm [resolvable:$true] %s55_s25 }
   0x4   :  { %s33_s22 = sshll.u32 %s6524_s21, 4  ;;  %s6525_s26 = smov 256   ;;  %s34_s22 = int_to_ptr.vmem [resolvable:$true] %s33_s22 }
   0x5   :  { %s6526_s27 = smov 16   ;;  %s6527_s28 = smov [#allocation8]  }
   0x6   :  { %39 = dma.hbm_to_vmem [thread:$0]  %s32_s20, 4096, %s34_s22, [#allocation6], %s6525_s26, %s6525_s26, %s6526_s27  }
   0x7   :  { %s57_s29 = sshll.u32 %s6527_s28, 4  ;;  %s6528_s30 = smov 896   ;;  %s58_s29 = int_to_ptr.vmem [resolvable:$true] %s57_s29 }
   0x8   :  { %s6529_s6 = smov 56   ;;  %s18_s8 = sshll.u32 %s6790_s0, 4  ;;  %s19_s8 = int_to_ptr.hbm [resolvable:$true] %s18_s8 }
   0x9   :  { %63 = dma.hbm_to_vmem [thread:$0]  %s56_s25, 57344, %s58_s29, [#allocation9], %s6528_s30, %s6528_s30, %s6529_s6  }
   0xa   :  { %s6530_s9 = smov [#allocation2]   ;;  %s45_s12 = sshll.u32 %s6792_s2, 4  ;;  %s46_s12 = int_to_ptr.hbm [resolvable:$true] %s45_s12 }
   0xb   :  { %s20_s3 = sshll.u32 %s6530_s9, 4  ;;  %s6531_s13 = smov 64   ;;  %s21_s3 = int_to_ptr.vmem [resolvable:$true] %s20_s3 }
   0xc   :  { %s6532_s14 = smov 4   ;;  %s6533_s15 = smov [#allocation7]  }
   0xd   :  { %26 = dma.hbm_to_vmem [thread:$0]  %s19_s8, 128, %s21_s3, [#allocation3], %s6531_s13, %s6531_s13, %s6532_s14  }
   0xe   :  { %s47_s16 = sshll.u32 %s6533_s15, 4  ;;  %s69_s19 = sshll.u32 %s6794_s4, 4  ;;  %s48_s16 = int_to_ptr.vmem [resolvable:$true] %s47_s16  ;;  %s70_s19 = int_to_ptr.hbm [resolvable:$true] %s69_s19 }
   0xf   :  { %50 = dma.hbm_to_vmem [thread:$0]  %s46_s12, 64, %s48_s16, [#allocation6]  }
  0x10   :  { %s6534_s0 = smov [#allocation10]  }
  0x11   :  { %s71_s20 = sshll.u32 %s6534_s0, 4  ;;  %s72_s20 = int_to_ptr.vmem [resolvable:$true] %s71_s20 }
  0x12   :  { %74 = dma.hbm_to_vmem [thread:$0]  %s70_s19, 224, %s72_s20, [#allocation9]  }
  0x13   :  { %6516 = dma.done.wait [#allocation3], 128  }
  0x14   :  { %6517 = vsyncadd [#allocation3], 4294967168 }
  0x15   :  { %6518 = dma.done.wait [#allocation6], 4160  }
  0x16   :  { %6519 = vsyncadd [#allocation6], 4294963136 }
  0x17   :  { %6520 = dma.done.wait [#allocation9], 57568  }
  0x18   :  { %6521 = vsyncadd [#allocation9], 4294909728  ;;  %v4072_v0 = vld [vmem:[#allocation5 + $0xe0] sm:$0xf]  ;;  %v5909_v1 = vld [vmem:[#allocation5 + $0xec] sm:$0xf0] }
  0x19   :  { %v5907_v2 = vld [vmem:[#allocation5 + $0xe4] sm:$0xf]  ;;  %v4073_v3 = vor.u32 %v5909_v1, %v4072_v0  ;;  %v4074_v4 = vld [vmem:[#allocation5 + $0xf0] sm:$0xf0]  ;;  %v4080_v5 = vld [vmem:[#allocation5 + $0xe8] sm:$0xf] }
  0x1a   :  { %v5910_v6 = vld [vmem:[#allocation5 + $0xf4] sm:$0xf0]  ;;  %v4077_v7 = vor.u32 %v5907_v2, %v4074_v4  ;;  %v5908_v9 = vld [vmem:[#allocation5 + $0xec] sm:$0xf]  ;;  %v4082_v10 = vld [vmem:[#allocation5 + $0xf8] sm:$0xf0] }
  0x1b   :  { %v4081_v8 = vor.u32 %v5910_v6, %v4080_v5  ;;  %v4056_v11 = vld [vmem:[#allocation5 + $0xc0] sm:$0xf]  ;;  %305 = vmatpush.bf16.msra.mxu0 %v4073_v3  ;;  %v4085_v12 = vor.u32 %v5908_v9, %v4082_v10  ;;  %v5905_v13 = vld [vmem:[#allocation5 + $0xcc] sm:$0xf0]  ;;  %v5903_v14 = vld [vmem:[#allocation5 + $0xc4] sm:$0xf] }
  0x1c   :  { %v4058_v15 = vld [vmem:[#allocation5 + $0xd0] sm:$0xf0]  ;;  %319 = vmatpush.bf16.msra.mxu1 %v4077_v7  ;;  %v4057_v16 = vor.u32 %v5905_v13, %v4056_v11  ;;  %v4064_v18 = vld [vmem:[#allocation5 + $0xc8] sm:$0xf]  ;;  %v5906_v19 = vld [vmem:[#allocation5 + $0xd4] sm:$0xf0] }
  0x1d   :  { %333 = vmatpush.bf16.msra.mxu2 %v4081_v8  ;;  %v4061_v17 = vor.u32 %v5903_v14, %v4058_v15  ;;  %v5904_v20 = vld [vmem:[#allocation5 + $0xcc] sm:$0xf]  ;;  %347 = vmatpush.bf16.msra.mxu3 %v4085_v12  ;;  %v4065_v21 = vor.u32 %v5906_v19, %v4064_v18  ;;  %v4066_v22 = vld [vmem:[#allocation5 + $0xd8] sm:$0xf0]  ;;  %v4040_v23 = vld [vmem:[#allocation5 + $0xa0] sm:$0xf] }
  0x1e   :  { %v5901_v24 = vld [vmem:[#allocation5 + $0xac] sm:$0xf0]  ;;  %v4069_v25 = vor.u32 %v5904_v20, %v4066_v22  ;;  %v5899_v26 = vld [vmem:[#allocation5 + $0xa4] sm:$0xf]  ;;  %v4042_v27 = vld [vmem:[#allocation5 + $0xb0] sm:$0xf0] }
  0x1f   :  { %v4048_v28 = vld [vmem:[#allocation5 + $0xa8] sm:$0xf]  ;;  %306 = vmatpush.bf16.msra.mxu0 %v4057_v16  ;;  %v4041_v29 = vor.u32 %v5901_v24, %v4040_v23  ;;  %v5902_v30 = vld [vmem:[#allocation5 + $0xb4] sm:$0xf0]  ;;  %v5900_v31 = vld [vmem:[#allocation5 + $0xac] sm:$0xf]  ;;  %v4045_v33 = vor.u32 %v5899_v26, %v4042_v27 }
  0x20   :  { %v4050_v32 = vld [vmem:[#allocation5 + $0xb8] sm:$0xf0]  ;;  %320 = vmatpush.bf16.msra.mxu1 %v4061_v17  ;;  %v4049_v34 = vor.u32 %v5902_v30, %v4048_v28  ;;  %v4024_v35 = vld [vmem:[#allocation5 + $0x80] sm:$0xf]  ;;  %v5897_v36 = vld [vmem:[#allocation5 + $0x8c] sm:$0xf0] }
  0x21   :  { %334 = vmatpush.bf16.msra.mxu2 %v4065_v21  ;;  %v5895_v37 = vld [vmem:[#allocation5 + $0x84] sm:$0xf]  ;;  %348 = vmatpush.bf16.msra.mxu3 %v4069_v25  ;;  %v4053_v38 = vor.u32 %v5900_v31, %v4050_v32  ;;  %v4026_v39 = vld [vmem:[#allocation5 + $0x90] sm:$0xf0]  ;;  %v4032_v40 = vld [vmem:[#allocation5 + $0x88] sm:$0xf]  ;;  %v4025_v44 = vor.u32 %v5897_v36, %v4024_v35 }
  0x22   :  { %v5898_v41 = vld [vmem:[#allocation5 + $0x94] sm:$0xf0]  ;;  %v5896_v42 = vld [vmem:[#allocation5 + $0x8c] sm:$0xf]  ;;  %v4034_v43 = vld [vmem:[#allocation5 + $0x98] sm:$0xf0]  ;;  %v4029_v45 = vor.u32 %v5895_v37, %v4026_v39 }
  0x23   :  { %307 = vmatpush.bf16.msra.mxu0 %v4041_v29  ;;  %v4033_v46 = vor.u32 %v5898_v41, %v4032_v40  ;;  %v4008_v47 = vld [vmem:[#allocation5 + $0x60] sm:$0xf]  ;;  %v5893_v48 = vld [vmem:[#allocation5 + $0x6c] sm:$0xf0]  ;;  %v5891_v49 = vld [vmem:[#allocation5 + $0x64] sm:$0xf]  ;;  %v4037_v50 = vor.u32 %v5896_v42, %v4034_v43 }
  0x24   :  { %321 = vmatpush.bf16.msra.mxu1 %v4045_v33  ;;  %v4010_v51 = vld [vmem:[#allocation5 + $0x70] sm:$0xf0]  ;;  %v4016_v52 = vld [vmem:[#allocation5 + $0x68] sm:$0xf]  ;;  %v5894_v53 = vld [vmem:[#allocation5 + $0x74] sm:$0xf0]  ;;  %v4009_v56 = vor.u32 %v5893_v48, %v4008_v47 }
  0x25   :  { %335 = vmatpush.bf16.msra.mxu2 %v4049_v34  ;;  %349 = vmatpush.bf16.msra.mxu3 %v4053_v38  ;;  %v5892_v54 = vld [vmem:[#allocation5 + $0x6c] sm:$0xf]  ;;  %v4018_v55 = vld [vmem:[#allocation5 + $0x78] sm:$0xf0]  ;;  %v4013_v57 = vor.u32 %v5891_v49, %v4010_v51  ;;  %v4017_v58 = vor.u32 %v5894_v53, %v4016_v52  ;;  %v3992_v59 = vld [vmem:[#allocation5 + $0x40] sm:$0xf] }
  0x26   :  { %v5889_v60 = vld [vmem:[#allocation5 + $0x4c] sm:$0xf0]  ;;  %v5887_v61 = vld [vmem:[#allocation5 + $0x44] sm:$0xf]  ;;  %v4021_v62 = vor.u32 %v5892_v54, %v4018_v55  ;;  %v3994_v63 = vld [vmem:[#allocation5 + $0x50] sm:$0xf0] }
  0x27   :  { %308 = vmatpush.bf16.msra.mxu0 %v4025_v44  ;;  %v4000_v0 = vld [vmem:[#allocation5 + $0x48] sm:$0xf]  ;;  %v5890_v1 = vld [vmem:[#allocation5 + $0x54] sm:$0xf0]  ;;  %v5888_v2 = vld [vmem:[#allocation5 + $0x4c] sm:$0xf]  ;;  %v3993_v4 = vor.u32 %v5889_v60, %v3992_v59  ;;  %v3997_v5 = vor.u32 %v5887_v61, %v3994_v63 }
  0x28   :  { %322 = vmatpush.bf16.msra.mxu1 %v4029_v45  ;;  %v4002_v3 = vld [vmem:[#allocation5 + $0x58] sm:$0xf0]  ;;  %v4001_v6 = vor.u32 %v5890_v1, %v4000_v0  ;;  %v3976_v7 = vld [vmem:[#allocation5 + $0x20] sm:$0xf]  ;;  %v5885_v8 = vld [vmem:[#allocation5 + $0x2c] sm:$0xf0] }
  0x29   :  { %336 = vmatpush.bf16.msra.mxu2 %v4033_v46  ;;  %350 = vmatpush.bf16.msra.mxu3 %v4037_v50  ;;  %v5883_v9 = vld [vmem:[#allocation5 + $0x24] sm:$0xf]  ;;  %v4005_v10 = vor.u32 %v5888_v2, %v4002_v3  ;;  %v3978_v11 = vld [vmem:[#allocation5 + $0x30] sm:$0xf0]  ;;  %v3984_v12 = vld [vmem:[#allocation5 + $0x28] sm:$0xf]  ;;  %v3977_v16 = vor.u32 %v5885_v8, %v3976_v7 }
  0x2a   :  { %v5886_v13 = vld [vmem:[#allocation5 + $0x34] sm:$0xf0]  ;;  %v5884_v14 = vld [vmem:[#allocation5 + $0x2c] sm:$0xf]  ;;  %v3986_v15 = vld [vmem:[#allocation5 + $0x38] sm:$0xf0]  ;;  %v3981_v18 = vor.u32 %v5883_v9, %v3978_v11 }
  0x2b   :  { %309 = vmatpush.bf16.msra.mxu0 %v4009_v56  ;;  %v3960_v17 = vld [vmem:[#allocation5] sm:$0xf]  ;;  %v3985_v19 = vor.u32 %v5886_v13, %v3984_v12  ;;  %v5881_v20 = vld [vmem:[#allocation5 + $0xc] sm:$0xf0]  ;;  %v5879_v21 = vld [vmem:[#allocation5 + $0x4] sm:$0xf]  ;;  %v3989_v23 = vor.u32 %v5884_v14, %v3986_v15 }
  0x2c   :  { %323 = vmatpush.bf16.msra.mxu1 %v4013_v57  ;;  %v3962_v22 = vld [vmem:[#allocation5 + $0x10] sm:$0xf0]  ;;  %v3968_v24 = vld [vmem:[#allocation5 + $0x8] sm:$0xf]  ;;  %v5882_v25 = vld [vmem:[#allocation5 + $0x14] sm:$0xf0]  ;;  %v3961_v30 = vor.u32 %v5881_v20, %v3960_v17 }
  0x2d   :  { %337 = vmatpush.bf16.msra.mxu2 %v4017_v58  ;;  %351 = vmatpush.bf16.msra.mxu3 %v4021_v62  ;;  %v5880_v26 = vld [vmem:[#allocation5 + $0xc] sm:$0xf]  ;;  %v3970_v27 = vld [vmem:[#allocation5 + $0x18] sm:$0xf0]  ;;  %v4480_v28 = vld [vmem:[#allocation8 + $0x310] sm:$0xf]  ;;  %v3965_v33 = vor.u32 %v5879_v21, %v3962_v22  ;;  %v3969_v34 = vor.u32 %v5882_v25, %v3968_v24 }
  0x2e   :  { %v6016_v29 = vld [vmem:[#allocation8 + $0x344] sm:$0xf0]  ;;  %v4928_v31 = vld [vmem:[#allocation8 + $0x690] sm:$0xf]  ;;  %v5878_v35 = vld [vmem:[#allocation2] sm:$0xff]  ;;  %v3973_v36 = vor.u32 %v5880_v26, %v3970_v27  ;;  %s6535_s2 = smov [#allocation11]  }
  0x2f   :  { %310 = vmatpush.bf16.msra.mxu0 %v3993_v4  ;;  %v6128_v32 = vld [vmem:[#allocation8 + $0x6c4] sm:$0xf0]  ;;  %v4481_v37 = vor.u32 %v6016_v29, %v4480_v28  ;;  %v4424_v38 = vld [vmem:[#allocation8 + $0x2a0] sm:$0xf]  ;;  %v5376_v39 = vld [vmem:[#allocation8 + $0xa10] sm:$0xf] }
  0x30   :  { %324 = vmatpush.bf16.msra.mxu1 %v3997_v5  ;;  %v6240_v40 = vld [vmem:[#allocation8 + $0xa44] sm:$0xf0]  ;;  %v4929_v41 = vor.u32 %v6128_v32, %v4928_v31  ;;  %v6002_v42 = vld [vmem:[#allocation8 + $0x2d4] sm:$0xf0]  ;;  %v5824_v43 = vld [vmem:[#allocation8 + $0xd90] sm:$0xf] }
  0x31   :  { %338 = vmatpush.bf16.msra.mxu2 %v4001_v6  ;;  %352 = vmatpush.bf16.msra.mxu3 %v4005_v10  ;;  %v6352_v44 = vld [vmem:[#allocation8 + $0xdc4] sm:$0xf0]  ;;  %v4872_v45 = vld [vmem:[#allocation8 + $0x620] sm:$0xf]  ;;  %v6114_v46 = vld [vmem:[#allocation8 + $0x654] sm:$0xf0]  ;;  %v5377_v47 = vor.u32 %v6240_v40, %v5376_v39  ;;  %v4425_v48 = vor.u32 %v6002_v42, %v4424_v38 }
  0x32   :  { %v5825_v49 = vor.u32 %v6352_v44, %v5824_v43  ;;  %v4368_v50 = vld [vmem:[#allocation8 + $0x230] sm:$0xf]  ;;  %v5320_v51 = vld [vmem:[#allocation8 + $0x9a0] sm:$0xf]  ;;  %v6226_v52 = vld [vmem:[#allocation8 + $0x9d4] sm:$0xf0]  ;;  %v4873_v53 = vor.u32 %v6114_v46, %v4872_v45 }
  0x33   :  { %311 = vmatpush.bf16.msra.mxu0 %v3977_v16  ;;  %v5988_v54 = vld [vmem:[#allocation8 + $0x264] sm:$0xf0]  ;;  %v5768_v55 = vld [vmem:[#allocation8 + $0xd20] sm:$0xf]  ;;  %v6338_v56 = vld [vmem:[#allocation8 + $0xd54] sm:$0xf0]  ;;  %v5321_v59 = vor.u32 %v6226_v52, %v5320_v51 }
  0x34   :  { %325 = vmatpush.bf16.msra.mxu1 %v3981_v18  ;;  %v4816_v57 = vld [vmem:[#allocation8 + $0x5b0] sm:$0xf]  ;;  %v6100_v58 = vld [vmem:[#allocation8 + $0x5e4] sm:$0xf0]  ;;  %v4369_v60 = vor.u32 %v5988_v54, %v4368_v50  ;;  %v5769_v61 = vor.u32 %v6338_v56, %v5768_v55  ;;  %v4312_v62 = vld [vmem:[#allocation8 + $0x1c0] sm:$0xf] }
  0x35   :  { %339 = vmatpush.bf16.msra.mxu2 %v3985_v19  ;;  %353 = vmatpush.bf16.msra.mxu3 %v3989_v23  ;;  %v5264_v63 = vld [vmem:[#allocation8 + $0x930] sm:$0xf]  ;;  %v6212_v0 = vld [vmem:[#allocation8 + $0x964] sm:$0xf0]  ;;  %v4817_v1 = vor.u32 %v6100_v58, %v4816_v57  ;;  %v5974_v2 = vld [vmem:[#allocation8 + $0x1f4] sm:$0xf0] }
  0x36   :  { %v5712_v3 = vld [vmem:[#allocation8 + $0xcb0] sm:$0xf]  ;;  %v6324_v4 = vld [vmem:[#allocation8 + $0xce4] sm:$0xf0]  ;;  %v4760_v5 = vld [vmem:[#allocation8 + $0x540] sm:$0xf]  ;;  %v5265_v7 = vor.u32 %v6212_v0, %v5264_v63  ;;  %v4313_v8 = vor.u32 %v5974_v2, %v4312_v62 }
  0x37   :  { %312 = vmatpush.bf16.msra.mxu0 %v3961_v30  ;;  %v6086_v6 = vld [vmem:[#allocation8 + $0x574] sm:$0xf0]  ;;  %v5713_v9 = vor.u32 %v6324_v4, %v5712_v3  ;;  %v4256_v10 = vld [vmem:[#allocation8 + $0x150] sm:$0xf]  ;;  %v5208_v11 = vld [vmem:[#allocation8 + $0x8c0] sm:$0xf] }
  0x38   :  { %326 = vmatpush.bf16.msra.mxu1 %v3965_v33  ;;  %v6198_v12 = vld [vmem:[#allocation8 + $0x8f4] sm:$0xf0]  ;;  %v4761_v13 = vor.u32 %v6086_v6, %v4760_v5  ;;  %v5960_v14 = vld [vmem:[#allocation8 + $0x184] sm:$0xf0]  ;;  %v5656_v15 = vld [vmem:[#allocation8 + $0xc40] sm:$0xf] }
  0x39   :  { %340 = vmatpush.bf16.msra.mxu2 %v3969_v34  ;;  %354 = vmatpush.bf16.msra.mxu3 %v3973_v36  ;;  %v6310_v16 = vld [vmem:[#allocation8 + $0xc74] sm:$0xf0]  ;;  %v4704_v17 = vld [vmem:[#allocation8 + $0x4d0] sm:$0xf]  ;;  %v6072_v18 = vld [vmem:[#allocation8 + $0x504] sm:$0xf0]  ;;  %v5209_v19 = vor.u32 %v6198_v12, %v5208_v11  ;;  %v4257_v20 = vor.u32 %v5960_v14, %v4256_v10 }
  0x3a   :  { %313 = vmatmul.bf16.vlgmr.msra.gmra.mxu0 %v5878_v35  ;;  %v5657_v21 = vor.u32 %v6310_v16, %v5656_v15  ;;  %v4200_v22 = vld [vmem:[#allocation8 + $0xe0] sm:$0xf]  ;;  %v5152_v23 = vld [vmem:[#allocation8 + $0x850] sm:$0xf]  ;;  %v6184_v24 = vld [vmem:[#allocation8 + $0x884] sm:$0xf0]  ;;  %v4705_v25 = vor.u32 %v6072_v18, %v4704_v17 }
  0x3b   :  { %3093 = vmatpush.bf16.msrb.mxu0 %v4481_v37  ;;  %327 = vmatmul.bf16.vlgmr.msra.gmra.mxu1 %v5878_v35  ;;  %v5946_v26 = vld [vmem:[#allocation8 + $0x114] sm:$0xf0]  ;;  %v5600_v27 = vld [vmem:[#allocation8 + $0xbd0] sm:$0xf]  ;;  %v6296_v28 = vld [vmem:[#allocation8 + $0xc04] sm:$0xf0]  ;;  %v5153_v31 = vor.u32 %v6184_v24, %v5152_v23 }
  0x3c   :  { %3107 = vmatpush.bf16.msrb.mxu1 %v4929_v41  ;;  %341 = vmatmul.bf16.vlgmr.msra.gmra.mxu2 %v5878_v35  ;;  %v4648_v29 = vld [vmem:[#allocation8 + $0x460] sm:$0xf]  ;;  %v6058_v30 = vld [vmem:[#allocation8 + $0x494] sm:$0xf0]  ;;  %v4201_v32 = vor.u32 %v5946_v26, %v4200_v22  ;;  %v5601_v33 = vor.u32 %v6296_v28, %v5600_v27  ;;  %v4144_v34 = vld [vmem:[#allocation8 + $0x70] sm:$0xf] }
  0x3d   :  { %355 = vmatmul.bf16.vlgmr.msra.gmra.mxu3 %v5878_v35  ;;  %3121 = vmatpush.bf16.msrb.mxu2 %v5377_v47  ;;  %v5096_v35 = vld [vmem:[#allocation8 + $0x7e0] sm:$0xf]  ;;  %v6170_v36 = vld [vmem:[#allocation8 + $0x814] sm:$0xf0]  ;;  %v4649_v37 = vor.u32 %v6058_v30, %v4648_v29  ;;  %v5932_v38 = vld [vmem:[#allocation8 + $0xa4] sm:$0xf0] }
  0x3e   :  { %3135 = vmatpush.bf16.msrb.mxu3 %v5825_v49  ;;  %v5544_v39 = vld [vmem:[#allocation8 + $0xb60] sm:$0xf]  ;;  %v6282_v40 = vld [vmem:[#allocation8 + $0xb94] sm:$0xf0]  ;;  %v4592_v41 = vld [vmem:[#allocation8 + $0x3f0] sm:$0xf]  ;;  %v5097_v43 = vor.u32 %v6170_v36, %v5096_v35  ;;  %v4145_v45 = vor.u32 %v5932_v38, %v4144_v34 }
  0x3f   :  { %3094 = vmatpush.bf16.msrb.mxu0 %v4425_v48  ;;  %v6044_v42 = vld [vmem:[#allocation8 + $0x424] sm:$0xf0]  ;;  %v4088_v44 = vld [vmem:[#allocation8] sm:$0xf]  ;;  %v5545_v46 = vor.u32 %v6282_v40, %v5544_v39  ;;  %v5918_v47 = vld [vmem:[#allocation8 + $0x34] sm:$0xf0] }
  0x40   :  { %3108 = vmatpush.bf16.msrb.mxu1 %v4873_v53  ;;  %v5040_v48 = vld [vmem:[#allocation8 + $0x770] sm:$0xf]  ;;  %v6156_v49 = vld [vmem:[#allocation8 + $0x7a4] sm:$0xf0]  ;;  %v4593_v50 = vor.u32 %v6044_v42, %v4592_v41  ;;  %v4536_v51 = vld [vmem:[#allocation8 + $0x380] sm:$0xf] }
  0x41   :  { %3122 = vmatpush.bf16.msrb.mxu2 %v5321_v59  ;;  %v5488_v52 = vld [vmem:[#allocation8 + $0xaf0] sm:$0xf]  ;;  %v6268_v53 = vld [vmem:[#allocation8 + $0xb24] sm:$0xf0]  ;;  %v6030_v54 = vld [vmem:[#allocation8 + $0x3b4] sm:$0xf0]  ;;  %v5041_v59 = vor.u32 %v6156_v49, %v5040_v48 }
  0x42   :  { %3136 = vmatpush.bf16.msrb.mxu3 %v5769_v61  ;;  %v6009_v55 = vld [vmem:[#allocation8 + $0x314] sm:$0xf]  ;;  %v4482_v56 = vld [vmem:[#allocation8 + $0x348] sm:$0xf0]  ;;  %v5489_v61 = vor.u32 %v6268_v53, %v5488_v52  ;;  %v5995_v62 = vld [vmem:[#allocation8 + $0x2a4] sm:$0xf]  ;;  %v4537_v2 = vor.u32 %v6030_v54, %v4536_v51 }
  0x43   :  { %3095 = vmatpush.bf16.msrb.mxu0 %v4369_v60  ;;  %v6121_v57 = vld [vmem:[#allocation8 + $0x694] sm:$0xf]  ;;  %v4930_v58 = vld [vmem:[#allocation8 + $0x6c8] sm:$0xf0]  ;;  %v4089_v60 = vor.u32 %v5918_v47, %v4088_v44  ;;  %v4984_v63 = vld [vmem:[#allocation8 + $0x700] sm:$0xf]  ;;  %v4485_v3 = vor.u32 %v6009_v55, %v4482_v56 }
  0x44   :  { %3109 = vmatpush.bf16.msrb.mxu1 %v4817_v1  ;;  %v6142_v0 = vld [vmem:[#allocation8 + $0x734] sm:$0xf0]  ;;  %v5432_v1 = vld [vmem:[#allocation8 + $0xa80] sm:$0xf]  ;;  %v6233_v5 = vld [vmem:[#allocation8 + $0xa14] sm:$0xf] }
  0x45   :  { %3123 = vmatpush.bf16.msrb.mxu2 %v5265_v7  ;;  %v6254_v4 = vld [vmem:[#allocation8 + $0xab4] sm:$0xf0]  ;;  %v5378_v6 = vld [vmem:[#allocation8 + $0xa48] sm:$0xf0]  ;;  %v4933_v7 = vor.u32 %v6121_v57, %v4930_v58  ;;  %v6107_v11 = vld [vmem:[#allocation8 + $0x624] sm:$0xf] }
  0x46   :  { %3137 = vmatpush.bf16.msrb.mxu3 %v5713_v9  ;;  %v6345_v9 = vld [vmem:[#allocation8 + $0xd94] sm:$0xf]  ;;  %v5826_v10 = vld [vmem:[#allocation8 + $0xdc8] sm:$0xf0]  ;;  %v4874_v12 = vld [vmem:[#allocation8 + $0x658] sm:$0xf0]  ;;  %v5433_v14 = vor.u32 %v6254_v4, %v5432_v1  ;;  %v5381_v15 = vor.u32 %v6233_v5, %v5378_v6 }
  0x47   :  { %3096 = vmatpush.bf16.msrb.mxu0 %v4313_v8  ;;  %v4426_v8 = vld [vmem:[#allocation8 + $0x2d8] sm:$0xf0]  ;;  %v5829_v17 = vor.u32 %v6345_v9, %v5826_v10  ;;  %v5981_v18 = vld [vmem:[#allocation8 + $0x234] sm:$0xf]  ;;  %v4370_v22 = vld [vmem:[#allocation8 + $0x268] sm:$0xf0] }
  0x48   :  { %3110 = vmatpush.bf16.msrb.mxu1 %v4761_v13  ;;  %v4985_v13 = vor.u32 %v6142_v0, %v4984_v63  ;;  %v4429_v16 = vor.u32 %v5995_v62, %v4426_v8  ;;  %v6331_v23 = vld [vmem:[#allocation8 + $0xd24] sm:$0xf]  ;;  %v5770_v24 = vld [vmem:[#allocation8 + $0xd58] sm:$0xf0]  ;;  %v4818_v26 = vld [vmem:[#allocation8 + $0x5e8] sm:$0xf0]  ;;  %v4373_v28 = vor.u32 %v5981_v18, %v4370_v22 }
  0x49   :  { %3124 = vmatpush.bf16.msrb.mxu2 %v5209_v19  ;;  %v6219_v19 = vld [vmem:[#allocation8 + $0x9a4] sm:$0xf]  ;;  %v5773_v29 = vor.u32 %v6331_v23, %v5770_v24  ;;  %v4762_v34 = vld [vmem:[#allocation8 + $0x578] sm:$0xf0]  ;;  %v5266_v38 = vld [vmem:[#allocation8 + $0x968] sm:$0xf0] }
  0x4a   :  { %3138 = vmatpush.bf16.msrb.mxu3 %v5657_v21  ;;  %v4877_v21 = vor.u32 %v6107_v11, %v4874_v12  ;;  %v6317_v39 = vld [vmem:[#allocation8 + $0xcb4] sm:$0xf]  ;;  %v5714_v41 = vld [vmem:[#allocation8 + $0xce8] sm:$0xf0]  ;;  %v6191_v49 = vld [vmem:[#allocation8 + $0x8c4] sm:$0xf] }
  0x4b   :  { %3097 = vmatpush.bf16.msrb.mxu0 %v4257_v20  ;;  %v5322_v20 = vld [vmem:[#allocation8 + $0x9d8] sm:$0xf0]  ;;  %v5717_v42 = vor.u32 %v6317_v39, %v5714_v41  ;;  %v4258_v44 = vld [vmem:[#allocation8 + $0x188] sm:$0xf0]  ;;  %v6303_v52 = vld [vmem:[#allocation8 + $0xc44] sm:$0xf] }
  0x4c   :  { %3111 = vmatpush.bf16.msrb.mxu1 %v4705_v25  ;;  %v6093_v25 = vld [vmem:[#allocation8 + $0x5b4] sm:$0xf]  ;;  %v5325_v27 = vor.u32 %v6219_v19, %v5322_v20  ;;  %v4706_v47 = vld [vmem:[#allocation8 + $0x508] sm:$0xf0]  ;;  %v5658_v53 = vld [vmem:[#allocation8 + $0xc78] sm:$0xf0] }
  0x4d   :  { %3125 = vmatpush.bf16.msrb.mxu2 %v5153_v31  ;;  %v4821_v30 = vor.u32 %v6093_v25, %v4818_v26  ;;  %v5967_v31 = vld [vmem:[#allocation8 + $0x1c4] sm:$0xf]  ;;  %v5661_v54 = vor.u32 %v6303_v52, %v5658_v53  ;;  %v4202_v56 = vld [vmem:[#allocation8 + $0x118] sm:$0xf0]  ;;  %v5154_v62 = vld [vmem:[#allocation8 + $0x888] sm:$0xf0] }
  0x4e   :  { %3139 = vmatpush.bf16.msrb.mxu3 %v5601_v33  ;;  %v6079_v33 = vld [vmem:[#allocation8 + $0x544] sm:$0xf]  ;;  %v6289_v63 = vld [vmem:[#allocation8 + $0xbd4] sm:$0xf]  ;;  %v5602_v1 = vld [vmem:[#allocation8 + $0xc08] sm:$0xf0] }
  0x4f   :  { %3098 = vmatpush.bf16.msrb.mxu0 %v4201_v32  ;;  %v4314_v32 = vld [vmem:[#allocation8 + $0x1f8] sm:$0xf0]  ;;  %v4765_v36 = vor.u32 %v6079_v33, %v4762_v34  ;;  %v5939_v55 = vld [vmem:[#allocation8 + $0xe4] sm:$0xf]  ;;  %v4146_v4 = vld [vmem:[#allocation8 + $0xa8] sm:$0xf0] }
  0x50   :  { %3112 = vmatpush.bf16.msrb.mxu1 %v4649_v37  ;;  %v4317_v35 = vor.u32 %v5967_v31, %v4314_v32  ;;  %v6205_v37 = vld [vmem:[#allocation8 + $0x934] sm:$0xf]  ;;  %v6051_v57 = vld [vmem:[#allocation8 + $0x464] sm:$0xf]  ;;  %v4205_v58 = vor.u32 %v5939_v55, %v4202_v56  ;;  %v5098_v10 = vld [vmem:[#allocation8 + $0x818] sm:$0xf0] }
  0x51   :  { %3126 = vmatpush.bf16.msrb.mxu2 %v5097_v43  ;;  %v5269_v40 = vor.u32 %v6205_v37, %v5266_v38  ;;  %v5953_v43 = vld [vmem:[#allocation8 + $0x154] sm:$0xf]  ;;  %v6163_v9 = vld [vmem:[#allocation8 + $0x7e4] sm:$0xf]  ;;  %v4538_v19 = vld [vmem:[#allocation8 + $0x3b8] sm:$0xf0] }
  0x52   :  { %3140 = vmatpush.bf16.msrb.mxu3 %v5545_v46  ;;  %v4261_v46 = vor.u32 %v5953_v43, %v4258_v44  ;;  %v6037_v6 = vld [vmem:[#allocation8 + $0x3f4] sm:$0xf]  ;;  %v6275_v11 = vld [vmem:[#allocation8 + $0xb64] sm:$0xf]  ;;  %v5101_v12 = vor.u32 %v6163_v9, %v5098_v10  ;;  %v5042_v22 = vld [vmem:[#allocation8 + $0x7a8] sm:$0xf0] }
  0x53   :  { %3099 = vmatpush.bf16.msrb.mxu0 %v4145_v45  ;;  %v6065_v45 = vld [vmem:[#allocation8 + $0x4d4] sm:$0xf]  ;;  %v5490_v24 = vld [vmem:[#allocation8 + $0xb28] sm:$0xf0]  ;;  %v5434_v31 = vld [vmem:[#allocation8 + $0xab8] sm:$0xf0] }
  0x54   :  { %3113 = vmatpush.bf16.msrb.mxu1 %v4593_v50  ;;  %v4709_v48 = vor.u32 %v6065_v45, %v4706_v47  ;;  %v5210_v50 = vld [vmem:[#allocation8 + $0x8f8] sm:$0xf0]  ;;  %v6261_v23 = vld [vmem:[#allocation8 + $0xaf4] sm:$0xf]  ;;  %v6017_v47 = vld [vmem:[#allocation8 + $0x34c] sm:$0xf0] }
  0x55   :  { %3127 = vmatpush.bf16.msrb.mxu2 %v5041_v59  ;;  %v5213_v51 = vor.u32 %v6191_v49, %v5210_v50  ;;  %v4650_v59 = vld [vmem:[#allocation8 + $0x498] sm:$0xf0]  ;;  %v5493_v26 = vor.u32 %v6261_v23, %v5490_v24  ;;  %v6129_v52 = vld [vmem:[#allocation8 + $0x6cc] sm:$0xf0]  ;;  %v5328_v24 = vld [vmem:[#allocation8 + $0x9a8] sm:$0xf] }
  0x56   :  { %3141 = vmatpush.bf16.msrb.mxu3 %v5489_v61  ;;  %v6177_v61 = vld [vmem:[#allocation8 + $0x854] sm:$0xf]  ;;  %v129_v33 = vld [vmem:[#allocation7] sm:$0xf]  ;;  %s3937_s4 = sshll.u32 %s6535_s2, 4  ;;  %s3939_s23 = sshll.u32 %s6795_s5, 4  ;;  %s3938_s4 = int_to_ptr.vmem [resolvable:$true] %s3937_s4  ;;  %s3940_s23 = int_to_ptr.hbm [resolvable:$true] %s3939_s23 }
  0x57   :  { %3100 = vmatpush.bf16.msrb.mxu0 %v4089_v60  ;;  %v4653_v60 = vor.u32 %v6051_v57, %v4650_v59  ;;  %v5157_v0 = vor.u32 %v6177_v61, %v5154_v62  ;;  %v132_v37 = vperm.slane %v129_v33, 1  ;;  %v133_v49 = vperm.slane %v129_v33, 2  ;;  %v4432_v59 = vld [vmem:[#allocation8 + $0x2a8] sm:$0xf] }
  0x58   :  { %3114 = vmatpush.bf16.msrb.mxu1 %v4537_v2  ;;  %v5605_v2 = vor.u32 %v6289_v63, %v5602_v1  ;;  %v134_v53 = vperm.slane %v129_v33, 3  ;;  %v4880_v63 = vld [vmem:[#allocation8 + $0x628] sm:$0xf] }
  0x59   :  { %3128 = vmatpush.bf16.msrb.mxu2 %v4985_v13  ;;  %v5546_v13 = vld [vmem:[#allocation8 + $0xb98] sm:$0xf0] }
  0x5a   :  { %3142 = vmatpush.bf16.msrb.mxu3 %v5433_v14  ;;  %v5549_v14 = vor.u32 %v6275_v11, %v5546_v13  ;;  %v6353_v11 = vld [vmem:[#allocation8 + $0xdcc] sm:$0xf0] }
  0x5b   :  { %3149 = vmatpush.bf16.msra.mxu0 %v4485_v3  ;;  %v5925_v3 = vld [vmem:[#allocation8 + $0x74] sm:$0xf]  ;;  %v5989_v13 = vld [vmem:[#allocation8 + $0x26c] sm:$0xf0] }
  0x5c   :  { %3163 = vmatpush.bf16.msra.mxu1 %v4933_v7  ;;  %v4149_v5 = vor.u32 %v5925_v3, %v4146_v4  ;;  %v4594_v7 = vld [vmem:[#allocation8 + $0x428] sm:$0xf0] }
  0x5d   :  { %3177 = vmatpush.bf16.msra.mxu2 %v5381_v15  ;;  %v4597_v8 = vor.u32 %v6037_v6, %v4594_v7  ;;  %v5911_v15 = vld [vmem:[#allocation8 + $0x4] sm:$0xf]  ;;  %v5384_v6 = vld [vmem:[#allocation8 + $0xa18] sm:$0xf]  ;;  %v6241_v7 = vld [vmem:[#allocation8 + $0xa4c] sm:$0xf0] }
  0x5e   :  { %3191 = vmatpush.bf16.msra.mxu3 %v5829_v17  ;;  %v6023_v17 = vld [vmem:[#allocation8 + $0x384] sm:$0xf] }
  0x5f   :  { %3150 = vmatpush.bf16.msra.mxu0 %v4429_v16  ;;  %v4090_v16 = vld [vmem:[#allocation8 + $0x38] sm:$0xf0]  ;;  %v4541_v20 = vor.u32 %v6023_v17, %v4538_v19  ;;  %v6101_v17 = vld [vmem:[#allocation8 + $0x5ec] sm:$0xf0] }
  0x60   :  { %3164 = vmatpush.bf16.msra.mxu1 %v4877_v21  ;;  %v4093_v18 = vor.u32 %v5911_v15, %v4090_v16  ;;  %v6149_v21 = vld [vmem:[#allocation8 + $0x774] sm:$0xf]  ;;  %v4824_v16 = vld [vmem:[#allocation8 + $0x5b8] sm:$0xf] }
  0x61   :  { %3178 = vmatpush.bf16.msra.mxu2 %v5325_v27  ;;  %v5045_v25 = vor.u32 %v6149_v21, %v5042_v22  ;;  %v6135_v27 = vld [vmem:[#allocation8 + $0x704] sm:$0xf] }
  0x62   :  { %3192 = vmatpush.bf16.msra.mxu3 %v5773_v29 }
  0x63   :  { %3151 = vmatpush.bf16.msra.mxu0 %v4373_v28  ;;  %v4986_v28 = vld [vmem:[#allocation8 + $0x738] sm:$0xf0] }
  0x64   :  { %3165 = vmatpush.bf16.msra.mxu1 %v4821_v30  ;;  %v4989_v29 = vor.u32 %v6135_v27, %v4986_v28  ;;  %v6247_v30 = vld [vmem:[#allocation8 + $0xa84] sm:$0xf]  ;;  %v4825_v28 = vor.u32 %v6101_v17, %v4824_v16  ;;  %v4096_v16 = vld [vmem:[#allocation8 + $0x8] sm:$0xf]  ;;  %v5919_v17 = vld [vmem:[#allocation8 + $0x3c] sm:$0xf0] }
  0x65   :  { %3179 = vmatpush.bf16.msra.mxu2 %v5269_v40  ;;  %v5437_v32 = vor.u32 %v6247_v30, %v5434_v31  ;;  %v4320_v30 = vld [vmem:[#allocation8 + $0x1c8] sm:$0xf]  ;;  %v5975_v31 = vld [vmem:[#allocation8 + $0x1fc] sm:$0xf0] }
  0x66   :  { %3193 = vmatpush.bf16.msra.mxu3 %v5717_v42 }
  0x67   :  { %3152 = vmatpush.bf16.msra.mxu0 %v4317_v35  ;;  %v131_v35 = vperm.slane %v129_v33, 0  ;;  %v6087_v33 = vld [vmem:[#allocation8 + $0x57c] sm:$0xf0] }
  0x68   :  { %3166 = vmatpush.bf16.msra.mxu1 %v4765_v36 }
  0x69   :  { %3180 = vmatpush.bf16.msra.mxu2 %v5213_v51  ;;  %v4936_v51 = vld [vmem:[#allocation8 + $0x698] sm:$0xf] }
  0x6a   :  { %3194 = vmatpush.bf16.msra.mxu3 %v5661_v54 }
  0x6b   :  { %3153 = vmatpush.bf16.msra.mxu0 %v4261_v46  ;;  %v4488_v46 = vld [vmem:[#allocation8 + $0x318] sm:$0xf] }
  0x6c   :  { %3167 = vmatpush.bf16.msra.mxu1 %v4709_v48  ;;  %v4489_v56 = vor.u32 %v6017_v47, %v4488_v46 }
  0x6d   :  { %3181 = vmatpush.bf16.msra.mxu2 %v5157_v0  ;;  %v6115_v0 = vld [vmem:[#allocation8 + $0x65c] sm:$0xf0] }
  0x6e   :  { %3195 = vmatpush.bf16.msra.mxu3 %v5605_v2  ;;  %v4881_v10 = vor.u32 %v6115_v0, %v4880_v63  ;;  %v6185_v63 = vld [vmem:[#allocation8 + $0x88c] sm:$0xf0] }
  0x6f   :  { %3154 = vmatpush.bf16.msra.mxu0 %v4205_v58  ;;  %v4937_v58 = vor.u32 %v6129_v52, %v4936_v51  ;;  %v5664_v52 = vld [vmem:[#allocation8 + $0xc48] sm:$0xf] }
  0x70   :  { %3168 = vmatpush.bf16.msra.mxu1 %v4653_v60  ;;  %v6003_v60 = vld [vmem:[#allocation8 + $0x2dc] sm:$0xf0] }
  0x71   :  { %3182 = vmatpush.bf16.msra.mxu2 %v5101_v12  ;;  %v4376_v12 = vld [vmem:[#allocation8 + $0x238] sm:$0xf] }
  0x72   :  { %3196 = vmatpush.bf16.msra.mxu3 %v5549_v14  ;;  %v4377_v23 = vor.u32 %v5989_v13, %v4376_v12  ;;  %v5552_v12 = vld [vmem:[#allocation8 + $0xb68] sm:$0xf] }
  0x73   :  { %3155 = vmatpush.bf16.msra.mxu0 %v4149_v5  ;;  %v4433_v5 = vor.u32 %v6003_v60, %v4432_v59 }
  0x74   :  { %3169 = vmatpush.bf16.msra.mxu1 %v4597_v8  ;;  %v5832_v8 = vld [vmem:[#allocation8 + $0xd98] sm:$0xf] }
  0x75   :  { %3183 = vmatpush.bf16.msra.mxu2 %v5045_v25  ;;  %v5833_v22 = vor.u32 %v6353_v11, %v5832_v8  ;;  %v6227_v25 = vld [vmem:[#allocation8 + $0x9dc] sm:$0xf0] }
  0x76   :  { %3197 = vmatpush.bf16.msra.mxu3 %v5493_v26  ;;  %v5776_v26 = vld [vmem:[#allocation8 + $0xd28] sm:$0xf]  ;;  %v6171_v11 = vld [vmem:[#allocation8 + $0x81c] sm:$0xf0] }
  0x77   :  { %3156 = vmatpush.bf16.msra.mxu0 %v4093_v18 }
  0x78   :  { %3170 = vmatpush.bf16.msra.mxu1 %v4541_v20  ;;  %v5385_v20 = vor.u32 %v6241_v7, %v5384_v6  ;;  %v4600_v6 = vld [vmem:[#allocation8 + $0x3f8] sm:$0xf]  ;;  %v6045_v7 = vld [vmem:[#allocation8 + $0x42c] sm:$0xf0] }
  0x79   :  { %3184 = vmatpush.bf16.msra.mxu2 %v4989_v29  ;;  %v6339_v29 = vld [vmem:[#allocation8 + $0xd5c] sm:$0xf0] }
  0x7a   :  { %3198 = vmatpush.bf16.msra.mxu3 %v5437_v32  ;;  %v4768_v32 = vld [vmem:[#allocation8 + $0x548] sm:$0xf] }
  0xb7   :  { %v314_v34 = vpop.f32.mrf.mxu0 }
  0xb8   :  { %v328_v36 = vpop.f32.mrf.mxu1  ;;  %v315_v38 = vadd.f32 %v314_v34, %v131_v35  ;;  %v5329_v34 = vor.u32 %v6227_v25, %v5328_v24  ;;  %v6122_v24 = vld [vmem:[#allocation8 + $0x69c] sm:$0xf]  ;;  %v4938_v25 = vld [vmem:[#allocation8 + $0x6d0] sm:$0xf0] }
  0xb9   :  { %v329_v39 = vadd.f32 %v328_v36, %v132_v37  ;;  %v4321_v36 = vor.u32 %v5975_v31, %v4320_v30  ;;  %v4097_v30 = vor.u32 %v5919_v17, %v4096_v16  ;;  %v5954_v16 = vld [vmem:[#allocation8 + $0x15c] sm:$0xf]  ;;  %v4266_v17 = vld [vmem:[#allocation8 + $0x190] sm:$0xf0] }
  0xba   :  { %v361_v43 = vmax.f32 %v315_v38, 0.0  ;;  %v6213_v38 = vld [vmem:[#allocation8 + $0x96c] sm:$0xf0] }
  0xbb   :  { %v362_v48 = vmax.f32 %v329_v39, 0.0  ;;  %v4769_v39 = vor.u32 %v6087_v33, %v4768_v32  ;;  %v5496_v32 = vld [vmem:[#allocation8 + $0xaf8] sm:$0xf]  ;;  %v6269_v33 = vld [vmem:[#allocation8 + $0xb2c] sm:$0xf0] }
  0xbf   :  { %v342_v40 = vpop.f32.mrf.mxu2  ;;  %v316_v42 = vpop.f32.mrf.mxu0 }
  0xc0   :  { %v356_v41 = vpop.f32.mrf.mxu3  ;;  %v317_v44 = vadd.f32 %v316_v42, %v131_v35  ;;  %v330_v45 = vpop.f32.mrf.mxu1  ;;  %v343_v61 = vadd.f32 %v342_v40, %v133_v49  ;;  %v5777_v35 = vor.u32 %v6339_v29, %v5776_v26  ;;  %v5720_v40 = vld [vmem:[#allocation8 + $0xcb8] sm:$0xf]  ;;  %v6157_v29 = vld [vmem:[#allocation8 + $0x7ac] sm:$0xf0] }
  0xc1   :  { %v331_v50 = vadd.f32 %v330_v45, %v132_v37  ;;  %v357_v1 = vadd.f32 %v356_v41, %v134_v53  ;;  %v5272_v37 = vld [vmem:[#allocation8 + $0x938] sm:$0xf]  ;;  %v6325_v41 = vld [vmem:[#allocation8 + $0xcec] sm:$0xf0] }
  0xc2   :  { %v365_v54 = vmax.f32 %v317_v44, 0.0  ;;  %v363_v14 = vmax.f32 %v343_v61, 0.0  ;;  %v4264_v42 = vld [vmem:[#allocation8 + $0x158] sm:$0xf]  ;;  %v6073_v45 = vld [vmem:[#allocation8 + $0x50c] sm:$0xf0]  ;;  %v5273_v46 = vor.u32 %v6213_v38, %v5272_v37  ;;  %v5721_v47 = vor.u32 %v6325_v41, %v5720_v40 }
  0xc3   :  { %v366_v55 = vmax.f32 %v331_v50, 0.0  ;;  %v364_v18 = vmax.f32 %v357_v1, 0.0  ;;  %v4712_v44 = vld [vmem:[#allocation8 + $0x4d8] sm:$0xf]  ;;  %v4434_v38 = vld [vmem:[#allocation8 + $0x2e0] sm:$0xf0]  ;;  %v5497_v41 = vor.u32 %v6269_v33, %v5496_v32 }
  0xc4   :  { %v6584_v57 = vpack.c.bf16 %v365_v54, %v361_v43  ;;  %v5961_v43 = vld [vmem:[#allocation8 + $0x18c] sm:$0xf0]  ;;  %v4713_v51 = vor.u32 %v6073_v45, %v4712_v44  ;;  %v4208_v54 = vld [vmem:[#allocation8 + $0xe8] sm:$0xf]  ;;  %v5160_v61 = vld [vmem:[#allocation8 + $0x858] sm:$0xf] }
  0xc5   :  { %v6586_v62 = vpack.c.bf16 %v366_v55, %v362_v48  ;;  %v5216_v48 = vld [vmem:[#allocation8 + $0x8c8] sm:$0xf]  ;;  %v4265_v50 = vor.u32 %v5961_v43, %v4264_v42  ;;  %v5947_v55 = vld [vmem:[#allocation8 + $0x11c] sm:$0xf0]  ;;  %v5161_v8 = vor.u32 %v6185_v63, %v5160_v61  ;;  %v4882_v40 = vld [vmem:[#allocation8 + $0x660] sm:$0xf0] }
  0xc6   :  { %3101 = vmatmul.bf16.vlgmr.msrb.gmra.mxu0 %v6584_v57  ;;  %v4209_v0 = vor.u32 %v5947_v55, %v4208_v54  ;;  %v4992_v42 = vld [vmem:[#allocation8 + $0x708] sm:$0xf]  ;;  %v6143_v43 = vld [vmem:[#allocation8 + $0x73c] sm:$0xf0]  ;;  %v4378_v54 = vld [vmem:[#allocation8 + $0x270] sm:$0xf0] }
  0xc7   :  { %v344_v2 = vpop.f32.mrf.mxu2  ;;  %3115 = vmatmul.bf16.vlgmr.msrb.gmra.mxu1 %v6586_v62  ;;  %3205 = vmatpush.bf16.msrb.mxu0 %v4489_v56  ;;  %v4656_v56 = vld [vmem:[#allocation8 + $0x468] sm:$0xf]  ;;  %v6255_v45 = vld [vmem:[#allocation8 + $0xabc] sm:$0xf0]  ;;  %v6094_v55 = vld [vmem:[#allocation8 + $0x5bc] sm:$0xf] }
  0xc8   :  { %v345_v3 = vadd.f32 %v344_v2, %v133_v49  ;;  %v358_v4 = vpop.f32.mrf.mxu3  ;;  %3219 = vmatpush.bf16.msrb.mxu1 %v4937_v58  ;;  %v6199_v49 = vld [vmem:[#allocation8 + $0x8fc] sm:$0xf0]  ;;  %v5608_v2 = vld [vmem:[#allocation8 + $0xbd8] sm:$0xf]  ;;  %v5440_v44 = vld [vmem:[#allocation8 + $0xa88] sm:$0xf] }
  0xc9   :  { %v359_v9 = vadd.f32 %v358_v4, %v134_v53  ;;  %v6311_v53 = vld [vmem:[#allocation8 + $0xc7c] sm:$0xf0]  ;;  %v5217_v59 = vor.u32 %v6199_v49, %v5216_v48  ;;  %v4152_v4 = vld [vmem:[#allocation8 + $0x78] sm:$0xf]  ;;  %v6220_v61 = vld [vmem:[#allocation8 + $0x9ac] sm:$0xf] }
  0xca   :  { %v367_v15 = vmax.f32 %v345_v3, 0.0  ;;  %v6059_v58 = vld [vmem:[#allocation8 + $0x49c] sm:$0xf0]  ;;  %v5665_v60 = vor.u32 %v6311_v53, %v5664_v52  ;;  %v6297_v3 = vld [vmem:[#allocation8 + $0xc0c] sm:$0xf0]  ;;  %v4993_v53 = vor.u32 %v6143_v43, %v4992_v42 }
  0xcb   :  { %v368_v19 = vmax.f32 %v359_v9, 0.0  ;;  %3206 = vmatpush.bf16.msrb.mxu0 %v4433_v5  ;;  %v4657_v1 = vor.u32 %v6059_v58, %v4656_v56  ;;  %v5933_v5 = vld [vmem:[#allocation8 + $0xac] sm:$0xf0]  ;;  %v5609_v9 = vor.u32 %v6297_v3, %v5608_v2  ;;  %v5982_v52 = vld [vmem:[#allocation8 + $0x23c] sm:$0xf]  ;;  %v5441_v58 = vor.u32 %v6255_v45, %v5440_v44 }
  0xcc   :  { %v6590_v21 = vpack.c.bf16 %v367_v15, %v363_v14  ;;  %3220 = vmatpush.bf16.msrb.mxu1 %v4881_v10  ;;  %v5104_v10 = vld [vmem:[#allocation8 + $0x7e8] sm:$0xf]  ;;  %v4153_v13 = vor.u32 %v5933_v5, %v4152_v4  ;;  %v4601_v14 = vor.u32 %v6045_v7, %v4600_v6  ;;  %v6283_v15 = vld [vmem:[#allocation8 + $0xb9c] sm:$0xf0]  ;;  %v4826_v56 = vld [vmem:[#allocation8 + $0x5f0] sm:$0xf0] }
  0xcd   :  { %v6592_v27 = vpack.c.bf16 %v368_v19, %v364_v18  ;;  %v4544_v18 = vld [vmem:[#allocation8 + $0x388] sm:$0xf]  ;;  %v6031_v19 = vld [vmem:[#allocation8 + $0x3bc] sm:$0xf0]  ;;  %v5553_v26 = vor.u32 %v6283_v15, %v5552_v12  ;;  %v5330_v63 = vld [vmem:[#allocation8 + $0x9e0] sm:$0xf0] }
  0xce   :  { %3129 = vmatmul.bf16.vlgmr.msrb.gmra.mxu2 %v6590_v21  ;;  %v4545_v31 = vor.u32 %v6031_v19, %v4544_v18  ;;  %v6332_v2 = vld [vmem:[#allocation8 + $0xd2c] sm:$0xf]  ;;  %v5778_v3 = vld [vmem:[#allocation8 + $0xd60] sm:$0xf0]  ;;  %v5722_v15 = vld [vmem:[#allocation8 + $0xcf0] sm:$0xf0] }
  0xcf   :  { %3143 = vmatmul.bf16.vlgmr.msrb.gmra.mxu3 %v6592_v27  ;;  %3233 = vmatpush.bf16.msrb.mxu2 %v5385_v20  ;;  %v6010_v20 = vld [vmem:[#allocation8 + $0x31c] sm:$0xf]  ;;  %v5968_v4 = vld [vmem:[#allocation8 + $0x1cc] sm:$0xf]  ;;  %v4322_v5 = vld [vmem:[#allocation8 + $0x200] sm:$0xf0] }
  0xd0   :  { %3247 = vmatpush.bf16.msrb.mxu3 %v5833_v22  ;;  %3207 = vmatpush.bf16.msrb.mxu0 %v4377_v23  ;;  %v5105_v22 = vor.u32 %v6171_v11, %v5104_v10  ;;  %v4490_v23 = vld [vmem:[#allocation8 + $0x350] sm:$0xf0]  ;;  %v6080_v6 = vld [vmem:[#allocation8 + $0x54c] sm:$0xf]  ;;  %v4770_v7 = vld [vmem:[#allocation8 + $0x580] sm:$0xf0]  ;;  %v4325_v12 = vor.u32 %v5968_v4, %v4322_v5 }
  0xd1   :  { %3221 = vmatpush.bf16.msrb.mxu1 %v4825_v28  ;;  %v5048_v28 = vld [vmem:[#allocation8 + $0x778] sm:$0xf]  ;;  %v6206_v10 = vld [vmem:[#allocation8 + $0x93c] sm:$0xf]  ;;  %v5274_v11 = vld [vmem:[#allocation8 + $0x970] sm:$0xf0] }
  0xd2   :  { %v5049_v37 = vor.u32 %v6157_v29, %v5048_v28  ;;  %v6066_v18 = vld [vmem:[#allocation8 + $0x4dc] sm:$0xf]  ;;  %v4714_v19 = vld [vmem:[#allocation8 + $0x510] sm:$0xf0]  ;;  %v6304_v28 = vld [vmem:[#allocation8 + $0xc4c] sm:$0xf] }
  0xd3   :  { %3234 = vmatpush.bf16.msrb.mxu2 %v5329_v34  ;;  %v4493_v34 = vor.u32 %v6010_v20, %v4490_v23  ;;  %v5277_v20 = vor.u32 %v6206_v10, %v5274_v11  ;;  %v6192_v23 = vld [vmem:[#allocation8 + $0x8cc] sm:$0xf]  ;;  %v5666_v29 = vld [vmem:[#allocation8 + $0xc80] sm:$0xf0]  ;;  %v5926_v42 = vld [vmem:[#allocation8 + $0x7c] sm:$0xf] }
  0xd4   :  { %3248 = vmatpush.bf16.msrb.mxu3 %v5777_v35  ;;  %3208 = vmatpush.bf16.msrb.mxu0 %v4321_v36  ;;  %v4941_v35 = vor.u32 %v6122_v24, %v4938_v25  ;;  %v5996_v36 = vld [vmem:[#allocation8 + $0x2ac] sm:$0xf]  ;;  %v5218_v24 = vld [vmem:[#allocation8 + $0x900] sm:$0xf0]  ;;  %v4269_v25 = vor.u32 %v5954_v16, %v4266_v17  ;;  %v4154_v43 = vld [vmem:[#allocation8 + $0xb0] sm:$0xf0] }
  0xd5   :  { %3222 = vmatpush.bf16.msrb.mxu1 %v4769_v39  ;;  %v6108_v39 = vld [vmem:[#allocation8 + $0x62c] sm:$0xf]  ;;  %v4437_v48 = vor.u32 %v5996_v36, %v4434_v38  ;;  %v4658_v33 = vld [vmem:[#allocation8 + $0x4a0] sm:$0xf0]  ;;  %v6178_v36 = vld [vmem:[#allocation8 + $0x85c] sm:$0xf] }
  0xd6   :  { %3157 = vmatmul.bf16.vlgmr.msra.gmra.mxu0 %v6584_v57  ;;  %v4885_v49 = vor.u32 %v6108_v39, %v4882_v40  ;;  %v6052_v32 = vld [vmem:[#allocation8 + $0x46c] sm:$0xf]  ;;  %v6290_v40 = vld [vmem:[#allocation8 + $0xbdc] sm:$0xf]  ;;  %v4602_v45 = vld [vmem:[#allocation8 + $0x430] sm:$0xf0] }
  0xd7   :  { %3235 = vmatpush.bf16.msrb.mxu2 %v5273_v46  ;;  %3171 = vmatmul.bf16.vlgmr.msra.gmra.mxu1 %v6586_v62  ;;  %v6234_v46 = vld [vmem:[#allocation8 + $0xa1c] sm:$0xf]  ;;  %v4661_v39 = vor.u32 %v6052_v32, %v4658_v33  ;;  %v4440_v10 = vld [vmem:[#allocation8 + $0x2b0] sm:$0xf]  ;;  %v6136_v16 = vld [vmem:[#allocation8 + $0x70c] sm:$0xf] }
  0xd8   :  { %3249 = vmatpush.bf16.msrb.mxu3 %v5721_v47  ;;  %3209 = vmatpush.bf16.msrb.mxu0 %v4265_v50  ;;  %v5386_v47 = vld [vmem:[#allocation8 + $0xa50] sm:$0xf0]  ;;  %v6346_v50 = vld [vmem:[#allocation8 + $0xd9c] sm:$0xf]  ;;  %v4994_v17 = vld [vmem:[#allocation8 + $0x740] sm:$0xf0] }
  0xd9   :  { %3223 = vmatpush.bf16.msrb.mxu1 %v4713_v51  ;;  %v5834_v51 = vld [vmem:[#allocation8 + $0xdd0] sm:$0xf0]  ;;  %v6038_v44 = vld [vmem:[#allocation8 + $0x3fc] sm:$0xf]  ;;  %v4832_v33 = vld [vmem:[#allocation8 + $0x5c0] sm:$0xf] }
  0xdb   :  { %3236 = vmatpush.bf16.msrb.mxu2 %v5217_v59  ;;  %v5389_v59 = vor.u32 %v6234_v46, %v5386_v47 }
  0xdc   :  { %3250 = vmatpush.bf16.msrb.mxu3 %v5665_v60  ;;  %3210 = vmatpush.bf16.msrb.mxu0 %v4209_v0  ;;  %v5837_v60 = vor.u32 %v6346_v50, %v5834_v51  ;;  %v4381_v0 = vor.u32 %v5982_v52, %v4378_v54  ;;  %v6276_v50 = vld [vmem:[#allocation8 + $0xb6c] sm:$0xf]  ;;  %v4157_v51 = vor.u32 %v5926_v42, %v4154_v43  ;;  %v4328_v42 = vld [vmem:[#allocation8 + $0x1d0] sm:$0xf]  ;;  %v5976_v43 = vld [vmem:[#allocation8 + $0x204] sm:$0xf0] }
  0xdd   :  { %3224 = vmatpush.bf16.msrb.mxu1 %v4657_v1  ;;  %v4829_v1 = vor.u32 %v6094_v55, %v4826_v56  ;;  %v4605_v52 = vor.u32 %v6038_v44, %v4602_v45  ;;  %v5912_v54 = vld [vmem:[#allocation8 + $0xc] sm:$0xf]  ;;  %v4098_v55 = vld [vmem:[#allocation8 + $0x40] sm:$0xf0]  ;;  %v4776_v45 = vld [vmem:[#allocation8 + $0x550] sm:$0xf] }
  0xde   :  { %3185 = vmatmul.bf16.vlgmr.msra.gmra.mxu2 %v6590_v21  ;;  %v6024_v56 = vld [vmem:[#allocation8 + $0x38c] sm:$0xf]  ;;  %v4101_v4 = vor.u32 %v5912_v54, %v4098_v55  ;;  %v4272_v54 = vld [vmem:[#allocation8 + $0x160] sm:$0xf]  ;;  %v5962_v55 = vld [vmem:[#allocation8 + $0x194] sm:$0xf0] }
  0xdf   :  { %3199 = vmatmul.bf16.vlgmr.msra.gmra.mxu3 %v6592_v27  ;;  %3237 = vmatpush.bf16.msrb.mxu2 %v5161_v8  ;;  %v5333_v8 = vor.u32 %v6220_v61, %v5330_v63  ;;  %v6018_v61 = vld [vmem:[#allocation8 + $0x354] sm:$0xf0]  ;;  %v4944_v63 = vld [vmem:[#allocation8 + $0x6a0] sm:$0xf] }
  0xe0   :  { %3251 = vmatpush.bf16.msrb.mxu3 %v5609_v9  ;;  %3211 = vmatpush.bf16.msrb.mxu0 %v4153_v13  ;;  %v5781_v9 = vor.u32 %v6332_v2, %v5778_v3  ;;  %v4773_v13 = vor.u32 %v6080_v6, %v4770_v7  ;;  %v6150_v2 = vld [vmem:[#allocation8 + $0x77c] sm:$0xf]  ;;  %v5050_v3 = vld [vmem:[#allocation8 + $0x7b0] sm:$0xf0] }
  0xe1   :  { %3225 = vmatpush.bf16.msrb.mxu1 %v4601_v14  ;;  %v6318_v14 = vld [vmem:[#allocation8 + $0xcbc] sm:$0xf]  ;;  %v5498_v7 = vld [vmem:[#allocation8 + $0xb30] sm:$0xf0]  ;;  %v5053_v11 = vor.u32 %v6150_v2, %v5050_v3  ;;  %v6312_v2 = vld [vmem:[#allocation8 + $0xc84] sm:$0xf0] }
  0xe2   :  { %v6262_v6 = vld [vmem:[#allocation8 + $0xafc] sm:$0xf] }
  0xe3   :  { %3238 = vmatpush.bf16.msrb.mxu2 %v5105_v22  ;;  %v5725_v22 = vor.u32 %v6318_v14, %v5722_v15  ;;  %v6116_v14 = vld [vmem:[#allocation8 + $0x664] sm:$0xf0]  ;;  %v5501_v15 = vor.u32 %v6262_v6, %v5498_v7  ;;  %v4664_v7 = vld [vmem:[#allocation8 + $0x470] sm:$0xf] }
  0xe4   :  { %3252 = vmatpush.bf16.msrb.mxu3 %v5553_v26  ;;  %3212 = vmatpush.bf16.msrb.mxu0 %v4097_v30  ;;  %v4717_v26 = vor.u32 %v6066_v18, %v4714_v19  ;;  %v5940_v30 = vld [vmem:[#allocation8 + $0xec] sm:$0xf]  ;;  %v5442_v19 = vld [vmem:[#allocation8 + $0xac0] sm:$0xf0] }
  0xe5   :  { %3226 = vmatpush.bf16.msrb.mxu1 %v4545_v31  ;;  %v4210_v31 = vld [vmem:[#allocation8 + $0x120] sm:$0xf0]  ;;  %v6248_v18 = vld [vmem:[#allocation8 + $0xa8c] sm:$0xf] }
  0xe6   :  { %v4213_v38 = vor.u32 %v5940_v30, %v4210_v31  ;;  %v5990_v30 = vld [vmem:[#allocation8 + $0x274] sm:$0xf0]  ;;  %v5445_v31 = vor.u32 %v6248_v18, %v5442_v19  ;;  %v4608_v19 = vld [vmem:[#allocation8 + $0x400] sm:$0xf] }
  0xe7   :  { %3239 = vmatpush.bf16.msrb.mxu2 %v5049_v37  ;;  %3213 = vmatmul.bf16.vlgmr.msrb.gmra.mxu0 %v6584_v57  ;;  %v5162_v37 = vld [vmem:[#allocation8 + $0x890] sm:$0xf0] }
  0xe8   :  { %3261 = vmatpush.bf16.msra.mxu0 %v4493_v34  ;;  %3253 = vmatpush.bf16.msrb.mxu3 %v5497_v41  ;;  %v5221_v34 = vor.u32 %v6192_v23, %v5218_v24  ;;  %v5610_v41 = vld [vmem:[#allocation8 + $0xc10] sm:$0xf0]  ;;  %v5165_v46 = vor.u32 %v6178_v36, %v5162_v37  ;;  %v5336_v36 = vld [vmem:[#allocation8 + $0x9b0] sm:$0xf]  ;;  %v6228_v37 = vld [vmem:[#allocation8 + $0x9e4] sm:$0xf0] }
  0xe9   :  { %3275 = vmatpush.bf16.msra.mxu1 %v4941_v35  ;;  %v5669_v35 = vor.u32 %v6304_v28, %v5666_v29  ;;  %v5613_v47 = vor.u32 %v6290_v40, %v5610_v41  ;;  %v4997_v28 = vor.u32 %v6136_v16, %v4994_v17  ;;  %v4384_v29 = vld [vmem:[#allocation8 + $0x240] sm:$0xf]  ;;  %v6340_v40 = vld [vmem:[#allocation8 + $0xd64] sm:$0xf0]  ;;  %v5337_v44 = vor.u32 %v6228_v37, %v5336_v36  ;;  %v5934_v17 = vld [vmem:[#allocation8 + $0xb4] sm:$0xf0] }
  0xea   :  { %3227 = vmatmul.bf16.vlgmr.msrb.gmra.mxu1 %v6586_v62  ;;  %v4160_v16 = vld [vmem:[#allocation8 + $0x80] sm:$0xf]  ;;  %v4498_v36 = vld [vmem:[#allocation8 + $0x358] sm:$0xf0]  ;;  %v6123_v37 = vld [vmem:[#allocation8 + $0x6a4] sm:$0xf] }
  0xeb   :  { %3240 = vmatpush.bf16.msrb.mxu2 %v4993_v53  ;;  %v5554_v53 = vld [vmem:[#allocation8 + $0xba0] sm:$0xf0] }
  0xec   :  { %3262 = vmatpush.bf16.msra.mxu0 %v4437_v48  ;;  %3254 = vmatpush.bf16.msrb.mxu3 %v5441_v58  ;;  %v6164_v48 = vld [vmem:[#allocation8 + $0x7ec] sm:$0xf]  ;;  %v4546_v58 = vld [vmem:[#allocation8 + $0x3c0] sm:$0xf0] }
  0xed   :  { %3276 = vmatpush.bf16.msra.mxu1 %v4885_v49  ;;  %v5106_v49 = vld [vmem:[#allocation8 + $0x820] sm:$0xf0]  ;;  %v4549_v5 = vor.u32 %v6024_v56, %v4546_v58  ;;  %v4720_v58 = vld [vmem:[#allocation8 + $0x4e0] sm:$0xf] }
  0xee   :  { %3241 = vmatmul.bf16.vlgmr.msrb.gmra.mxu2 %v6590_v21 }
  0xef   :  { %3289 = vmatpush.bf16.msra.mxu2 %v5389_v59  ;;  %3255 = vmatmul.bf16.vlgmr.msrb.gmra.mxu3 %v6592_v27  ;;  %v4496_v59 = vld [vmem:[#allocation8 + $0x320] sm:$0xf] }
  0xf0   :  { %3303 = vmatpush.bf16.msra.mxu3 %v5837_v60  ;;  %3263 = vmatpush.bf16.msra.mxu0 %v4381_v0  ;;  %v5109_v60 = vor.u32 %v6164_v48, %v5106_v49  ;;  %v6130_v0 = vld [vmem:[#allocation8 + $0x6d4] sm:$0xf0]  ;;  %v5280_v48 = vld [vmem:[#allocation8 + $0x940] sm:$0xf] }
  0xf1   :  { %3277 = vmatpush.bf16.msra.mxu1 %v4829_v1  ;;  %v5557_v1 = vor.u32 %v6276_v50, %v5554_v53  ;;  %v6214_v49 = vld [vmem:[#allocation8 + $0x974] sm:$0xf0]  ;;  %v4329_v50 = vor.u32 %v5976_v43, %v4328_v42  ;;  %v5504_v43 = vld [vmem:[#allocation8 + $0xb00] sm:$0xf] }
  0xf2   :  { %v5281_v56 = vor.u32 %v6214_v49, %v5280_v48 }
  0xf3   :  { %3290 = vmatpush.bf16.msra.mxu2 %v5333_v8  ;;  %v4497_v8 = vor.u32 %v6018_v61, %v4496_v59  ;;  %v6074_v59 = vld [vmem:[#allocation8 + $0x514] sm:$0xf0]  ;;  %v5224_v61 = vld [vmem:[#allocation8 + $0x8d0] sm:$0xf] }
  0xf4   :  { %3304 = vmatpush.bf16.msra.mxu3 %v5781_v9  ;;  %3264 = vmatpush.bf16.msra.mxu0 %v4325_v12  ;;  %v4945_v9 = vor.u32 %v6130_v0, %v4944_v63  ;;  %v6004_v12 = vld [vmem:[#allocation8 + $0x2e4] sm:$0xf0]  ;;  %v4273_v0 = vor.u32 %v5962_v55, %v4272_v54  ;;  %v4721_v3 = vor.u32 %v6074_v59, %v4720_v58  ;;  %v5000_v54 = vld [vmem:[#allocation8 + $0x710] sm:$0xf]  ;;  %v6235_v59 = vld [vmem:[#allocation8 + $0xa24] sm:$0xf] }
  0xf5   :  { %3278 = vmatpush.bf16.msra.mxu1 %v4773_v13  ;;  %v4888_v13 = vld [vmem:[#allocation8 + $0x630] sm:$0xf]  ;;  %v4441_v23 = vor.u32 %v6004_v12, %v4440_v10  ;;  %v6200_v63 = vld [vmem:[#allocation8 + $0x904] sm:$0xf0]  ;;  %v5168_v10 = vld [vmem:[#allocation8 + $0x860] sm:$0xf] }
  0xf6   :  { %v4889_v24 = vor.u32 %v6116_v14, %v4888_v13  ;;  %v5225_v6 = vor.u32 %v6200_v63, %v5224_v61  ;;  %v5616_v13 = vld [vmem:[#allocation8 + $0xbe0] sm:$0xf]  ;;  %v6298_v14 = vld [vmem:[#allocation8 + $0xc14] sm:$0xf0]  ;;  %v6144_v55 = vld [vmem:[#allocation8 + $0x744] sm:$0xf0] }
  0xf7   :  { %3291 = vmatpush.bf16.msra.mxu2 %v5277_v20  ;;  %v5392_v20 = vld [vmem:[#allocation8 + $0xa20] sm:$0xf]  ;;  %v6256_v58 = vld [vmem:[#allocation8 + $0xac4] sm:$0xf0]  ;;  %v6347_v63 = vld [vmem:[#allocation8 + $0xda4] sm:$0xf] }
  0xf8   :  { %3305 = vmatpush.bf16.msra.mxu3 %v5725_v22  ;;  %3265 = vmatpush.bf16.msra.mxu0 %v4269_v25  ;;  %v6242_v22 = vld [vmem:[#allocation8 + $0xa54] sm:$0xf0]  ;;  %v5840_v25 = vld [vmem:[#allocation8 + $0xda0] sm:$0xf] }
  0xf9   :  { %3279 = vmatpush.bf16.msra.mxu1 %v4717_v26  ;;  %v6354_v26 = vld [vmem:[#allocation8 + $0xdd4] sm:$0xf0]  ;;  %v5393_v32 = vor.u32 %v6242_v22, %v5392_v20  ;;  %v5617_v22 = vor.u32 %v6298_v14, %v5616_v13  ;;  %v6333_v13 = vld [vmem:[#allocation8 + $0xd34] sm:$0xf]  ;;  %v5786_v14 = vld [vmem:[#allocation8 + $0xd68] sm:$0xf0] }
  0xfa   :  { %v6046_v20 = vld [vmem:[#allocation8 + $0x434] sm:$0xf0] }
  0xfb   :  { %3292 = vmatpush.bf16.msra.mxu2 %v5221_v34  ;;  %v6102_v34 = vld [vmem:[#allocation8 + $0x5f4] sm:$0xf0] }
  0xfc   :  { %3306 = vmatpush.bf16.msra.mxu3 %v5669_v35  ;;  %3266 = vmatpush.bf16.msra.mxu0 %v4213_v38  ;;  %v5841_v35 = vor.u32 %v6354_v26, %v5840_v25  ;;  %v4385_v38 = vor.u32 %v5990_v30, %v4384_v29  ;;  %v4833_v41 = vor.u32 %v6102_v34, %v4832_v33  ;;  %v5560_v26 = vld [vmem:[#allocation8 + $0xb70] sm:$0xf]  ;;  %v6032_v33 = vld [vmem:[#allocation8 + $0x3c4] sm:$0xf0] }
  0xfd   :  { %3280 = vmatpush.bf16.msra.mxu1 %v4661_v39  ;;  %v5784_v39 = vld [vmem:[#allocation8 + $0xd30] sm:$0xf]  ;;  %v4161_v25 = vor.u32 %v5934_v17, %v4160_v16  ;;  %v4609_v30 = vor.u32 %v6046_v20, %v4608_v19  ;;  %v5969_v16 = vld [vmem:[#allocation8 + $0x1d4] sm:$0xf]  ;;  %v4330_v17 = vld [vmem:[#allocation8 + $0x208] sm:$0xf0] }
  0xfe   :  { %v4104_v29 = vld [vmem:[#allocation8 + $0x10] sm:$0xf]  ;;  %v6081_v19 = vld [vmem:[#allocation8 + $0x554] sm:$0xf]  ;;  %v4778_v20 = vld [vmem:[#allocation8 + $0x588] sm:$0xf0] }
  0xff   :  { %3293 = vmatpush.bf16.msra.mxu2 %v5165_v46  ;;  %v6088_v46 = vld [vmem:[#allocation8 + $0x584] sm:$0xf0] }
 0x100   :  { %3307 = vmatpush.bf16.msra.mxu3 %v5613_v47  ;;  %3267 = vmatpush.bf16.msra.mxu0 %v4157_v51  ;;  %v5785_v47 = vor.u32 %v6340_v40, %v5784_v39  ;;  %v5728_v51 = vld [vmem:[#allocation8 + $0xcc0] sm:$0xf]  ;;  %v4777_v53 = vor.u32 %v6088_v46, %v4776_v45  ;;  %v4946_v39 = vld [vmem:[#allocation8 + $0x6d8] sm:$0xf0] }
 0x101   :  { %3281 = vmatpush.bf16.msra.mxu1 %v4605_v52  ;;  %v6326_v52 = vld [vmem:[#allocation8 + $0xcf4] sm:$0xf0]  ;;  %v5056_v40 = vld [vmem:[#allocation8 + $0x780] sm:$0xf]  ;;  %v4949_v48 = vor.u32 %v6123_v37, %v4946_v39  ;;  %v5226_v37 = vld [vmem:[#allocation8 + $0x908] sm:$0xf0] }
 0x102   :  { %v6305_v39 = vld [vmem:[#allocation8 + $0xc54] sm:$0xf] }
 0x103   :  { %3294 = vmatpush.bf16.msra.mxu2 %v5109_v60  ;;  %v5729_v60 = vor.u32 %v6326_v52, %v5728_v51  ;;  %v6109_v51 = vld [vmem:[#allocation8 + $0x634] sm:$0xf]  ;;  %v4890_v52 = vld [vmem:[#allocation8 + $0x668] sm:$0xf0] }
 0x104   :  { %3308 = vmatpush.bf16.msra.mxu3 %v5557_v1  ;;  %3268 = vmatpush.bf16.msra.mxu0 %v4101_v4  ;;  %v5672_v1 = vld [vmem:[#allocation8 + $0xc50] sm:$0xf] }
 0x105   :  { %3282 = vmatpush.bf16.msra.mxu1 %v4549_v5  ;;  %v4216_v4 = vld [vmem:[#allocation8 + $0xf0] sm:$0xf]  ;;  %v5948_v5 = vld [vmem:[#allocation8 + $0x124] sm:$0xf0] }
 0x106   :  { %v4217_v12 = vor.u32 %v5948_v5, %v4216_v4  ;;  %v4386_v4 = vld [vmem:[#allocation8 + $0x278] sm:$0xf0] }
 0x107   :  { %3295 = vmatpush.bf16.msra.mxu2 %v5053_v11  ;;  %3269 = vmatmul.bf16.vlgmr.msra.gmra.mxu0 %v6584_v57  ;;  %v6186_v11 = vld [vmem:[#allocation8 + $0x894] sm:$0xf0] }
 0x108   :  { %3317 = vmatpush.bf16.msrb.mxu0 %v4497_v8  ;;  %3309 = vmatpush.bf16.msra.mxu3 %v5501_v15  ;;  %v6060_v8 = vld [vmem:[#allocation8 + $0x4a4] sm:$0xf0]  ;;  %v5169_v18 = vor.u32 %v6186_v11, %v5168_v10  ;;  %v6221_v10 = vld [vmem:[#allocation8 + $0x9b4] sm:$0xf]  ;;  %v5338_v11 = vld [vmem:[#allocation8 + $0x9e8] sm:$0xf0] }
 0x109   :  { %3331 = vmatpush.bf16.msrb.mxu1 %v4945_v9  ;;  %v5673_v9 = vor.u32 %v6312_v2, %v5672_v1  ;;  %v4665_v15 = vor.u32 %v6060_v8, %v4664_v7  ;;  %v4893_v1 = vor.u32 %v6109_v51, %v4890_v52  ;;  %v5001_v2 = vor.u32 %v6144_v55, %v5000_v54  ;;  %v6095_v7 = vld [vmem:[#allocation8 + $0x5c4] sm:$0xf]  ;;  %v4834_v8 = vld [vmem:[#allocation8 + $0x5f8] sm:$0xf0] }
 0x10a   :  { %3283 = vmatmul.bf16.vlgmr.msra.gmra.mxu1 %v6586_v62  ;;  %v6291_v51 = vld [vmem:[#allocation8 + $0xbe4] sm:$0xf]  ;;  %v5618_v52 = vld [vmem:[#allocation8 + $0xc18] sm:$0xf0] }
 0x10b   :  { %3296 = vmatpush.bf16.msra.mxu2 %v4997_v28  ;;  %v6284_v28 = vld [vmem:[#allocation8 + $0xba4] sm:$0xf0]  ;;  %v5927_v54 = vld [vmem:[#allocation8 + $0x84] sm:$0xf]  ;;  %v4162_v55 = vld [vmem:[#allocation8 + $0xb8] sm:$0xf0] }
 0x10c   :  { %3318 = vmatpush.bf16.msrb.mxu0 %v4441_v23  ;;  %3310 = vmatpush.bf16.msra.mxu3 %v5445_v31  ;;  %v5112_v23 = vld [vmem:[#allocation8 + $0x7f0] sm:$0xf]  ;;  %v5920_v31 = vld [vmem:[#allocation8 + $0x44] sm:$0xf0] }
 0x10d   :  { %3332 = vmatpush.bf16.msrb.mxu1 %v4889_v24  ;;  %v6172_v24 = vld [vmem:[#allocation8 + $0x824] sm:$0xf0]  ;;  %v4105_v42 = vor.u32 %v5920_v31, %v4104_v29  ;;  %v4781_v29 = vor.u32 %v6081_v19, %v4778_v20  ;;  %v4274_v31 = vld [vmem:[#allocation8 + $0x198] sm:$0xf0] }
 0x10e   :  { %3297 = vmatmul.bf16.vlgmr.msra.gmra.mxu2 %v6590_v21  ;;  %v5113_v34 = vor.u32 %v6172_v24, %v5112_v23  ;;  %v6207_v23 = vld [vmem:[#allocation8 + $0x944] sm:$0xf]  ;;  %v5282_v24 = vld [vmem:[#allocation8 + $0x978] sm:$0xf0] }
 0x10f   :  { %3345 = vmatpush.bf16.msrb.mxu2 %v5393_v32  ;;  %3311 = vmatmul.bf16.vlgmr.msra.gmra.mxu3 %v6592_v27  ;;  %v4552_v32 = vld [vmem:[#allocation8 + $0x390] sm:$0xf] }
 0x110   :  { %3359 = vmatpush.bf16.msrb.mxu3 %v5841_v35  ;;  %3319 = vmatpush.bf16.msrb.mxu0 %v4385_v38  ;;  %v6011_v35 = vld [vmem:[#allocation8 + $0x324] sm:$0xf]  ;;  %v5561_v38 = vor.u32 %v6284_v28, %v5560_v26  ;;  %v4553_v45 = vor.u32 %v6032_v33, %v4552_v32  ;;  %v5730_v28 = vld [vmem:[#allocation8 + $0xcf8] sm:$0xf0]  ;;  %v5285_v32 = vor.u32 %v6207_v23, %v5282_v24 }
 0x111   :  { %3333 = vmatpush.bf16.msrb.mxu1 %v4833_v41  ;;  %v6158_v41 = vld [vmem:[#allocation8 + $0x7b4] sm:$0xf0]  ;;  %v4501_v46 = vor.u32 %v6011_v35, %v4498_v36  ;;  %v6319_v26 = vld [vmem:[#allocation8 + $0xcc4] sm:$0xf]  ;;  %v6193_v36 = vld [vmem:[#allocation8 + $0x8d4] sm:$0xf] }
 0x112   :  { %v5057_v49 = vor.u32 %v6158_v41, %v5056_v40  ;;  %v6067_v33 = vld [vmem:[#allocation8 + $0x4e4] sm:$0xf]  ;;  %v5733_v35 = vor.u32 %v6319_v26, %v5730_v28  ;;  %v5674_v40 = vld [vmem:[#allocation8 + $0xc88] sm:$0xf0]  ;;  %v4896_v26 = vld [vmem:[#allocation8 + $0x638] sm:$0xf] }
 0x113   :  { %3346 = vmatpush.bf16.msrb.mxu2 %v5337_v44  ;;  %v6270_v44 = vld [vmem:[#allocation8 + $0xb34] sm:$0xf0]  ;;  %v6117_v28 = vld [vmem:[#allocation8 + $0x66c] sm:$0xf0] }
 0x114   :  { %3360 = vmatpush.bf16.msrb.mxu3 %v5785_v47  ;;  %3320 = vmatpush.bf16.msrb.mxu0 %v4329_v50  ;;  %v5997_v47 = vld [vmem:[#allocation8 + $0x2b4] sm:$0xf]  ;;  %v4442_v50 = vld [vmem:[#allocation8 + $0x2e8] sm:$0xf0] }
 0x115   :  { %3334 = vmatpush.bf16.msrb.mxu1 %v4777_v53  ;;  %v5505_v53 = vor.u32 %v6270_v44, %v5504_v43  ;;  %v4445_v61 = vor.u32 %v5997_v47, %v4442_v50  ;;  %v4218_v43 = vld [vmem:[#allocation8 + $0x128] sm:$0xf0]  ;;  %v5229_v44 = vor.u32 %v6193_v36, %v5226_v37  ;;  %v5677_v47 = vor.u32 %v6305_v39, %v5674_v40  ;;  %v5848_v37 = vld [vmem:[#allocation8 + $0xda8] sm:$0xf] }
 0x116   :  { %v4897_v39 = vor.u32 %v6117_v28, %v4896_v26  ;;  %v6187_v26 = vld [vmem:[#allocation8 + $0x89c] sm:$0xf0] }
 0x117   :  { %3347 = vmatpush.bf16.msrb.mxu2 %v5281_v56  ;;  %v5448_v56 = vld [vmem:[#allocation8 + $0xa90] sm:$0xf]  ;;  %v6620_v28 = vld [vmem:[#allocation10] sm:$0xff] }
 0x118   :  { %3361 = vmatpush.bf16.msrb.mxu3 %v5729_v60  ;;  %3321 = vmatpush.bf16.msrb.mxu0 %v4273_v0  ;;  %v5394_v60 = vld [vmem:[#allocation8 + $0xa58] sm:$0xf0]  ;;  %v5449_v5 = vor.u32 %v6256_v58, %v5448_v56  ;;  %v6039_v58 = vld [vmem:[#allocation8 + $0x404] sm:$0xf] }
 0x119   :  { %3335 = vmatpush.bf16.msrb.mxu1 %v4721_v3  ;;  %v5842_v0 = vld [vmem:[#allocation8 + $0xdd8] sm:$0xf0]  ;;  %v5983_v3 = vld [vmem:[#allocation8 + $0x244] sm:$0xf] }
 0x11b   :  { %3348 = vmatpush.bf16.msrb.mxu2 %v5225_v6  ;;  %v5397_v6 = vor.u32 %v6235_v59, %v5394_v60  ;;  %v4610_v59 = vld [vmem:[#allocation8 + $0x438] sm:$0xf0]  ;;  %v5621_v60 = vor.u32 %v6291_v51, %v5618_v52  ;;  %v5792_v51 = vld [vmem:[#allocation8 + $0xd38] sm:$0xf]  ;;  %v6341_v52 = vld [vmem:[#allocation8 + $0xd6c] sm:$0xf0] }
 0x11c   :  { %3362 = vmatpush.bf16.msrb.mxu3 %v5673_v9  ;;  %3322 = vmatpush.bf16.msrb.mxu0 %v4217_v12  ;;  %v5845_v9 = vor.u32 %v6347_v63, %v5842_v0  ;;  %v4389_v12 = vor.u32 %v5983_v3, %v4386_v4  ;;  %v5114_v63 = vld [vmem:[#allocation8 + $0x828] sm:$0xf0]  ;;  %v4165_v0 = vor.u32 %v5927_v54, %v4162_v55  ;;  %v5913_v3 = vld [vmem:[#allocation8 + $0x14] sm:$0xf]  ;;  %v4336_v54 = vld [vmem:[#allocation8 + $0x1d8] sm:$0xf] }
 0x11d   :  { %3336 = vmatpush.bf16.msrb.mxu1 %v4665_v15  ;;  %v4837_v15 = vor.u32 %v6095_v7, %v4834_v8  ;;  %v4613_v4 = vor.u32 %v6039_v58, %v4610_v59  ;;  %v4554_v7 = vld [vmem:[#allocation8 + $0x3c8] sm:$0xf0]  ;;  %v5977_v55 = vld [vmem:[#allocation8 + $0x20c] sm:$0xf0]  ;;  %v4784_v58 = vld [vmem:[#allocation8 + $0x558] sm:$0xf] }
 0x11e   :  { %v6089_v59 = vld [vmem:[#allocation8 + $0x58c] sm:$0xf0] }
 0x11f   :  { %3349 = vmatpush.bf16.msrb.mxu2 %v5169_v18  ;;  %v5341_v18 = vor.u32 %v6221_v10, %v5338_v11  ;;  %v6019_v10 = vld [vmem:[#allocation8 + $0x35c] sm:$0xf0]  ;;  %v4952_v11 = vld [vmem:[#allocation8 + $0x6a8] sm:$0xf] }
 0x120   :  { %3363 = vmatpush.bf16.msrb.mxu3 %v5617_v22  ;;  %3323 = vmatpush.bf16.msrb.mxu0 %v4161_v25  ;;  %v5789_v22 = vor.u32 %v6333_v13, %v5786_v14  ;;  %v4333_v25 = vor.u32 %v5969_v16, %v4330_v17  ;;  %v6131_v13 = vld [vmem:[#allocation8 + $0x6dc] sm:$0xf0]  ;;  %v6151_v14 = vld [vmem:[#allocation8 + $0x784] sm:$0xf] }
 0x121   :  { %3337 = vmatpush.bf16.msrb.mxu1 %v4609_v30  ;;  %v5955_v30 = vld [vmem:[#allocation8 + $0x164] sm:$0xf]  ;;  %v4953_v23 = vor.u32 %v6131_v13, %v4952_v11  ;;  %v5232_v11 = vld [vmem:[#allocation8 + $0x8d8] sm:$0xf] }
 0x122   :  { %v6263_v17 = vld [vmem:[#allocation8 + $0xb04] sm:$0xf] }
 0x123   :  { %3350 = vmatpush.bf16.msrb.mxu2 %v5113_v34  ;;  %v4722_v34 = vld [vmem:[#allocation8 + $0x518] sm:$0xf0] }
 0x124   :  { %3364 = vmatpush.bf16.msrb.mxu3 %v5561_v38  ;;  %3324 = vmatpush.bf16.msrb.mxu0 %v4105_v42  ;;  %v4277_v38 = vor.u32 %v5955_v30, %v4274_v31  ;;  %v4725_v41 = vor.u32 %v6067_v33, %v4722_v34  ;;  %v5941_v42 = vld [vmem:[#allocation8 + $0xf4] sm:$0xf]  ;;  %v5002_v31 = vld [vmem:[#allocation8 + $0x748] sm:$0xf0]  ;;  %v5400_v34 = vld [vmem:[#allocation8 + $0xa28] sm:$0xf] }
 0x125   :  { %3338 = vmatpush.bf16.msrb.mxu1 %v4553_v45  ;;  %v6053_v45 = vld [vmem:[#allocation8 + $0x474] sm:$0xf]  ;;  %v4221_v50 = vor.u32 %v5941_v42, %v4218_v43  ;;  %v5450_v33 = vld [vmem:[#allocation8 + $0xac8] sm:$0xf0]  ;;  %v5991_v42 = vld [vmem:[#allocation8 + $0x27c] sm:$0xf0] }
 0x126   :  { %v6137_v30 = vld [vmem:[#allocation8 + $0x714] sm:$0xf] }
 0x127   :  { %3351 = vmatpush.bf16.msrb.mxu2 %v5057_v49  ;;  %3325 = vmatmul.bf16.vlgmr.msrb.gmra.mxu0 %v6584_v57  ;;  %v5170_v49 = vld [vmem:[#allocation8 + $0x898] sm:$0xf0]  ;;  %v5005_v40 = vor.u32 %v6137_v30, %v5002_v31  ;;  %v5624_v31 = vld [vmem:[#allocation8 + $0xbe8] sm:$0xf] }
 0x128   :  { %3373 = vmatpush.bf16.msra.mxu0 %v4501_v46  ;;  %3365 = vmatpush.bf16.msrb.mxu3 %v5505_v53  ;;  %v4666_v46 = vld [vmem:[#allocation8 + $0x4a8] sm:$0xf0] }
 0x129   :  { %3387 = vmatpush.bf16.msra.mxu1 %v4949_v48  ;;  %v6179_v48 = vld [vmem:[#allocation8 + $0x864] sm:$0xf]  ;;  %v4669_v53 = vor.u32 %v6053_v45, %v4666_v46  ;;  %v4840_v45 = vld [vmem:[#allocation8 + $0x5c8] sm:$0xf]  ;;  %v6103_v46 = vld [vmem:[#allocation8 + $0x5fc] sm:$0xf0] }
 0x12a   :  { %3339 = vmatmul.bf16.vlgmr.msrb.gmra.mxu1 %v6586_v62  ;;  %v5173_v56 = vor.u32 %v6179_v48, %v5170_v49  ;;  %v5344_v48 = vld [vmem:[#allocation8 + $0x9b8] sm:$0xf]  ;;  %v6229_v49 = vld [vmem:[#allocation8 + $0x9ec] sm:$0xf0] }
 0x12b   :  { %3352 = vmatpush.bf16.msrb.mxu2 %v5001_v2  ;;  %v5562_v2 = vld [vmem:[#allocation8 + $0xba8] sm:$0xf0] }
 0x12c   :  { %3374 = vmatpush.bf16.msra.mxu0 %v4445_v61  ;;  %3366 = vmatpush.bf16.msrb.mxu3 %v5449_v5  ;;  %v6165_v61 = vld [vmem:[#allocation8 + $0x7f4] sm:$0xf]  ;;  %v4106_v5 = vld [vmem:[#allocation8 + $0x48] sm:$0xf0] }
 0x12d   :  { %3388 = vmatpush.bf16.msra.mxu1 %v4893_v1  ;;  %v6277_v1 = vld [vmem:[#allocation8 + $0xb74] sm:$0xf]  ;;  %v5117_v8 = vor.u32 %v6165_v61, %v5114_v63  ;;  %v4109_v16 = vor.u32 %v5913_v3, %v4106_v5  ;;  %v5793_v61 = vor.u32 %v6341_v52, %v5792_v51  ;;  %v5288_v63 = vld [vmem:[#allocation8 + $0x948] sm:$0xf]  ;;  %v6327_v3 = vld [vmem:[#allocation8 + $0xcfc] sm:$0xf0] }
 0x12e   :  { %3353 = vmatmul.bf16.vlgmr.msrb.gmra.mxu2 %v6590_v21  ;;  %v4280_v5 = vld [vmem:[#allocation8 + $0x168] sm:$0xf]  ;;  %v4560_v51 = vld [vmem:[#allocation8 + $0x398] sm:$0xf]  ;;  %v6033_v52 = vld [vmem:[#allocation8 + $0x3cc] sm:$0xf0] }
 0x12f   :  { %3401 = vmatpush.bf16.msra.mxu2 %v5397_v6  ;;  %3367 = vmatmul.bf16.vlgmr.msrb.gmra.mxu3 %v6592_v27  ;;  %v6025_v6 = vld [vmem:[#allocation8 + $0x394] sm:$0xf] }
 0x130   :  { %3415 = vmatpush.bf16.msra.mxu3 %v5845_v9  ;;  %3375 = vmatpush.bf16.msra.mxu0 %v4389_v12  ;;  %v4504_v9 = vld [vmem:[#allocation8 + $0x328] sm:$0xf]  ;;  %v5565_v12 = vor.u32 %v6277_v1, %v5562_v2  ;;  %v4557_v19 = vor.u32 %v6025_v6, %v4554_v7  ;;  %v4337_v1 = vor.u32 %v5977_v55, %v4336_v54  ;;  %v5963_v6 = vld [vmem:[#allocation8 + $0x19c] sm:$0xf0]  ;;  %v6012_v55 = vld [vmem:[#allocation8 + $0x32c] sm:$0xf] }
 0x131   :  { %3389 = vmatpush.bf16.msra.mxu1 %v4837_v15  ;;  %v5058_v15 = vld [vmem:[#allocation8 + $0x7b8] sm:$0xf0]  ;;  %v4505_v20 = vor.u32 %v6019_v10, %v4504_v9  ;;  %v5736_v2 = vld [vmem:[#allocation8 + $0xcc8] sm:$0xf]  ;;  %v6075_v9 = vld [vmem:[#allocation8 + $0x51c] sm:$0xf0] }
 0x132   :  { %v5061_v24 = vor.u32 %v6151_v14, %v5058_v15  ;;  %v5737_v10 = vor.u32 %v6327_v3, %v5736_v2  ;;  %v4281_v14 = vor.u32 %v5963_v6, %v4280_v5  ;;  %v5680_v15 = vld [vmem:[#allocation8 + $0xc58] sm:$0xf]  ;;  %v5512_v2 = vld [vmem:[#allocation8 + $0xb08] sm:$0xf]  ;;  %v6271_v3 = vld [vmem:[#allocation8 + $0xb3c] sm:$0xf0]  ;;  %v4561_v5 = vor.u32 %v6033_v52, %v4560_v51 }
 0x133   :  { %3402 = vmatpush.bf16.msra.mxu2 %v5341_v18  ;;  %v5506_v18 = vld [vmem:[#allocation8 + $0xb38] sm:$0xf0] }
 0x134   :  { %3416 = vmatpush.bf16.msra.mxu3 %v5789_v22  ;;  %3376 = vmatpush.bf16.msra.mxu0 %v4333_v25  ;;  %v4448_v22 = vld [vmem:[#allocation8 + $0x2b8] sm:$0xf]  ;;  %v6005_v25 = vld [vmem:[#allocation8 + $0x2ec] sm:$0xf0]  ;;  %v5970_v52 = vld [vmem:[#allocation8 + $0x1dc] sm:$0xf] }
 0x135   :  { %3390 = vmatpush.bf16.msra.mxu1 %v4781_v29  ;;  %v5509_v29 = vor.u32 %v6263_v17, %v5506_v18  ;;  %v4449_v36 = vor.u32 %v6005_v25, %v4448_v22  ;;  %v4224_v18 = vld [vmem:[#allocation8 + $0xf8] sm:$0xf]  ;;  %v5176_v25 = vld [vmem:[#allocation8 + $0x868] sm:$0xf] }
 0x136   :  { %v4672_v22 = vld [vmem:[#allocation8 + $0x478] sm:$0xf] }
 0x137   :  { %3403 = vmatpush.bf16.msra.mxu2 %v5285_v32  ;;  %v6249_v32 = vld [vmem:[#allocation8 + $0xa94] sm:$0xf] }
 0x138   :  { %3417 = vmatpush.bf16.msra.mxu3 %v5733_v35  ;;  %3377 = vmatpush.bf16.msra.mxu0 %v4277_v38  ;;  %v6243_v35 = vld [vmem:[#allocation8 + $0xa5c] sm:$0xf0]  ;;  %v5453_v43 = vor.u32 %v6249_v32, %v5450_v33 }
 0x139   :  { %3391 = vmatpush.bf16.msra.mxu1 %v4725_v41  ;;  %v6355_v38 = vld [vmem:[#allocation8 + $0xddc] sm:$0xf0]  ;;  %v4392_v41 = vld [vmem:[#allocation8 + $0x248] sm:$0xf] }
 0x13a   :  { %v6299_v32 = vld [vmem:[#allocation8 + $0xc1c] sm:$0xf0] }
 0x13b   :  { %3404 = vmatpush.bf16.msra.mxu2 %v5229_v44  ;;  %v5401_v44 = vor.u32 %v6243_v35, %v5400_v34  ;;  %v4168_v34 = vld [vmem:[#allocation8 + $0x88] sm:$0xf]  ;;  %v5935_v35 = vld [vmem:[#allocation8 + $0xbc] sm:$0xf0] }
 0x13c   :  { %3418 = vmatpush.bf16.msra.mxu3 %v5677_v47  ;;  %3378 = vmatpush.bf16.msra.mxu0 %v4221_v50  ;;  %v5849_v47 = vor.u32 %v6355_v38, %v5848_v37  ;;  %v4393_v50 = vor.u32 %v5991_v42, %v4392_v41  ;;  %v4616_v37 = vld [vmem:[#allocation8 + $0x408] sm:$0xf]  ;;  %v6047_v38 = vld [vmem:[#allocation8 + $0x43c] sm:$0xf0]  ;;  %v5120_v41 = vld [vmem:[#allocation8 + $0x7f8] sm:$0xf] }
 0x13d   :  { %3392 = vmatpush.bf16.msra.mxu1 %v4669_v53  ;;  %v4841_v53 = vor.u32 %v6103_v46, %v4840_v45  ;;  %v6173_v42 = vld [vmem:[#allocation8 + $0x82c] sm:$0xf0]  ;;  %v5568_v45 = vld [vmem:[#allocation8 + $0xb78] sm:$0xf] }
 0x13e   :  { %v6285_v46 = vld [vmem:[#allocation8 + $0xbac] sm:$0xf0]  ;;  %v5121_v54 = vor.u32 %v6173_v42, %v5120_v41  ;;  %v4842_v41 = vld [vmem:[#allocation8 + $0x600] sm:$0xf0] }
 0x13f   :  { %3405 = vmatpush.bf16.msra.mxu2 %v5173_v56  ;;  %v5345_v56 = vor.u32 %v6229_v49, %v5344_v48  ;;  %v4617_v49 = vor.u32 %v6047_v38, %v4616_v37 }
 0x140   :  { %3419 = vmatpush.bf16.msra.mxu3 %v5621_v60  ;;  %3379 = vmatpush.bf16.msra.mxu0 %v4165_v0  ;;  %v6215_v0 = vld [vmem:[#allocation8 + $0x97c] sm:$0xf0] }
 0x141   :  { %3393 = vmatpush.bf16.msra.mxu1 %v4613_v4  ;;  %v4785_v4 = vor.u32 %v6089_v59, %v4784_v58  ;;  %v5289_v7 = vor.u32 %v6215_v0, %v5288_v63  ;;  %v6124_v58 = vld [vmem:[#allocation8 + $0x6ac] sm:$0xf]  ;;  %v5569_v59 = vor.u32 %v6285_v46, %v5568_v45  ;;  %v5064_v63 = vld [vmem:[#allocation8 + $0x788] sm:$0xf]  ;;  %v6159_v0 = vld [vmem:[#allocation8 + $0x7bc] sm:$0xf0] }
 0x142   :  { %v6222_v45 = vld [vmem:[#allocation8 + $0x9bc] sm:$0xf]  ;;  %v5346_v46 = vld [vmem:[#allocation8 + $0x9f0] sm:$0xf0] }
 0x143   :  { %3406 = vmatpush.bf16.msra.mxu2 %v5117_v8  ;;  %v6614_v60 = vpop.f32.mrf.mxu0  ;;  %v4728_v8 = vld [vmem:[#allocation8 + $0x4e8] sm:$0xf] }
 0x144   :  { %3420 = vmatpush.bf16.msra.mxu3 %v5565_v12  ;;  %3380 = vmatpush.bf16.msra.mxu0 %v4109_v16  ;;  %v6201_v12 = vld [vmem:[#allocation8 + $0x90c] sm:$0xf0]  ;;  %v6618_v13 = vpop.f32.mrf.mxu1  ;;  %v4729_v17 = vor.u32 %v6075_v9, %v4728_v8  ;;  %v4450_v8 = vld [vmem:[#allocation8 + $0x2f0] sm:$0xf0] }
 0x145   :  { %3394 = vmatpush.bf16.msra.mxu1 %v4557_v19  ;;  %v6313_v16 = vld [vmem:[#allocation8 + $0xc8c] sm:$0xf0] }
 0x146   :  { %v5949_v19 = vld [vmem:[#allocation8 + $0x12c] sm:$0xf0] }
 0x147   :  { %3407 = vmatpush.bf16.msra.mxu2 %v5061_v24  ;;  %3381 = vmatmul.bf16.vlgmr.msra.gmra.mxu0 %v6584_v57  ;;  %v5681_v24 = vor.u32 %v6313_v16, %v5680_v15  ;;  %v4225_v30 = vor.u32 %v5949_v19, %v4224_v18  ;;  %v5008_v15 = vld [vmem:[#allocation8 + $0x718] sm:$0xf]  ;;  %v6145_v18 = vld [vmem:[#allocation8 + $0x74c] sm:$0xf0] }
 0x148   :  { %3429 = vmatpush.bf16.msrb.mxu0 %v4505_v20  ;;  %3421 = vmatpush.bf16.msra.mxu3 %v5509_v29  ;;  %v5233_v20 = vor.u32 %v6201_v12, %v5232_v11  ;;  %v5065_v11 = vor.u32 %v6159_v0, %v5064_v63  ;;  %v6110_v12 = vld [vmem:[#allocation8 + $0x63c] sm:$0xf]  ;;  %v5456_v19 = vld [vmem:[#allocation8 + $0xa98] sm:$0xf] }
 0x149   :  { %3443 = vmatpush.bf16.msrb.mxu1 %v4953_v23  ;;  %v6061_v23 = vld [vmem:[#allocation8 + $0x4ac] sm:$0xf0] }
 0x14a   :  { %3395 = vmatmul.bf16.vlgmr.msra.gmra.mxu1 %v6586_v62  ;;  %v4673_v33 = vor.u32 %v6061_v23, %v4672_v22  ;;  %v6236_v23 = vld [vmem:[#allocation8 + $0xa2c] sm:$0xf] }
 0x14b   :  { %3408 = vmatpush.bf16.msra.mxu2 %v5005_v40  ;;  %v6622_v29 = vpop.f32.mrf.mxu0  ;;  %v5625_v40 = vor.u32 %v6299_v32, %v5624_v31  ;;  %v5850_v31 = vld [vmem:[#allocation8 + $0xde0] sm:$0xf0]  ;;  %v5009_v32 = vor.u32 %v6145_v18, %v5008_v15  ;;  %v6068_v15 = vld [vmem:[#allocation8 + $0x4ec] sm:$0xf]  ;;  %v6194_v18 = vld [vmem:[#allocation8 + $0x8dc] sm:$0xf] }
 0x14c   :  { %3430 = vmatpush.bf16.msrb.mxu0 %v4449_v36  ;;  %3422 = vmatpush.bf16.msra.mxu3 %v5453_v43  ;;  %v5177_v36 = vor.u32 %v6187_v26, %v5176_v25 }
 0x14d   :  { %3444 = vmatpush.bf16.msrb.mxu1 %v4897_v39  ;;  %v825_v39 = vperm.slane %v6620_v28, 0 }
 0x14e   :  { %3409 = vmatmul.bf16.vlgmr.msra.gmra.mxu2 %v6590_v21 }
 0x14f   :  { %3457 = vmatpush.bf16.msrb.mxu2 %v5401_v44  ;;  %3423 = vmatmul.bf16.vlgmr.msra.gmra.mxu3 %v6592_v27  ;;  %v4169_v44 = vor.u32 %v5935_v35, %v4168_v34  ;;  %v3103_v16 = vadd.f32 %v6614_v60, %v825_v39  ;;  %v5984_v34 = vld [vmem:[#allocation8 + $0x24c] sm:$0xf]  ;;  %v4394_v35 = vld [vmem:[#allocation8 + $0x280] sm:$0xf0] }
 0x150   :  { %3471 = vmatpush.bf16.msrb.mxu3 %v5849_v47  ;;  %3431 = vmatpush.bf16.msrb.mxu0 %v4393_v50  ;;  %v4112_v47 = vld [vmem:[#allocation8 + $0x18] sm:$0xf]  ;;  %v5921_v50 = vld [vmem:[#allocation8 + $0x4c] sm:$0xf0] }
 0x151   :  { %3445 = vmatpush.bf16.msrb.mxu1 %v4841_v53  ;;  %v6625_v43 = vpop.f32.mrf.mxu2  ;;  %v6629_v53 = vpop.f32.mrf.mxu1 }
 0x152   :  { %v6627_v48 = vpop.f32.mrf.mxu3 }
 0x153   :  { %3458 = vmatpush.bf16.msrb.mxu2 %v5345_v56  ;;  %v4506_v56 = vld [vmem:[#allocation8 + $0x360] sm:$0xf0]  ;;  %v3158_v9 = vpop.f32.mrf.mxu0 }
 0x154   :  { %3472 = vmatpush.bf16.msrb.mxu3 %v5793_v61  ;;  %3432 = vmatpush.bf16.msrb.mxu0 %v4337_v1  ;;  %v4954_v61 = vld [vmem:[#allocation8 + $0x6e0] sm:$0xf0]  ;;  %v4113_v1 = vor.u32 %v5921_v50, %v4112_v47  ;;  %v4509_v6 = vor.u32 %v6012_v55, %v4506_v56  ;;  %v5794_v50 = vld [vmem:[#allocation8 + $0xd70] sm:$0xf0]  ;;  %v3105_v55 = vadd.f32 %v6622_v29, %v825_v39  ;;  %v6320_v39 = vld [vmem:[#allocation8 + $0xccc] sm:$0xf] }
 0x155   :  { %3446 = vmatpush.bf16.msrb.mxu1 %v4785_v4  ;;  %v826_v4 = vperm.slane %v6620_v28, 1 }
 0x157   :  { %3459 = vmatpush.bf16.msrb.mxu2 %v5289_v7  ;;  %v5998_v7 = vld [vmem:[#allocation8 + $0x2bc] sm:$0xf]  ;;  %v3159_v37 = vadd.f32 %v3158_v9, %v826_v4  ;;  %v5956_v9 = vld [vmem:[#allocation8 + $0x16c] sm:$0xf] }
 0x158   :  { %3473 = vmatpush.bf16.msrb.mxu3 %v5737_v10  ;;  %3433 = vmatpush.bf16.msrb.mxu0 %v4281_v14  ;;  %v4957_v10 = vor.u32 %v6124_v58, %v4954_v61  ;;  %v4898_v14 = vld [vmem:[#allocation8 + $0x670] sm:$0xf0]  ;;  %v4453_v26 = vor.u32 %v5998_v7, %v4450_v8  ;;  %v5349_v58 = vor.u32 %v6222_v45, %v5346_v46  ;;  %v5738_v7 = vld [vmem:[#allocation8 + $0xd00] sm:$0xf0]  ;;  %v6292_v46 = vld [vmem:[#allocation8 + $0xbec] sm:$0xf] }
 0x159   :  { %3447 = vmatpush.bf16.msrb.mxu1 %v4729_v17  ;;  %v5513_v17 = vor.u32 %v6271_v3, %v5512_v2  ;;  %v6635_v22 = vpop.f32.mrf.mxu2  ;;  %v4901_v60 = vor.u32 %v6110_v12, %v4898_v14  ;;  %v3172_v42 = vpop.f32.mrf.mxu1  ;;  %v4786_v61 = vld [vmem:[#allocation8 + $0x590] sm:$0xf0]  ;;  %v5290_v2 = vld [vmem:[#allocation8 + $0x980] sm:$0xf0] }
 0x15a   :  { %v6637_v25 = vpop.f32.mrf.mxu3  ;;  %v3173_v56 = vadd.f32 %v3172_v42, %v3159_v37  ;;  %v4674_v37 = vld [vmem:[#allocation8 + $0x4b0] sm:$0xf0] }
 0x15b   :  { %3460 = vmatpush.bf16.msrb.mxu2 %v5233_v20  ;;  %v6257_v20 = vld [vmem:[#allocation8 + $0xacc] sm:$0xf0] }
 0x15c   :  { %3474 = vmatpush.bf16.msrb.mxu3 %v5681_v24  ;;  %3434 = vmatpush.bf16.msrb.mxu0 %v4225_v30  ;;  %v5402_v24 = vld [vmem:[#allocation8 + $0xa60] sm:$0xf0]  ;;  %v6348_v30 = vld [vmem:[#allocation8 + $0xdac] sm:$0xf] }
 0x15d   :  { %3448 = vmatpush.bf16.msrb.mxu1 %v4673_v33  ;;  %v5457_v33 = vor.u32 %v6257_v20, %v5456_v19  ;;  %v5405_v38 = vor.u32 %v6236_v23, %v5402_v24  ;;  %v5234_v19 = vld [vmem:[#allocation8 + $0x910] sm:$0xf0] }
 0x15f   :  { %3461 = vmatpush.bf16.msrb.mxu2 %v5177_v36  ;;  %v3117_v36 = vadd.f32 %v6618_v13, %v3103_v16  ;;  %v6334_v13 = vld [vmem:[#allocation8 + $0xd3c] sm:$0xf]  ;;  %v4730_v16 = vld [vmem:[#allocation8 + $0x520] sm:$0xf0] }
 0x160   :  { %3475 = vmatpush.bf16.msrb.mxu3 %v5625_v40  ;;  %3435 = vmatpush.bf16.msrb.mxu0 %v4169_v44  ;;  %v6096_v40 = vld [vmem:[#allocation8 + $0x5cc] sm:$0xf]  ;;  %v5853_v44 = vor.u32 %v6348_v30, %v5850_v31  ;;  %v5797_v0 = vor.u32 %v6334_v13, %v5794_v50  ;;  %v6306_v30 = vld [vmem:[#allocation8 + $0xc5c] sm:$0xf] }
 0x161   :  { %3449 = vmatpush.bf16.msrb.mxu1 %v4617_v49  ;;  %v3131_v47 = vadd.f32 %v6625_v43, %v3117_v36  ;;  %v4397_v49 = vor.u32 %v5984_v34, %v4394_v35  ;;  %v4845_v51 = vor.u32 %v6096_v40, %v4842_v41  ;;  %v3160_v43 = vpop.f32.mrf.mxu0  ;;  %v3186_v63 = vpop.f32.mrf.mxu2  ;;  %v5237_v35 = vor.u32 %v6194_v18, %v5234_v19  ;;  %v6054_v36 = vld [vmem:[#allocation8 + $0x47c] sm:$0xf]  ;;  %v5178_v41 = vld [vmem:[#allocation8 + $0x8a0] sm:$0xf0]  ;;  %v5928_v50 = vld [vmem:[#allocation8 + $0x8c] sm:$0xf] }
 0x162   :  { %v3161_v12 = vadd.f32 %v3160_v43, %v826_v4  ;;  %v3174_v31 = vpop.f32.mrf.mxu1  ;;  %v4733_v4 = vor.u32 %v6068_v15, %v4730_v16  ;;  %v4677_v13 = vor.u32 %v6054_v36, %v4674_v37  ;;  %v5514_v18 = vld [vmem:[#allocation8 + $0xb40] sm:$0xf0]  ;;  %v6244_v36 = vld [vmem:[#allocation8 + $0xa64] sm:$0xf0] }
 0x163   :  { %3462 = vmatpush.bf16.msrb.mxu2 %v5121_v54  ;;  %v4338_v54 = vld [vmem:[#allocation8 + $0x210] sm:$0xf0]  ;;  %v3145_v3 = vadd.f32 %v6627_v48, %v3131_v47  ;;  %v5626_v47 = vld [vmem:[#allocation8 + $0xc20] sm:$0xf0] }
 0x164   :  { %3476 = vmatpush.bf16.msrb.mxu3 %v5569_v59  ;;  %3436 = vmatpush.bf16.msrb.mxu0 %v4113_v1  ;;  %v6082_v59 = vld [vmem:[#allocation8 + $0x55c] sm:$0xf]  ;;  %v6208_v1 = vld [vmem:[#allocation8 + $0x94c] sm:$0xf]  ;;  %v4341_v29 = vor.u32 %v5970_v52, %v4338_v54 }
 0x165   :  { %3450 = vmatpush.bf16.msrb.mxu1 %v4561_v5  ;;  %v3187_v5 = vadd.f32 %v3186_v63, %v3173_v56  ;;  %v4789_v8 = vor.u32 %v6082_v59, %v4786_v61  ;;  %v5293_v14 = vor.u32 %v6208_v1, %v5290_v2  ;;  %v3877_v20 = vmax.f32 %v3145_v3, 0.0  ;;  %v4618_v56 = vld [vmem:[#allocation8 + $0x440] sm:$0xf0]  ;;  %v6166_v59 = vld [vmem:[#allocation8 + $0x7fc] sm:$0xf] }
 0x166   :  { %v6278_v61 = vld [vmem:[#allocation8 + $0xb7c] sm:$0xf]  ;;  %v5570_v1 = vld [vmem:[#allocation8 + $0xbb0] sm:$0xf0] }
 0x167   :  { %3463 = vmatpush.bf16.msrb.mxu2 %v5065_v11  ;;  %3437 = vmatmul.bf16.vlgmr.msrb.gmra.mxu0 %v6584_v57  ;;  %v3119_v11 = vadd.f32 %v6629_v53, %v3105_v55  ;;  %v5682_v53 = vld [vmem:[#allocation8 + $0xc90] sm:$0xf0]  ;;  %v6040_v55 = vld [vmem:[#allocation8 + $0x40c] sm:$0xf]  ;;  %v5914_v2 = vld [vmem:[#allocation8 + $0x1c] sm:$0xf] }
 0x168   :  { %3485 = vmatpush.bf16.msra.mxu0 %v4509_v6  ;;  %3477 = vmatpush.bf16.msrb.mxu3 %v5513_v17  ;;  %v3200_v6 = vpop.f32.mrf.mxu3  ;;  %v5741_v17 = vor.u32 %v6320_v39, %v5738_v7  ;;  %v5685_v40 = vor.u32 %v6306_v30, %v5682_v53  ;;  %v4621_v3 = vor.u32 %v6040_v55, %v4618_v56  ;;  %v6006_v30 = vld [vmem:[#allocation8 + $0x2f4] sm:$0xf0]  ;;  %v4904_v53 = vld [vmem:[#allocation8 + $0x640] sm:$0xf] }
 0x169   :  { %3499 = vmatpush.bf16.msra.mxu1 %v4957_v10  ;;  %v4282_v10 = vld [vmem:[#allocation8 + $0x1a0] sm:$0xf0]  ;;  %v3201_v48 = vadd.f32 %v3200_v6, %v3187_v5  ;;  %v3133_v23 = vadd.f32 %v6635_v22, %v3119_v11  ;;  %v6180_v22 = vld [vmem:[#allocation8 + $0x86c] sm:$0xf]  ;;  %v4114_v5 = vld [vmem:[#allocation8 + $0x50] sm:$0xf0]  ;;  %v5573_v11 = vor.u32 %v6278_v61, %v5570_v1  ;;  %v6656_v15 = vpop.f32.mrf.mxu0 }
 0x16a   :  { %3451 = vmatmul.bf16.vlgmr.msrb.gmra.mxu1 %v6586_v62  ;;  %v5181_v54 = vor.u32 %v6180_v22, %v5178_v41  ;;  %v6026_v6 = vld [vmem:[#allocation8 + $0x39c] sm:$0xf]  ;;  %v4117_v16 = vor.u32 %v5914_v2, %v4114_v5  ;;  %v6658_v22 = vpop.f32.mrf.mxu1  ;;  %v5800_v55 = vld [vmem:[#allocation8 + $0xd40] sm:$0xf]  ;;  %v6342_v56 = vld [vmem:[#allocation8 + $0xd74] sm:$0xf0] }
 0x16b   :  { %3464 = vmatpush.bf16.msrb.mxu2 %v5009_v32  ;;  %v3878_v24 = vmax.f32 %v3201_v48, 0.0  ;;  %v4226_v32 = vld [vmem:[#allocation8 + $0x130] sm:$0xf0]  ;;  %v3147_v42 = vadd.f32 %v6637_v25, %v3133_v23  ;;  %v6152_v48 = vld [vmem:[#allocation8 + $0x78c] sm:$0xf] }
 0x16c   :  { %3486 = vmatpush.bf16.msra.mxu0 %v4453_v26  ;;  %3478 = vmatpush.bf16.msrb.mxu3 %v5457_v33  ;;  %v4285_v26 = vor.u32 %v5956_v9, %v4282_v10  ;;  %v3175_v33 = vadd.f32 %v3174_v31, %v3161_v12  ;;  %v5122_v25 = vld [vmem:[#allocation8 + $0x830] sm:$0xf0]  ;;  %v6020_v9 = vld [vmem:[#allocation8 + $0x364] sm:$0xf0]  ;;  %v4960_v10 = vld [vmem:[#allocation8 + $0x6b0] sm:$0xf] }
 0x16d   :  { %3500 = vmatpush.bf16.msra.mxu1 %v4901_v60  ;;  %v5942_v60 = vld [vmem:[#allocation8 + $0xfc] sm:$0xf]  ;;  %v3905_v34 = vpack.c.bf16 %v3878_v24, %v3877_v20  ;;  %v3891_v43 = vmax.f32 %v3147_v42, 0.0  ;;  %v5125_v7 = vor.u32 %v6166_v59, %v5122_v25  ;;  %v6132_v12 = vld [vmem:[#allocation8 + $0x6e4] sm:$0xf0] }
 0x16e   :  { %3465 = vmatmul.bf16.vlgmr.msrb.gmra.mxu2 %v6590_v21  ;;  %v4229_v45 = vor.u32 %v5942_v60, %v4226_v32  ;;  %v4456_v23 = vld [vmem:[#allocation8 + $0x2c0] sm:$0xf]  ;;  %v4961_v24 = vor.u32 %v6132_v12, %v4960_v10  ;;  %v6118_v31 = vld [vmem:[#allocation8 + $0x674] sm:$0xf0]  ;;  %v6138_v60 = vld [vmem:[#allocation8 + $0x71c] sm:$0xf] }
 0x16f   :  { %3513 = vmatpush.bf16.msra.mxu2 %v5405_v38  ;;  %3479 = vmatmul.bf16.vlgmr.msrb.gmra.mxu3 %v6592_v27  ;;  %v3188_v38 = vpop.f32.mrf.mxu2  ;;  %3919 = vst [vmem:[#allocation11] sm:$0xff] %v3905_v34  ;;  %v5010_v32 = vld [vmem:[#allocation8 + $0x750] sm:$0xf0]  ;;  %v4457_v37 = vor.u32 %v6006_v30, %v4456_v23  ;;  %v4905_v41 = vor.u32 %v6118_v31, %v4904_v53  ;;  %v4344_v61 = vld [vmem:[#allocation8 + $0x1e0] sm:$0xf] }
 0x170   :  { %3527 = vmatpush.bf16.msra.mxu3 %v5853_v44  ;;  %3487 = vmatpush.bf16.msra.mxu0 %v4397_v49  ;;  %v3189_v44 = vadd.f32 %v3188_v38, %v3175_v33  ;;  %v3202_v49 = vpop.f32.mrf.mxu3  ;;  %v6250_v33 = vld [vmem:[#allocation8 + $0xa9c] sm:$0xf]  ;;  %v5458_v34 = vld [vmem:[#allocation8 + $0xad0] sm:$0xf0]  ;;  %v5856_v38 = vld [vmem:[#allocation8 + $0xdb0] sm:$0xf]  ;;  %v5013_v42 = vor.u32 %v6138_v60, %v5010_v32 }
 0x171   :  { %3501 = vmatpush.bf16.msra.mxu1 %v4845_v51  ;;  %v4170_v51 = vld [vmem:[#allocation8 + $0xc0] sm:$0xf0]  ;;  %v4792_v1 = vld [vmem:[#allocation8 + $0x560] sm:$0xf]  ;;  %v6090_v2 = vld [vmem:[#allocation8 + $0x594] sm:$0xf0] }
 0x172   :  { %v3203_v52 = vadd.f32 %v3202_v49, %v3189_v44  ;;  %v4400_v44 = vld [vmem:[#allocation8 + $0x250] sm:$0xf]  ;;  %v5964_v10 = vld [vmem:[#allocation8 + $0x1a4] sm:$0xf0]  ;;  %v5688_v23 = vld [vmem:[#allocation8 + $0xc60] sm:$0xf] }
 0x173   :  { %3514 = vmatpush.bf16.msra.mxu2 %v5349_v58  ;;  %v5629_v58 = vor.u32 %v6292_v46, %v5626_v47  ;;  %v5461_v46 = vor.u32 %v6250_v33, %v5458_v34  ;;  %v4848_v49 = vld [vmem:[#allocation8 + $0x5d0] sm:$0xf]  ;;  %v4232_v53 = vld [vmem:[#allocation8 + $0x100] sm:$0xf]  ;;  %v5950_v31 = vld [vmem:[#allocation8 + $0x134] sm:$0xf0] }
 0x174   :  { %3528 = vmatpush.bf16.msra.mxu3 %v5797_v0  ;;  %3488 = vmatpush.bf16.msra.mxu0 %v4341_v29  ;;  %v3892_v63 = vmax.f32 %v3203_v52, 0.0  ;;  %v4173_v0 = vor.u32 %v5928_v50, %v4170_v51  ;;  %v4562_v29 = vld [vmem:[#allocation8 + $0x3d0] sm:$0xf0]  ;;  %v5352_v51 = vld [vmem:[#allocation8 + $0x9c0] sm:$0xf]  ;;  %v828_v60 = vperm.slane %v6620_v28, 3 }
 0x175   :  { %3502 = vmatpush.bf16.msra.mxu1 %v4789_v8  ;;  %v4512_v8 = vld [vmem:[#allocation8 + $0x330] sm:$0xf]  ;;  %v4565_v19 = vor.u32 %v6026_v6, %v4562_v29  ;;  %v6230_v52 = vld [vmem:[#allocation8 + $0x9f4] sm:$0xf0]  ;;  %v6216_v6 = vld [vmem:[#allocation8 + $0x984] sm:$0xf0] }
 0x176   :  { %v3912_v39 = vpack.c.bf16 %v3892_v63, %v3891_v43  ;;  %v4513_v20 = vor.u32 %v6020_v9, %v4512_v8  ;;  %v5978_v43 = vld [vmem:[#allocation8 + $0x214] sm:$0xf0]  ;;  %v5296_v5 = vld [vmem:[#allocation8 + $0x950] sm:$0xf]  ;;  %v4793_v8 = vor.u32 %v6090_v2, %v4792_v1  ;;  %v4680_v33 = vld [vmem:[#allocation8 + $0x480] sm:$0xf] }
 0x177   :  { %3515 = vmatpush.bf16.msra.mxu2 %v5293_v14  ;;  %v5066_v14 = vld [vmem:[#allocation8 + $0x7c0] sm:$0xf0]  ;;  %v6664_v59 = vpop.f32.mrf.mxu2  ;;  %v4345_v29 = vor.u32 %v5978_v43, %v4344_v61  ;;  %v4288_v9 = vld [vmem:[#allocation8 + $0x170] sm:$0xf]  ;;  %v5297_v12 = vor.u32 %v6216_v6, %v5296_v5  ;;  %v6062_v34 = vld [vmem:[#allocation8 + $0x4b4] sm:$0xf0] }
 0x178   :  { %3529 = vmatpush.bf16.msra.mxu3 %v5741_v17  ;;  %3489 = vmatpush.bf16.msra.mxu0 %v4285_v26  ;;  %3926 = vst [vmem:[#allocation11 + $0x38] sm:$0xff] %v3912_v39  ;;  %v6264_v17 = vld [vmem:[#allocation8 + $0xb0c] sm:$0xf]  ;;  %v5069_v26 = vor.u32 %v6152_v48, %v5066_v14  ;;  %v6666_v63 = vpop.f32.mrf.mxu3  ;;  %v5744_v39 = vld [vmem:[#allocation8 + $0xcd0] sm:$0xf] }
 0x179   :  { %3503 = vmatpush.bf16.msra.mxu1 %v4733_v4  ;;  %v5517_v4 = vor.u32 %v6264_v17, %v5514_v18  ;;  %v4736_v48 = vld [vmem:[#allocation8 + $0x4f0] sm:$0xf]  ;;  %v6076_v14 = vld [vmem:[#allocation8 + $0x524] sm:$0xf0]  ;;  %v5240_v18 = vld [vmem:[#allocation8 + $0x8e0] sm:$0xf] }
 0x17a   :  { %v4737_v30 = vor.u32 %v6076_v14, %v4736_v48  ;;  %v5576_v43 = vld [vmem:[#allocation8 + $0xb80] sm:$0xf]  ;;  %v6034_v6 = vld [vmem:[#allocation8 + $0x3d4] sm:$0xf0]  ;;  %v4962_v48 = vld [vmem:[#allocation8 + $0x6e8] sm:$0xf0] }
 0x17b   :  { %3516 = vmatpush.bf16.msra.mxu2 %v5237_v35  ;;  %v5408_v35 = vld [vmem:[#allocation8 + $0xa30] sm:$0xf]  ;;  %v4120_v1 = vld [vmem:[#allocation8 + $0x20] sm:$0xf] }
 0x17c   :  { %3530 = vmatpush.bf16.msra.mxu3 %v5685_v40  ;;  %3490 = vmatpush.bf16.msra.mxu0 %v4229_v45  ;;  %v6356_v40 = vld [vmem:[#allocation8 + $0xde4] sm:$0xf0]  ;;  %v5409_v47 = vor.u32 %v6244_v36, %v5408_v35  ;;  %v4568_v5 = vld [vmem:[#allocation8 + $0x3a0] sm:$0xf]  ;;  %v5072_v14 = vld [vmem:[#allocation8 + $0x790] sm:$0xf] }
 0x17d   :  { %3504 = vmatpush.bf16.msra.mxu1 %v4677_v13  ;;  %v5992_v45 = vld [vmem:[#allocation8 + $0x284] sm:$0xf0]  ;;  %v5857_v50 = vor.u32 %v6356_v40, %v5856_v38 }
 0x17e   :  { %v6104_v13 = vld [vmem:[#allocation8 + $0x604] sm:$0xf0] }
 0x17f   :  { %3517 = vmatpush.bf16.msra.mxu2 %v5181_v54  ;;  %v4401_v54 = vor.u32 %v5992_v45, %v4400_v44  ;;  %v4849_v25 = vor.u32 %v6104_v13, %v4848_v49  ;;  %v6675_v35 = vpop.f32.mrf.mxu2  ;;  %v6188_v38 = vld [vmem:[#allocation8 + $0x8a4] sm:$0xf0]  ;;  %v4176_v45 = vld [vmem:[#allocation8 + $0x90] sm:$0xf] }
 0x180   :  { %3531 = vmatpush.bf16.msra.mxu3 %v5629_v58  ;;  %3491 = vmatpush.bf16.msra.mxu0 %v4173_v0  ;;  %v6662_v58 = vpop.f32.mrf.mxu0  ;;  %v5353_v0 = vor.u32 %v6230_v52, %v5352_v51  ;;  %v6677_v40 = vpop.f32.mrf.mxu3  ;;  %v6300_v44 = vld [vmem:[#allocation8 + $0xc24] sm:$0xf0] }
 0x181   :  { %3505 = vmatpush.bf16.msra.mxu1 %v4621_v3  ;;  %v5801_v3 = vor.u32 %v6342_v56, %v5800_v55  ;;  %v6048_v51 = vld [vmem:[#allocation8 + $0x444] sm:$0xf0]  ;;  %v5128_v55 = vld [vmem:[#allocation8 + $0x800] sm:$0xf]  ;;  %v6174_v56 = vld [vmem:[#allocation8 + $0x834] sm:$0xf0] }
 0x183   :  { %3518 = vmatpush.bf16.msra.mxu2 %v5125_v7  ;;  %v6328_v7 = vld [vmem:[#allocation8 + $0xd04] sm:$0xf0] }
 0x184   :  { %3532 = vmatpush.bf16.msra.mxu3 %v5573_v11  ;;  %3492 = vmatpush.bf16.msra.mxu0 %v4117_v16  ;;  %v827_v11 = vperm.slane %v6620_v28, 2  ;;  %v6671_v16 = vpop.f32.mrf.mxu1  ;;  %v5745_v17 = vor.u32 %v6328_v7, %v5744_v39  ;;  %v5129_v39 = vor.u32 %v6174_v56, %v5128_v55  ;;  %v6013_v7 = vld [vmem:[#allocation8 + $0x334] sm:$0xf]  ;;  %v5410_v28 = vld [vmem:[#allocation8 + $0xa68] sm:$0xf0] }
 0x185   :  { %3506 = vmatpush.bf16.msra.mxu1 %v4565_v19  ;;  %v6202_v19 = vld [vmem:[#allocation8 + $0x914] sm:$0xf0]  ;;  %v5985_v55 = vld [vmem:[#allocation8 + $0x254] sm:$0xf]  ;;  %v4402_v56 = vld [vmem:[#allocation8 + $0x288] sm:$0xf0] }
 0x186   :  { %v5241_v32 = vor.u32 %v6202_v19, %v5240_v18 }
 0x187   :  { %3519 = vmatpush.bf16.msra.mxu2 %v5069_v26  ;;  %3493 = vmatmul.bf16.vlgmr.msra.gmra.mxu0 %v6584_v57 }
 0x188   :  { %3541 = vmatpush.bf16.msrb.mxu0 %v4513_v20  ;;  %3533 = vmatpush.bf16.msra.mxu3 %v5517_v4  ;;  %v4289_v20 = vor.u32 %v5964_v10, %v4288_v9  ;;  %v3270_v26 = vpop.f32.mrf.mxu0  ;;  %v3215_v4 = vadd.f32 %v6656_v15, %v827_v11  ;;  %v4681_v15 = vor.u32 %v6062_v34, %v4680_v33  ;;  %v6125_v9 = vld [vmem:[#allocation8 + $0x6b4] sm:$0xf]  ;;  %v6111_v34 = vld [vmem:[#allocation8 + $0x644] sm:$0xf] }
 0x189   :  { %3555 = vmatpush.bf16.msrb.mxu1 %v4961_v24  ;;  %v6314_v24 = vld [vmem:[#allocation8 + $0xc94] sm:$0xf0]  ;;  %v3271_v49 = vadd.f32 %v3270_v26, %v828_v60  ;;  %v4569_v26 = vor.u32 %v6034_v6, %v4568_v5  ;;  %v4965_v33 = vor.u32 %v6125_v9, %v4962_v48  ;;  %v5354_v5 = vld [vmem:[#allocation8 + $0x9f8] sm:$0xf0] }
 0x18a   :  { %3507 = vmatmul.bf16.vlgmr.msra.gmra.mxu1 %v6586_v62  ;;  %v5689_v36 = vor.u32 %v6314_v24, %v5688_v23  ;;  %v6272_v23 = vld [vmem:[#allocation8 + $0xb44] sm:$0xf0]  ;;  %v4794_v48 = vld [vmem:[#allocation8 + $0x598] sm:$0xf0] }
 0x18b   :  { %3520 = vmatpush.bf16.msra.mxu2 %v5013_v42  ;;  %v5632_v42 = vld [vmem:[#allocation8 + $0xbf0] sm:$0xf] }
 0x18c   :  { %3542 = vmatpush.bf16.msrb.mxu0 %v4457_v37  ;;  %3534 = vmatpush.bf16.msra.mxu3 %v5461_v46  ;;  %v5184_v37 = vld [vmem:[#allocation8 + $0x870] sm:$0xf]  ;;  %v5936_v46 = vld [vmem:[#allocation8 + $0xc4] sm:$0xf0]  ;;  %v3284_v52 = vpop.f32.mrf.mxu1 }
 0x18d   :  { %3556 = vmatpush.bf16.msrb.mxu1 %v4905_v41  ;;  %v4233_v41 = vor.u32 %v5950_v31, %v4232_v53  ;;  %v5185_v13 = vor.u32 %v6188_v38, %v5184_v37  ;;  %v4177_v61 = vor.u32 %v5936_v46, %v4176_v45  ;;  %v5999_v53 = vld [vmem:[#allocation8 + $0x2c4] sm:$0xf]  ;;  %v4458_v31 = vld [vmem:[#allocation8 + $0x2f8] sm:$0xf0]  ;;  %v5016_v37 = vld [vmem:[#allocation8 + $0x720] sm:$0xf] }
 0x18e   :  { %3521 = vmatmul.bf16.vlgmr.msra.gmra.mxu2 %v6590_v21  ;;  %v6237_v46 = vld [vmem:[#allocation8 + $0xa34] sm:$0xf] }
 0x18f   :  { %3569 = vmatpush.bf16.msrb.mxu2 %v5409_v47  ;;  %3535 = vmatmul.bf16.vlgmr.msra.gmra.mxu3 %v6592_v27  ;;  %v3229_v47 = vadd.f32 %v6658_v22, %v3215_v4  ;;  %v3217_v22 = vadd.f32 %v6662_v58, %v827_v11 }
 0x190   :  { %3583 = vmatpush.bf16.msrb.mxu3 %v5857_v50  ;;  %3543 = vmatpush.bf16.msrb.mxu0 %v4401_v54  ;;  %v4624_v50 = vld [vmem:[#allocation8 + $0x410] sm:$0xf]  ;;  %v5633_v54 = vor.u32 %v6300_v44, %v5632_v42  ;;  %v3272_v10 = vpop.f32.mrf.mxu0  ;;  %v5464_v42 = vld [vmem:[#allocation8 + $0xaa0] sm:$0xf] }
 0x191   :  { %3557 = vmatpush.bf16.msrb.mxu1 %v4849_v25  ;;  %v3243_v25 = vadd.f32 %v6664_v59, %v3229_v47  ;;  %v4625_v2 = vor.u32 %v6048_v51, %v4624_v50  ;;  %v3298_v59 = vpop.f32.mrf.mxu2  ;;  %v3231_v24 = vadd.f32 %v6671_v16, %v3217_v22  ;;  %v3273_v4 = vadd.f32 %v3272_v10, %v828_v60  ;;  %v6258_v16 = vld [vmem:[#allocation8 + $0xad4] sm:$0xf0]  ;;  %v5858_v50 = vld [vmem:[#allocation8 + $0xde8] sm:$0xf0]  ;;  %v5971_v10 = vld [vmem:[#allocation8 + $0x1e4] sm:$0xf] }
 0x192   :  { %v3312_v18 = vpop.f32.mrf.mxu3  ;;  %v4461_v47 = vor.u32 %v5999_v53, %v4458_v31  ;;  %v4290_v53 = vld [vmem:[#allocation8 + $0x1a8] sm:$0xf0] }
 0x193   :  { %3570 = vmatpush.bf16.msrb.mxu2 %v5353_v0  ;;  %v6286_v0 = vld [vmem:[#allocation8 + $0xbb4] sm:$0xf0]  ;;  %v3257_v58 = vadd.f32 %v6666_v63, %v3243_v25  ;;  %v5465_v25 = vor.u32 %v6258_v16, %v5464_v42  ;;  %v5943_v42 = vld [vmem:[#allocation8 + $0x104] sm:$0xf]  ;;  %v4234_v16 = vld [vmem:[#allocation8 + $0x138] sm:$0xf0] }
 0x194   :  { %3584 = vmatpush.bf16.msrb.mxu3 %v5801_v3  ;;  %3544 = vmatpush.bf16.msrb.mxu0 %v4345_v29  ;;  %v5922_v3 = vld [vmem:[#allocation8 + $0x54] sm:$0xf0]  ;;  %v3285_v29 = vadd.f32 %v3284_v52, %v3271_v49  ;;  %v3286_v60 = vpop.f32.mrf.mxu1 }
 0x195   :  { %3558 = vmatpush.bf16.msrb.mxu1 %v4793_v8  ;;  %v4514_v8 = vld [vmem:[#allocation8 + $0x368] sm:$0xf0]  ;;  %v4121_v19 = vor.u32 %v5922_v3, %v4120_v1  ;;  %v3879_v44 = vmax.f32 %v3257_v58, 0.0  ;;  %v3287_v51 = vadd.f32 %v3286_v60, %v3273_v4  ;;  %v6223_v3 = vld [vmem:[#allocation8 + $0x9c4] sm:$0xf] }
 0x196   :  { %v3299_v11 = vadd.f32 %v3298_v59, %v3285_v29  ;;  %v4405_v29 = vor.u32 %v5985_v55, %v4402_v56  ;;  %v4346_v59 = vld [vmem:[#allocation8 + $0x218] sm:$0xf0]  ;;  %v6069_v4 = vld [vmem:[#allocation8 + $0x4f4] sm:$0xf]  ;;  %v5186_v60 = vld [vmem:[#allocation8 + $0x8a8] sm:$0xf0] }
 0x197   :  { %3571 = vmatpush.bf16.msrb.mxu2 %v5297_v12  ;;  %v5577_v12 = vor.u32 %v6286_v0, %v5576_v43  ;;  %v6097_v43 = vld [vmem:[#allocation8 + $0x5d4] sm:$0xf]  ;;  %v4850_v0 = vld [vmem:[#allocation8 + $0x608] sm:$0xf0] }
 0x198   :  { %3585 = vmatpush.bf16.msrb.mxu3 %v5745_v17  ;;  %3545 = vmatpush.bf16.msrb.mxu0 %v4289_v20  ;;  %v6160_v17 = vld [vmem:[#allocation8 + $0x7c4] sm:$0xf0]  ;;  %v5520_v20 = vld [vmem:[#allocation8 + $0xb10] sm:$0xf]  ;;  %v4853_v9 = vor.u32 %v6097_v43, %v4850_v0  ;;  %v6041_v55 = vld [vmem:[#allocation8 + $0x414] sm:$0xf] }
 0x199   :  { %3559 = vmatpush.bf16.msrb.mxu1 %v4737_v30  ;;  %v4517_v30 = vor.u32 %v6013_v7, %v4514_v8  ;;  %v5073_v63 = vor.u32 %v6160_v17, %v5072_v14  ;;  %v5521_v38 = vor.u32 %v6272_v23, %v5520_v20  ;;  %v5802_v7 = vld [vmem:[#allocation8 + $0xd78] sm:$0xf0]  ;;  %v6321_v20 = vld [vmem:[#allocation8 + $0xcd4] sm:$0xf]  ;;  %v5746_v23 = vld [vmem:[#allocation8 + $0xd08] sm:$0xf0] }
 0x19a   :  { %v3314_v6 = vpop.f32.mrf.mxu3  ;;  %v4626_v56 = vld [vmem:[#allocation8 + $0x448] sm:$0xf0]  ;;  %v6279_v0 = vld [vmem:[#allocation8 + $0xb84] sm:$0xf] }
 0x19b   :  { %3572 = vmatpush.bf16.msrb.mxu2 %v5241_v32  ;;  %v3313_v32 = vadd.f32 %v3312_v18, %v3299_v11  ;;  %v6209_v11 = vld [vmem:[#allocation8 + $0x954] sm:$0xf]  ;;  %v5298_v18 = vld [vmem:[#allocation8 + $0x988] sm:$0xf0] }
 0x19c   :  { %3586 = vmatpush.bf16.msrb.mxu3 %v5689_v36  ;;  %3546 = vmatpush.bf16.msrb.mxu0 %v4233_v41  ;;  %v4906_v36 = vld [vmem:[#allocation8 + $0x678] sm:$0xf0]  ;;  %v6146_v41 = vld [vmem:[#allocation8 + $0x754] sm:$0xf0]  ;;  %v5301_v31 = vor.u32 %v6209_v11, %v5298_v18  ;;  %v4464_v18 = vld [vmem:[#allocation8 + $0x2c8] sm:$0xf] }
 0x19d   :  { %3560 = vmatpush.bf16.msrb.mxu1 %v4681_v15  ;;  %v3245_v15 = vadd.f32 %v6675_v35, %v3231_v24  ;;  %v3880_v45 = vmax.f32 %v3313_v32, 0.0  ;;  %v4909_v49 = vor.u32 %v6111_v34, %v4906_v36  ;;  %v3300_v35 = vpop.f32.mrf.mxu2  ;;  %v4738_v32 = vld [vmem:[#allocation8 + $0x528] sm:$0xf0]  ;;  %v5242_v34 = vld [vmem:[#allocation8 + $0x918] sm:$0xf0] }
 0x19e   :  { %v3301_v22 = vadd.f32 %v3300_v35, %v3287_v51  ;;  %v5929_v51 = vld [vmem:[#allocation8 + $0x94] sm:$0xf] }
 0x19f   :  { %3573 = vmatpush.bf16.msrb.mxu2 %v5185_v13  ;;  %v6349_v13 = vld [vmem:[#allocation8 + $0xdb4] sm:$0xf]  ;;  %v3906_v52 = vpack.c.bf16 %v3880_v45, %v3879_v44  ;;  %v3259_v1 = vadd.f32 %v6677_v40, %v3245_v15  ;;  %v5357_v40 = vor.u32 %v6223_v3, %v5354_v5  ;;  %v6055_v15 = vld [vmem:[#allocation8 + $0x484] sm:$0xf]  ;;  %v4682_v45 = vld [vmem:[#allocation8 + $0x4b8] sm:$0xf0] }
 0x1a0   :  { %3587 = vmatpush.bf16.msrb.mxu3 %v5633_v54  ;;  %3547 = vmatpush.bf16.msrb.mxu0 %v4177_v61  ;;  %v5017_v54 = vor.u32 %v6146_v41, %v5016_v37  ;;  %v5413_v61 = vor.u32 %v6237_v46, %v5410_v28  ;;  %v3315_v8 = vadd.f32 %v3314_v6, %v3301_v22  ;;  %v6307_v37 = vld [vmem:[#allocation8 + $0xc64] sm:$0xf]  ;;  %v6181_v28 = vld [vmem:[#allocation8 + $0x874] sm:$0xf]  ;;  %v4122_v3 = vld [vmem:[#allocation8 + $0x58] sm:$0xf0] }
 0x1a1   :  { %3561 = vmatpush.bf16.msrb.mxu1 %v4625_v2  ;;  %3920 = vst [vmem:[#allocation11 + $0x8] sm:$0xff] %v3906_v52  ;;  %v5861_v2 = vor.u32 %v6349_v13, %v5858_v50  ;;  %v3893_v14 = vmax.f32 %v3259_v1, 0.0  ;;  %v4741_v41 = vor.u32 %v6069_v4, %v4738_v32  ;;  %v5634_v13 = vld [vmem:[#allocation8 + $0xc28] sm:$0xf0]  ;;  %v4685_v50 = vor.u32 %v6055_v15, %v4682_v45  ;;  %v5578_v1 = vld [vmem:[#allocation8 + $0xbb8] sm:$0xf0] }
 0x1a2   :  { %v3894_v17 = vmax.f32 %v3315_v8, 0.0  ;;  %v4178_v52 = vld [vmem:[#allocation8 + $0xc8] sm:$0xf0]  ;;  %v5915_v22 = vld [vmem:[#allocation8 + $0x24] sm:$0xf] }
 0x1a3   :  { %3574 = vmatpush.bf16.msrb.mxu2 %v5129_v39  ;;  %v6335_v39 = vld [vmem:[#allocation8 + $0xd44] sm:$0xf]  ;;  %v4181_v43 = vor.u32 %v5929_v51, %v4178_v52  ;;  %v4570_v6 = vld [vmem:[#allocation8 + $0x3d8] sm:$0xf0]  ;;  %v4968_v8 = vld [vmem:[#allocation8 + $0x6b8] sm:$0xf] }
 0x1a4   :  { %3588 = vmatpush.bf16.msrb.mxu3 %v5577_v12  ;;  %3548 = vmatpush.bf16.msrb.mxu0 %v4121_v19  ;;  %v6083_v12 = vld [vmem:[#allocation8 + $0x564] sm:$0xf]  ;;  %v5805_v58 = vor.u32 %v6335_v39, %v5802_v7  ;;  %v4349_v19 = vor.u32 %v5971_v10, %v4346_v59  ;;  %v3913_v24 = vpack.c.bf16 %v3894_v17, %v3893_v14  ;;  %v4520_v39 = vld [vmem:[#allocation8 + $0x338] sm:$0xf]  ;;  %v6021_v7 = vld [vmem:[#allocation8 + $0x36c] sm:$0xf0] }
 0x1a5   :  { %3562 = vmatpush.bf16.msrb.mxu1 %v4569_v26  ;;  %v4797_v26 = vor.u32 %v6083_v12, %v4794_v48  ;;  %v6027_v5 = vld [vmem:[#allocation8 + $0x3a4] sm:$0xf]  ;;  %v6133_v10 = vld [vmem:[#allocation8 + $0x6ec] sm:$0xf0]  ;;  %v6153_v59 = vld [vmem:[#allocation8 + $0x794] sm:$0xf]  ;;  %v6694_v12 = vpop.f32.mrf.mxu0  ;;  %v4125_v48 = vor.u32 %v5915_v22, %v4122_v3  ;;  %v4521_v11 = vor.u32 %v6021_v7, %v4520_v39 }
 0x1a6   :  { %3927 = vst [vmem:[#allocation11 + $0x40] sm:$0xff] %v3913_v24  ;;  %v6265_v14 = vld [vmem:[#allocation8 + $0xb14] sm:$0xf]  ;;  %v5522_v17 = vld [vmem:[#allocation8 + $0xb48] sm:$0xf0] }
 0x1a7   :  { %3575 = vmatpush.bf16.msrb.mxu2 %v5073_v63  ;;  %3549 = vmatmul.bf16.vlgmr.msrb.gmra.mxu0 %v6584_v57  ;;  %v6195_v63 = vld [vmem:[#allocation8 + $0x8e4] sm:$0xf]  ;;  %v4912_v24 = vld [vmem:[#allocation8 + $0x648] sm:$0xf]  ;;  %v5466_v32 = vld [vmem:[#allocation8 + $0xad8] sm:$0xf0] }
 0x1a8   :  { %3597 = vmatpush.bf16.msra.mxu0 %v4517_v30  ;;  %3589 = vmatpush.bf16.msrb.mxu3 %v5521_v38  ;;  %v5957_v30 = vld [vmem:[#allocation8 + $0x174] sm:$0xf]  ;;  %v5690_v38 = vld [vmem:[#allocation8 + $0xc98] sm:$0xf0]  ;;  %v5245_v44 = vor.u32 %v6195_v63, %v5242_v34  ;;  %v6251_v4 = vld [vmem:[#allocation8 + $0xaa4] sm:$0xf] }
 0x1a9   :  { %3611 = vmatpush.bf16.msra.mxu1 %v4965_v33  ;;  %v5749_v33 = vor.u32 %v6321_v20, %v5746_v23  ;;  %v4293_v36 = vor.u32 %v5957_v30, %v4290_v53  ;;  %v5693_v46 = vor.u32 %v6307_v37, %v5690_v38  ;;  %v6007_v23 = vld [vmem:[#allocation8 + $0x2fc] sm:$0xf0]  ;;  %v5525_v30 = vor.u32 %v6265_v14, %v5522_v17  ;;  %v6139_v53 = vld [vmem:[#allocation8 + $0x724] sm:$0xf]  ;;  %v6245_v63 = vld [vmem:[#allocation8 + $0xa6c] sm:$0xf0]  ;;  %v6696_v38 = vpop.f32.mrf.mxu1 }
 0x1aa   :  { %3563 = vmatmul.bf16.vlgmr.msrb.gmra.mxu1 %v6586_v62  ;;  %v4465_v34 = vor.u32 %v6007_v23, %v4464_v18  ;;  %v6357_v37 = vld [vmem:[#allocation8 + $0xdec] sm:$0xf0]  ;;  %v5469_v15 = vor.u32 %v6251_v4, %v5466_v32  ;;  %v6343_v51 = vld [vmem:[#allocation8 + $0xd7c] sm:$0xf0]  ;;  %v5304_v22 = vld [vmem:[#allocation8 + $0x958] sm:$0xf] }
 0x1ab   :  { %3576 = vmatpush.bf16.msrb.mxu2 %v5017_v54  ;;  %v5189_v54 = vor.u32 %v6181_v28, %v5186_v60  ;;  %v6105_v28 = vld [vmem:[#allocation8 + $0x60c] sm:$0xf0]  ;;  %v4296_v39 = vld [vmem:[#allocation8 + $0x178] sm:$0xf]  ;;  %v5248_v17 = vld [vmem:[#allocation8 + $0x8e8] sm:$0xf] }
 0x1ac   :  { %3598 = vmatpush.bf16.msra.mxu0 %v4461_v47  ;;  %3590 = vmatpush.bf16.msrb.mxu3 %v5465_v25  ;;  %v4237_v47 = vor.u32 %v5943_v42, %v4234_v16  ;;  %v6167_v25 = vld [vmem:[#allocation8 + $0x804] sm:$0xf]  ;;  %v4408_v16 = vld [vmem:[#allocation8 + $0x258] sm:$0xf]  ;;  %v5965_v7 = vld [vmem:[#allocation8 + $0x1ac] sm:$0xf0] }
 0x1ad   :  { %3612 = vmatpush.bf16.msra.mxu1 %v4909_v49  ;;  %v6293_v49 = vld [vmem:[#allocation8 + $0xbf4] sm:$0xf]  ;;  %v6700_v52 = vpop.f32.mrf.mxu0  ;;  %v5696_v18 = vld [vmem:[#allocation8 + $0xc68] sm:$0xf]  ;;  %v6063_v32 = vld [vmem:[#allocation8 + $0x4bc] sm:$0xf0] }
 0x1ae   :  { %3577 = vmatmul.bf16.vlgmr.msrb.gmra.mxu2 %v6590_v21  ;;  %v5637_v35 = vor.u32 %v6293_v49, %v5634_v13  ;;  %v6231_v49 = vld [vmem:[#allocation8 + $0x9fc] sm:$0xf0]  ;;  %v4688_v4 = vld [vmem:[#allocation8 + $0x488] sm:$0xf] }
 0x1af   :  { %3625 = vmatpush.bf16.msra.mxu2 %v5413_v61  ;;  %3591 = vmatmul.bf16.vlgmr.msrb.gmra.mxu3 %v6592_v27  ;;  %v5130_v61 = vld [vmem:[#allocation8 + $0x838] sm:$0xf0] }
 0x1b0   :  { %3639 = vmatpush.bf16.msra.mxu3 %v5861_v2  ;;  %3599 = vmatpush.bf16.msra.mxu0 %v4405_v29  ;;  %v4629_v2 = vor.u32 %v6041_v55, %v4626_v56  ;;  %v5133_v29 = vor.u32 %v6167_v25, %v5130_v61  ;;  %v4352_v56 = vld [vmem:[#allocation8 + $0x1e8] sm:$0xf] }
 0x1b1   :  { %3613 = vmatpush.bf16.msra.mxu1 %v4853_v9  ;;  %v5581_v9 = vor.u32 %v6279_v0, %v5578_v1  ;;  %v6091_v0 = vld [vmem:[#allocation8 + $0x59c] sm:$0xf0] }
 0x1b2   :  { %v6704_v25 = vpop.f32.mrf.mxu3 }
 0x1b3   :  { %3626 = vmatpush.bf16.msra.mxu2 %v5357_v40  ;;  %v5074_v40 = vld [vmem:[#allocation8 + $0x7c8] sm:$0xf0] }
 0x1b4   :  { %3640 = vmatpush.bf16.msra.mxu3 %v5805_v58  ;;  %3600 = vmatpush.bf16.msra.mxu0 %v4349_v19  ;;  %v4573_v58 = vor.u32 %v6027_v5, %v4570_v6  ;;  %v4969_v19 = vor.u32 %v6133_v10, %v4968_v8  ;;  %v5077_v20 = vor.u32 %v6153_v59, %v5074_v40  ;;  %v5752_v5 = vld [vmem:[#allocation8 + $0xcd8] sm:$0xf]  ;;  %v6329_v6 = vld [vmem:[#allocation8 + $0xd0c] sm:$0xf0]  ;;  %v6708_v8 = vld [vmem:[#allocation10] sm:$0xff] }
 0x1b5   :  { %3614 = vmatpush.bf16.msra.mxu1 %v4797_v26  ;;  %v6119_v26 = vld [vmem:[#allocation8 + $0x67c] sm:$0xf0]  ;;  %v4744_v59 = vld [vmem:[#allocation8 + $0x4f8] sm:$0xf]  ;;  %v6077_v40 = vld [vmem:[#allocation8 + $0x52c] sm:$0xf0]  ;;  %v5753_v14 = vor.u32 %v6329_v6, %v5752_v5 }
 0x1b6   :  { %v4745_v23 = vor.u32 %v6077_v40, %v4744_v59  ;;  %v6014_v6 = vld [vmem:[#allocation8 + $0x33c] sm:$0xf]  ;;  %v4970_v59 = vld [vmem:[#allocation8 + $0x6f0] sm:$0xf0]  ;;  %v5080_v40 = vld [vmem:[#allocation8 + $0x798] sm:$0xf] }
 0x1b7   :  { %3627 = vmatpush.bf16.msra.mxu2 %v5301_v31  ;;  %v5018_v31 = vld [vmem:[#allocation8 + $0x758] sm:$0xf0] }
 0x1b8   :  { %3641 = vmatpush.bf16.msra.mxu3 %v5749_v33  ;;  %3601 = vmatpush.bf16.msra.mxu0 %v4293_v36  ;;  %v5416_v33 = vld [vmem:[#allocation8 + $0xa38] sm:$0xf]  ;;  %v5021_v42 = vor.u32 %v6139_v53, %v5018_v31  ;;  %v830_v53 = vperm.slane %v6708_v8, 5 }
 0x1b9   :  { %3615 = vmatpush.bf16.msra.mxu1 %v4741_v41  ;;  %v5864_v36 = vld [vmem:[#allocation8 + $0xdb8] sm:$0xf]  ;;  %v4913_v41 = vor.u32 %v6119_v26, %v4912_v24  ;;  %v5417_v45 = vor.u32 %v6245_v63, %v5416_v33  ;;  %v4240_v24 = vld [vmem:[#allocation8 + $0x108] sm:$0xf]  ;;  %v5951_v26 = vld [vmem:[#allocation8 + $0x13c] sm:$0xf0] }
 0x1ba   :  { %v5865_v60 = vor.u32 %v6357_v37, %v5864_v36  ;;  %v6189_v36 = vld [vmem:[#allocation8 + $0x8ac] sm:$0xf0]  ;;  %v6717_v37 = vpop.f32.mrf.mxu3 }
 0x1bb   :  { %3628 = vmatpush.bf16.msra.mxu2 %v5245_v44  ;;  %v5993_v44 = vld [vmem:[#allocation8 + $0x28c] sm:$0xf0] }
 0x1bc   :  { %3642 = vmatpush.bf16.msra.mxu3 %v5693_v46  ;;  %3602 = vmatpush.bf16.msra.mxu0 %v4237_v47  ;;  %v4856_v46 = vld [vmem:[#allocation8 + $0x5d8] sm:$0xf]  ;;  %v5360_v47 = vld [vmem:[#allocation8 + $0x9c8] sm:$0xf]  ;;  %v4409_v13 = vor.u32 %v5993_v44, %v4408_v16  ;;  %v6301_v16 = vld [vmem:[#allocation8 + $0xc2c] sm:$0xf0] }
 0x1bd   :  { %3616 = vmatpush.bf16.msra.mxu1 %v4685_v50  ;;  %v5808_v50 = vld [vmem:[#allocation8 + $0xd48] sm:$0xf]  ;;  %v4857_v55 = vor.u32 %v6105_v28, %v4856_v46  ;;  %v5361_v61 = vor.u32 %v6231_v49, %v5360_v47  ;;  %v4184_v44 = vld [vmem:[#allocation8 + $0x98] sm:$0xf]  ;;  %v6049_v47 = vld [vmem:[#allocation8 + $0x44c] sm:$0xf0] }
 0x1be   :  { %v5809_v1 = vor.u32 %v6343_v51, %v5808_v50  ;;  %v5136_v50 = vld [vmem:[#allocation8 + $0x808] sm:$0xf]  ;;  %v6175_v51 = vld [vmem:[#allocation8 + $0x83c] sm:$0xf0] }
 0x1bf   :  { %3629 = vmatpush.bf16.msra.mxu2 %v5189_v54  ;;  %v6702_v54 = vpop.f32.mrf.mxu2  ;;  %v5137_v5 = vor.u32 %v6175_v51, %v5136_v50  ;;  %v5986_v51 = vld [vmem:[#allocation8 + $0x25c] sm:$0xf] }
 0x1c0   :  { %3643 = vmatpush.bf16.msra.mxu3 %v5637_v35  ;;  %3603 = vmatpush.bf16.msra.mxu0 %v4181_v43  ;;  %v5979_v35 = vld [vmem:[#allocation8 + $0x21c] sm:$0xf0]  ;;  %v4800_v43 = vld [vmem:[#allocation8 + $0x568] sm:$0xf] }
 0x1c1   :  { %3617 = vmatpush.bf16.msra.mxu1 %v4629_v2  ;;  %v6217_v2 = vld [vmem:[#allocation8 + $0x98c] sm:$0xf0]  ;;  %v4353_v3 = vor.u32 %v5979_v35, %v4352_v56  ;;  %v5584_v35 = vld [vmem:[#allocation8 + $0xb88] sm:$0xf] }
 0x1c2   :  { %v5305_v10 = vor.u32 %v6217_v2, %v5304_v22  ;;  %v4576_v22 = vld [vmem:[#allocation8 + $0x3a8] sm:$0xf]  ;;  %v6035_v2 = vld [vmem:[#allocation8 + $0x3dc] sm:$0xf0] }
 0x1c3   :  { %3630 = vmatpush.bf16.msra.mxu2 %v5133_v29  ;;  %v4801_v29 = vor.u32 %v6091_v0, %v4800_v43  ;;  %v4128_v43 = vld [vmem:[#allocation8 + $0x28] sm:$0xf] }
 0x1c4   :  { %3644 = vmatpush.bf16.msra.mxu3 %v5581_v9  ;;  %3604 = vmatpush.bf16.msra.mxu0 %v4125_v48  ;;  %v829_v9 = vperm.slane %v6708_v8, 4  ;;  %v6711_v48 = vpop.f32.mrf.mxu1 }
 0x1c5   :  { %3618 = vmatpush.bf16.msra.mxu1 %v4573_v58  ;;  %v6203_v58 = vld [vmem:[#allocation8 + $0x91c] sm:$0xf0] }
 0x1c6   :  { %v5249_v31 = vor.u32 %v6203_v58, %v5248_v17 }
 0x1c7   :  { %3631 = vmatpush.bf16.msra.mxu2 %v5077_v20  ;;  %3605 = vmatmul.bf16.vlgmr.msra.gmra.mxu0 %v6584_v57  ;;  %v3382_v20 = vpop.f32.mrf.mxu0  ;;  %v6715_v33 = vpop.f32.mrf.mxu2 }
 0x1c8   :  { %3653 = vmatpush.bf16.msrb.mxu0 %v4521_v11  ;;  %3645 = vmatpush.bf16.msra.mxu3 %v5525_v30  ;;  %v4297_v11 = vor.u32 %v5965_v7, %v4296_v39  ;;  %v3327_v30 = vadd.f32 %v6694_v12, %v829_v9  ;;  %v4689_v12 = vor.u32 %v6063_v32, %v4688_v4  ;;  %v6126_v39 = vld [vmem:[#allocation8 + $0x6bc] sm:$0xf]  ;;  %v6112_v32 = vld [vmem:[#allocation8 + $0x64c] sm:$0xf] }
 0x1c9   :  { %3667 = vmatpush.bf16.msrb.mxu1 %v4969_v19  ;;  %v6315_v19 = vld [vmem:[#allocation8 + $0xc9c] sm:$0xf0]  ;;  %v3383_v46 = vadd.f32 %v3382_v20, %v830_v53  ;;  %v4577_v20 = vor.u32 %v6035_v2, %v4576_v22  ;;  %v4973_v4 = vor.u32 %v6126_v39, %v4970_v59  ;;  %v6224_v22 = vld [vmem:[#allocation8 + $0x9cc] sm:$0xf]  ;;  %v5362_v2 = vld [vmem:[#allocation8 + $0xa00] sm:$0xf0] }
 0x1ca   :  { %3619 = vmatmul.bf16.vlgmr.msra.gmra.mxu1 %v6586_v62  ;;  %v5697_v63 = vor.u32 %v6315_v19, %v5696_v18  ;;  %v6273_v18 = vld [vmem:[#allocation8 + $0xb4c] sm:$0xf0]  ;;  %v6084_v59 = vld [vmem:[#allocation8 + $0x56c] sm:$0xf] }
 0x1cb   :  { %3632 = vmatpush.bf16.msra.mxu2 %v5021_v42  ;;  %v5640_v42 = vld [vmem:[#allocation8 + $0xbf8] sm:$0xf] }
 0x1cc   :  { %3654 = vmatpush.bf16.msrb.mxu0 %v4465_v34  ;;  %3646 = vmatpush.bf16.msra.mxu3 %v5469_v15  ;;  %v5192_v34 = vld [vmem:[#allocation8 + $0x878] sm:$0xf]  ;;  %v5937_v15 = vld [vmem:[#allocation8 + $0xcc] sm:$0xf0]  ;;  %v3396_v49 = vpop.f32.mrf.mxu1 }
 0x1cd   :  { %3668 = vmatpush.bf16.msrb.mxu1 %v4913_v41  ;;  %v4241_v41 = vor.u32 %v5951_v26, %v4240_v24  ;;  %v5193_v28 = vor.u32 %v6189_v36, %v5192_v34  ;;  %v4185_v56 = vor.u32 %v5937_v15, %v4184_v44  ;;  %v6000_v24 = vld [vmem:[#allocation8 + $0x2cc] sm:$0xf]  ;;  %v4466_v26 = vld [vmem:[#allocation8 + $0x300] sm:$0xf0]  ;;  %v5024_v34 = vld [vmem:[#allocation8 + $0x728] sm:$0xf] }
 0x1ce   :  { %3633 = vmatmul.bf16.vlgmr.msra.gmra.mxu2 %v6590_v21  ;;  %v6238_v15 = vld [vmem:[#allocation8 + $0xa3c] sm:$0xf] }
 0x1cf   :  { %3681 = vmatpush.bf16.msrb.mxu2 %v5417_v45  ;;  %3647 = vmatmul.bf16.vlgmr.msra.gmra.mxu3 %v6592_v27  ;;  %v3341_v45 = vadd.f32 %v6696_v38, %v3327_v30  ;;  %v3329_v38 = vadd.f32 %v6700_v52, %v829_v9  ;;  %v3384_v7 = vpop.f32.mrf.mxu0 }
 0x1d0   :  { %3695 = vmatpush.bf16.msrb.mxu3 %v5865_v60  ;;  %3655 = vmatpush.bf16.msrb.mxu0 %v4409_v13  ;;  %v4632_v60 = vld [vmem:[#allocation8 + $0x418] sm:$0xf]  ;;  %v5641_v13 = vor.u32 %v6301_v16, %v5640_v42  ;;  %v3385_v30 = vadd.f32 %v3384_v7, %v830_v53  ;;  %v5472_v42 = vld [vmem:[#allocation8 + $0xaa8] sm:$0xf] }
 0x1d1   :  { %3669 = vmatpush.bf16.msrb.mxu1 %v4857_v55  ;;  %v3355_v55 = vadd.f32 %v6702_v54, %v3341_v45  ;;  %v4633_v0 = vor.u32 %v6049_v47, %v4632_v60  ;;  %v3410_v54 = vpop.f32.mrf.mxu2  ;;  %v3343_v19 = vadd.f32 %v6711_v48, %v3329_v38  ;;  %v6259_v48 = vld [vmem:[#allocation8 + $0xadc] sm:$0xf0]  ;;  %v5418_v45 = vld [vmem:[#allocation8 + $0xa70] sm:$0xf0]  ;;  %v6350_v60 = vld [vmem:[#allocation8 + $0xdbc] sm:$0xf] }
 0x1d2   :  { %v3424_v17 = vpop.f32.mrf.mxu3  ;;  %v5866_v47 = vld [vmem:[#allocation8 + $0xdf0] sm:$0xf0] }
 0x1d3   :  { %3682 = vmatpush.bf16.msrb.mxu2 %v5361_v61  ;;  %v6287_v61 = vld [vmem:[#allocation8 + $0xbbc] sm:$0xf0]  ;;  %v3369_v52 = vadd.f32 %v6704_v25, %v3355_v55  ;;  %v4410_v55 = vld [vmem:[#allocation8 + $0x290] sm:$0xf0] }
 0x1d4   :  { %3696 = vmatpush.bf16.msrb.mxu3 %v5809_v1  ;;  %3656 = vmatpush.bf16.msrb.mxu0 %v4353_v3  ;;  %v5923_v1 = vld [vmem:[#allocation8 + $0x5c] sm:$0xf0]  ;;  %v3397_v3 = vadd.f32 %v3396_v49, %v3383_v46  ;;  %v3398_v53 = vpop.f32.mrf.mxu1  ;;  %v4469_v46 = vor.u32 %v6000_v24, %v4466_v26  ;;  %v5958_v24 = vld [vmem:[#allocation8 + $0x17c] sm:$0xf]  ;;  %v4298_v26 = vld [vmem:[#allocation8 + $0x1b0] sm:$0xf0] }
 0x1d5   :  { %3670 = vmatpush.bf16.msrb.mxu1 %v4801_v29  ;;  %v4522_v29 = vld [vmem:[#allocation8 + $0x370] sm:$0xf0]  ;;  %v4129_v58 = vor.u32 %v5923_v1, %v4128_v43  ;;  %v3881_v16 = vmax.f32 %v3369_v52, 0.0  ;;  %v3399_v49 = vadd.f32 %v3398_v53, %v3385_v30  ;;  %v5869_v1 = vor.u32 %v6350_v60, %v5866_v47  ;;  %v6182_v53 = vld [vmem:[#allocation8 + $0x87c] sm:$0xf] }
 0x1d6   :  { %v3411_v9 = vadd.f32 %v3410_v54, %v3397_v3  ;;  %v4858_v43 = vld [vmem:[#allocation8 + $0x610] sm:$0xf0]  ;;  %v5972_v54 = vld [vmem:[#allocation8 + $0x1ec] sm:$0xf]  ;;  %v6294_v60 = vld [vmem:[#allocation8 + $0xbfc] sm:$0xf] }
 0x1d7   :  { %3683 = vmatpush.bf16.msrb.mxu2 %v5305_v10  ;;  %v5585_v10 = vor.u32 %v6287_v61, %v5584_v35  ;;  %v5421_v35 = vor.u32 %v6238_v15, %v5418_v45  ;;  %v6098_v61 = vld [vmem:[#allocation8 + $0x5dc] sm:$0xf]  ;;  %v4690_v15 = vld [vmem:[#allocation8 + $0x4c0] sm:$0xf0]  ;;  %v5642_v47 = vld [vmem:[#allocation8 + $0xc30] sm:$0xf0] }
 0x1d8   :  { %3697 = vmatpush.bf16.msrb.mxu3 %v5753_v14  ;;  %3657 = vmatpush.bf16.msrb.mxu0 %v4297_v11  ;;  %v6161_v14 = vld [vmem:[#allocation8 + $0x7cc] sm:$0xf0]  ;;  %v5528_v11 = vld [vmem:[#allocation8 + $0xb18] sm:$0xf]  ;;  %v4861_v7 = vor.u32 %v6098_v61, %v4858_v43  ;;  %v5138_v61 = vld [vmem:[#allocation8 + $0x840] sm:$0xf0] }
 0x1d9   :  { %3671 = vmatpush.bf16.msrb.mxu1 %v4745_v23  ;;  %v4525_v23 = vor.u32 %v6014_v6, %v4522_v29  ;;  %v5081_v25 = vor.u32 %v6161_v14, %v5080_v40  ;;  %v5529_v36 = vor.u32 %v6273_v18, %v5528_v11  ;;  %v6336_v6 = vld [vmem:[#allocation8 + $0xd4c] sm:$0xf]  ;;  %v5810_v29 = vld [vmem:[#allocation8 + $0xd80] sm:$0xf0]  ;;  %v6322_v18 = vld [vmem:[#allocation8 + $0xcdc] sm:$0xf] }
 0x1da   :  { %v3426_v3 = vpop.f32.mrf.mxu3  ;;  %v4802_v40 = vld [vmem:[#allocation8 + $0x5a0] sm:$0xf0] }
 0x1db   :  { %3684 = vmatpush.bf16.msrb.mxu2 %v5249_v31  ;;  %v3425_v31 = vadd.f32 %v3424_v17, %v3411_v9  ;;  %v5813_v9 = vor.u32 %v6336_v6, %v5810_v29  ;;  %v6210_v17 = vld [vmem:[#allocation8 + $0x95c] sm:$0xf]  ;;  %v4528_v29 = vld [vmem:[#allocation8 + $0x340] sm:$0xf] }
 0x1dc   :  { %3698 = vmatpush.bf16.msrb.mxu3 %v5697_v63  ;;  %3658 = vmatpush.bf16.msrb.mxu0 %v4241_v41  ;;  %v4914_v63 = vld [vmem:[#allocation8 + $0x680] sm:$0xf0]  ;;  %v6147_v41 = vld [vmem:[#allocation8 + $0x75c] sm:$0xf0] }
 0x1dd   :  { %3672 = vmatpush.bf16.msrb.mxu1 %v4689_v12  ;;  %v3357_v12 = vadd.f32 %v6715_v33, %v3343_v19  ;;  %v3882_v44 = vmax.f32 %v3425_v31, 0.0  ;;  %v5025_v50 = vor.u32 %v6147_v41, %v5024_v34  ;;  %v3412_v33 = vpop.f32.mrf.mxu2  ;;  %v5754_v19 = vld [vmem:[#allocation8 + $0xd10] sm:$0xf0]  ;;  %v6070_v31 = vld [vmem:[#allocation8 + $0x4fc] sm:$0xf]  ;;  %v4301_v34 = vor.u32 %v5958_v24, %v4298_v26 }
 0x1de   :  { %v5698_v41 = vld [vmem:[#allocation8 + $0xca0] sm:$0xf0]  ;;  %v6120_v24 = vld [vmem:[#allocation8 + $0x684] sm:$0xf0] }
 0x1df   :  { %3685 = vmatpush.bf16.msrb.mxu2 %v5193_v28  ;;  %v4917_v28 = vor.u32 %v6112_v32, %v4914_v63  ;;  %v3371_v38 = vadd.f32 %v6717_v37, %v3357_v12  ;;  %v5365_v37 = vor.u32 %v6224_v22, %v5362_v2  ;;  %v6196_v32 = vld [vmem:[#allocation8 + $0x8ec] sm:$0xf]  ;;  %v5250_v63 = vld [vmem:[#allocation8 + $0x920] sm:$0xf0] }
 0x1e0   :  { %3699 = vmatpush.bf16.msrb.mxu3 %v5641_v13  ;;  %3659 = vmatpush.bf16.msrb.mxu0 %v4185_v56  ;;  %v3907_v13 = vpack.c.bf16 %v3882_v44, %v3881_v16  ;;  %v5473_v56 = vor.u32 %v6259_v48, %v5472_v42  ;;  %v5944_v48 = vld [vmem:[#allocation8 + $0x10c] sm:$0xf]  ;;  %v4242_v16 = vld [vmem:[#allocation8 + $0x140] sm:$0xf0]  ;;  %v5253_v12 = vor.u32 %v6196_v32, %v5250_v63  ;;  %v5424_v32 = vld [vmem:[#allocation8 + $0xa40] sm:$0xf] }
 0x1e1   :  { %3673 = vmatpush.bf16.msrb.mxu1 %v4633_v0  ;;  %v3413_v0 = vadd.f32 %v3412_v33, %v3399_v49  ;;  %v3895_v14 = vmax.f32 %v3371_v38, 0.0  ;;  %v6056_v44 = vld [vmem:[#allocation8 + $0x48c] sm:$0xf]  ;;  %v4634_v33 = vld [vmem:[#allocation8 + $0x450] sm:$0xf0] }
 0x1e2   :  { %3921 = vst [vmem:[#allocation11 + $0x10] sm:$0xff] %v3907_v13  ;;  %v4693_v49 = vor.u32 %v6056_v44, %v4690_v15  ;;  %v5930_v13 = vld [vmem:[#allocation8 + $0x9c] sm:$0xf]  ;;  %v6280_v38 = vld [vmem:[#allocation8 + $0xb8c] sm:$0xf] }
 0x1e3   :  { %3686 = vmatpush.bf16.msrb.mxu2 %v5137_v5  ;;  %v4413_v5 = vor.u32 %v5986_v51, %v4410_v55  ;;  %v3427_v39 = vadd.f32 %v3426_v3, %v3413_v0  ;;  %v6042_v55 = vld [vmem:[#allocation8 + $0x41c] sm:$0xf]  ;;  %v5586_v0 = vld [vmem:[#allocation8 + $0xbc0] sm:$0xf0]  ;;  %v6028_v3 = vld [vmem:[#allocation8 + $0x3ac] sm:$0xf] }
 0x1e4   :  { %3700 = vmatpush.bf16.msrb.mxu3 %v5585_v10  ;;  %3660 = vmatpush.bf16.msrb.mxu0 %v4129_v58  ;;  %v4354_v10 = vld [vmem:[#allocation8 + $0x220] sm:$0xf0]  ;;  %v5306_v58 = vld [vmem:[#allocation8 + $0x990] sm:$0xf0]  ;;  %v4637_v22 = vor.u32 %v6042_v55, %v4634_v33  ;;  %v6246_v63 = vld [vmem:[#allocation8 + $0xa74] sm:$0xf0] }
 0x1e5   :  { %3674 = vmatpush.bf16.msrb.mxu1 %v4577_v20  ;;  %v3896_v52 = vmax.f32 %v3427_v39, 0.0  ;;  %v4357_v11 = vor.u32 %v5972_v54, %v4354_v10  ;;  %v5309_v30 = vor.u32 %v6210_v17, %v5306_v58  ;;  %v4130_v2 = vld [vmem:[#allocation8 + $0x60] sm:$0xf0]  ;;  %v6022_v39 = vld [vmem:[#allocation8 + $0x374] sm:$0xf0]  ;;  %v5589_v54 = vor.u32 %v6280_v38, %v5586_v0 }
 0x1e6   :  { %v6134_v10 = vld [vmem:[#allocation8 + $0x6f4] sm:$0xf0]  ;;  %v4529_v58 = vor.u32 %v6022_v39, %v4528_v29  ;;  %v4808_v38 = vld [vmem:[#allocation8 + $0x570] sm:$0xf]  ;;  %v6092_v0 = vld [vmem:[#allocation8 + $0x5a4] sm:$0xf0] }
 0x1e7   :  { %3687 = vmatpush.bf16.msrb.mxu2 %v5081_v25  ;;  %3661 = vmatmul.bf16.vlgmr.msrb.gmra.mxu0 %v6584_v57  ;;  %v3914_v20 = vpack.c.bf16 %v3896_v52, %v3895_v14  ;;  %v5757_v25 = vor.u32 %v6322_v18, %v5754_v19  ;;  %v6266_v52 = vld [vmem:[#allocation8 + $0xb1c] sm:$0xf]  ;;  %v5994_v44 = vld [vmem:[#allocation8 + $0x294] sm:$0xf0]  ;;  %v4809_v29 = vor.u32 %v6092_v0, %v4808_v38  ;;  %v4304_v39 = vld [vmem:[#allocation8 + $0x180] sm:$0xf] }
 0x1e8   :  { %3709 = vmatpush.bf16.msra.mxu0 %v4525_v23  ;;  %3701 = vmatpush.bf16.msrb.mxu3 %v5529_v36  ;;  %v4805_v23 = vor.u32 %v6084_v59, %v4802_v40  ;;  %v6308_v36 = vld [vmem:[#allocation8 + $0xc6c] sm:$0xf]  ;;  %v5082_v59 = vld [vmem:[#allocation8 + $0x7d0] sm:$0xf0]  ;;  %v6734_v40 = vpop.f32.mrf.mxu0  ;;  %v4136_v38 = vld [vmem:[#allocation8 + $0x30] sm:$0xf] }
 0x1e9   :  { %3723 = vmatpush.bf16.msra.mxu1 %v4973_v4  ;;  %v4746_v4 = vld [vmem:[#allocation8 + $0x530] sm:$0xf0]  ;;  %3928 = vst [vmem:[#allocation11 + $0x48] sm:$0xff] %v3914_v20  ;;  %v5701_v45 = vor.u32 %v6308_v36, %v5698_v41  ;;  %v6008_v20 = vld [vmem:[#allocation8 + $0x304] sm:$0xf0] }
 0x1ea   :  { %3675 = vmatmul.bf16.vlgmr.msrb.gmra.mxu1 %v6586_v62  ;;  %v4749_v42 = vor.u32 %v6070_v31, %v4746_v4  ;;  %v5026_v31 = vld [vmem:[#allocation8 + $0x760] sm:$0xf0]  ;;  %v6252_v4 = vld [vmem:[#allocation8 + $0xaac] sm:$0xf]  ;;  %v5872_v36 = vld [vmem:[#allocation8 + $0xdc0] sm:$0xf] }
 0x1eb   :  { %3688 = vmatpush.bf16.msrb.mxu2 %v5025_v50  ;;  %v4186_v50 = vld [vmem:[#allocation8 + $0xd0] sm:$0xf0]  ;;  %v6358_v41 = vld [vmem:[#allocation8 + $0xdf4] sm:$0xf0] }
 0x1ec   :  { %3710 = vmatpush.bf16.msra.mxu0 %v4469_v46  ;;  %3702 = vmatpush.bf16.msrb.mxu3 %v5473_v56  ;;  %v5194_v46 = vld [vmem:[#allocation8 + $0x8b0] sm:$0xf0]  ;;  %v5645_v56 = vor.u32 %v6294_v60, %v5642_v47  ;;  %v4189_v43 = vor.u32 %v5930_v13, %v4186_v50  ;;  %v5368_v60 = vld [vmem:[#allocation8 + $0x9d0] sm:$0xf]  ;;  %v6232_v47 = vld [vmem:[#allocation8 + $0xa04] sm:$0xf0] }
 0x1ed   :  { %3724 = vmatpush.bf16.msra.mxu1 %v4917_v28  ;;  %v4245_v28 = vor.u32 %v5944_v48, %v4242_v16  ;;  %v5197_v51 = vor.u32 %v6182_v53, %v5194_v46  ;;  %v4864_v53 = vld [vmem:[#allocation8 + $0x5e0] sm:$0xf]  ;;  %v6106_v46 = vld [vmem:[#allocation8 + $0x614] sm:$0xf0]  ;;  %v5816_v13 = vld [vmem:[#allocation8 + $0xd50] sm:$0xf] }
 0x1ee   :  { %3689 = vmatmul.bf16.vlgmr.msrb.gmra.mxu2 %v6590_v21  ;;  %v6344_v50 = vld [vmem:[#allocation8 + $0xd84] sm:$0xf0]  ;;  %v4865_v33 = vor.u32 %v6106_v46, %v4864_v53 }
 0x1ef   :  { %3737 = vmatpush.bf16.msra.mxu2 %v5421_v35  ;;  %3703 = vmatmul.bf16.vlgmr.msrb.gmra.mxu3 %v6592_v27  ;;  %v6168_v35 = vld [vmem:[#allocation8 + $0x80c] sm:$0xf] }
 0x1f0   :  { %3751 = vmatpush.bf16.msra.mxu3 %v5869_v1  ;;  %3711 = vmatpush.bf16.msra.mxu0 %v4413_v5  ;;  %v5916_v1 = vld [vmem:[#allocation8 + $0x2c] sm:$0xf]  ;;  %v4578_v5 = vld [vmem:[#allocation8 + $0x3e0] sm:$0xf0]  ;;  %v5141_v6 = vor.u32 %v6168_v35, %v5138_v61  ;;  %v5980_v35 = vld [vmem:[#allocation8 + $0x224] sm:$0xf0] }
 0x1f1   :  { %3725 = vmatpush.bf16.msra.mxu1 %v4861_v7  ;;  %v4976_v7 = vld [vmem:[#allocation8 + $0x6c0] sm:$0xf]  ;;  %v4133_v14 = vor.u32 %v5916_v1, %v4130_v2  ;;  %v4581_v17 = vor.u32 %v6028_v3, %v4578_v5  ;;  %v6742_v55 = vpop.f32.mrf.mxu2  ;;  %v5817_v1 = vor.u32 %v6344_v50, %v5816_v13  ;;  %v6218_v2 = vld [vmem:[#allocation8 + $0x994] sm:$0xf0]  ;;  %v5144_v13 = vld [vmem:[#allocation8 + $0x810] sm:$0xf] }
 0x1f2   :  { %v4977_v18 = vor.u32 %v6134_v10, %v4976_v7  ;;  %v6744_v61 = vpop.f32.mrf.mxu3  ;;  %v5760_v5 = vld [vmem:[#allocation8 + $0xce0] sm:$0xf]  ;;  %v5966_v7 = vld [vmem:[#allocation8 + $0x1b4] sm:$0xf0]  ;;  %v6176_v50 = vld [vmem:[#allocation8 + $0x844] sm:$0xf0] }
 0x1f3   :  { %3738 = vmatpush.bf16.msra.mxu2 %v5365_v37  ;;  %v6154_v37 = vld [vmem:[#allocation8 + $0x79c] sm:$0xf] }
 0x1f4   :  { %3752 = vmatpush.bf16.msra.mxu3 %v5813_v9  ;;  %3712 = vmatpush.bf16.msra.mxu0 %v4357_v11  ;;  %v5530_v9 = vld [vmem:[#allocation8 + $0xb50] sm:$0xf0]  ;;  %v4472_v11 = vld [vmem:[#allocation8 + $0x2d0] sm:$0xf]  ;;  %v5085_v19 = vor.u32 %v6154_v37, %v5082_v59  ;;  %v4752_v37 = vld [vmem:[#allocation8 + $0x500] sm:$0xf] }
 0x1f5   :  { %3726 = vmatpush.bf16.msra.mxu1 %v4805_v23  ;;  %v4920_v23 = vld [vmem:[#allocation8 + $0x650] sm:$0xf]  ;;  %v5533_v26 = vor.u32 %v6266_v52, %v5530_v9  ;;  %v6078_v59 = vld [vmem:[#allocation8 + $0x534] sm:$0xf0] }
 0x1f6   :  { %v4921_v48 = vor.u32 %v6120_v24, %v4920_v23  ;;  %v5256_v9 = vld [vmem:[#allocation8 + $0x8f0] sm:$0xf]  ;;  %v5952_v24 = vld [vmem:[#allocation8 + $0x144] sm:$0xf0] }
 0x1f7   :  { %3739 = vmatpush.bf16.msra.mxu2 %v5309_v30  ;;  %v6140_v30 = vld [vmem:[#allocation8 + $0x72c] sm:$0xf]  ;;  %v4248_v23 = vld [vmem:[#allocation8 + $0x110] sm:$0xf] }
 0x1f8   :  { %3753 = vmatpush.bf16.msra.mxu3 %v5757_v25  ;;  %3713 = vmatpush.bf16.msra.mxu0 %v4301_v34  ;;  %v5474_v25 = vld [vmem:[#allocation8 + $0xae0] sm:$0xf0]  ;;  %v4473_v34 = vor.u32 %v6008_v20, %v4472_v11  ;;  %v5029_v16 = vor.u32 %v6140_v30, %v5026_v31  ;;  %v5704_v11 = vld [vmem:[#allocation8 + $0xc70] sm:$0xf]  ;;  %v4753_v20 = vor.u32 %v6078_v59, %v4752_v37  ;;  %v832_v30 = vperm.slane %v6708_v8, 7 }
 0x1f9   :  { %3727 = vmatpush.bf16.msra.mxu1 %v4749_v42  ;;  %v6736_v42 = vpop.f32.mrf.mxu1  ;;  %v5477_v15 = vor.u32 %v6252_v4, %v5474_v25  ;;  %v4696_v4 = vld [vmem:[#allocation8 + $0x490] sm:$0xf]  ;;  %v6064_v25 = vld [vmem:[#allocation8 + $0x4c4] sm:$0xf0]  ;;  %v4978_v37 = vld [vmem:[#allocation8 + $0x6f8] sm:$0xf0] }
 0x1fa   :  { %v5088_v59 = vld [vmem:[#allocation8 + $0x7a0] sm:$0xf] }
 0x1fb   :  { %3740 = vmatpush.bf16.msra.mxu2 %v5253_v12  ;;  %v4416_v12 = vld [vmem:[#allocation8 + $0x260] sm:$0xf] }
 0x1fc   :  { %3754 = vmatpush.bf16.msra.mxu3 %v5701_v45  ;;  %3714 = vmatpush.bf16.msra.mxu0 %v4245_v28  ;;  %v5425_v45 = vor.u32 %v6246_v63, %v5424_v32  ;;  %v5873_v28 = vor.u32 %v6358_v41, %v5872_v36  ;;  %v6753_v32 = vpop.f32.mrf.mxu2  ;;  %v6190_v36 = vld [vmem:[#allocation8 + $0x8b4] sm:$0xf0]  ;;  %v6755_v41 = vpop.f32.mrf.mxu3 }
 0x1fd   :  { %3728 = vmatpush.bf16.msra.mxu1 %v4693_v49  ;;  %v4417_v49 = vor.u32 %v5994_v44, %v4416_v12  ;;  %v6302_v12 = vld [vmem:[#allocation8 + $0xc34] sm:$0xf0]  ;;  %v4192_v44 = vld [vmem:[#allocation8 + $0xa0] sm:$0xf] }
 0x1ff   :  { %3741 = vmatpush.bf16.msra.mxu2 %v5197_v51  ;;  %v6740_v51 = vpop.f32.mrf.mxu0 }
 0x200   :  { %3755 = vmatpush.bf16.msra.mxu3 %v5645_v56  ;;  %3715 = vmatpush.bf16.msra.mxu0 %v4189_v43  ;;  %v4360_v56 = vld [vmem:[#allocation8 + $0x1f0] sm:$0xf]  ;;  %v5369_v43 = vor.u32 %v6232_v47, %v5368_v60  ;;  %v6050_v60 = vld [vmem:[#allocation8 + $0x454] sm:$0xf0] }
 0x201   :  { %3729 = vmatpush.bf16.msra.mxu1 %v4637_v22  ;;  %v5312_v22 = vld [vmem:[#allocation8 + $0x960] sm:$0xf]  ;;  %v4361_v3 = vor.u32 %v5980_v35, %v4360_v56  ;;  %v5592_v35 = vld [vmem:[#allocation8 + $0xb90] sm:$0xf] }
 0x202   :  { %v5313_v10 = vor.u32 %v6218_v2, %v5312_v22  ;;  %v4584_v22 = vld [vmem:[#allocation8 + $0x3b0] sm:$0xf]  ;;  %v6036_v2 = vld [vmem:[#allocation8 + $0x3e4] sm:$0xf0] }
 0x203   :  { %3742 = vmatpush.bf16.msra.mxu2 %v5141_v6  ;;  %v6330_v6 = vld [vmem:[#allocation8 + $0xd14] sm:$0xf0] }
 0x204   :  { %3756 = vmatpush.bf16.msra.mxu3 %v5589_v54  ;;  %3716 = vmatpush.bf16.msra.mxu0 %v4133_v14  ;;  %v831_v54 = vperm.slane %v6708_v8, 6  ;;  %v6749_v14 = vpop.f32.mrf.mxu1  ;;  %v5761_v52 = vor.u32 %v6330_v6, %v5760_v5  ;;  %v5145_v5 = vor.u32 %v6176_v50, %v5144_v13  ;;  %v6015_v6 = vld [vmem:[#allocation8 + $0x344] sm:$0xf]  ;;  %v5426_v8 = vld [vmem:[#allocation8 + $0xa78] sm:$0xf0] }
 0x205   :  { %3730 = vmatpush.bf16.msra.mxu1 %v4581_v17  ;;  %v6204_v17 = vld [vmem:[#allocation8 + $0x924] sm:$0xf0]  ;;  %v5987_v13 = vld [vmem:[#allocation8 + $0x264] sm:$0xf]  ;;  %v4418_v50 = vld [vmem:[#allocation8 + $0x298] sm:$0xf0] }
 0x206   :  { %v5257_v31 = vor.u32 %v6204_v17, %v5256_v9 }
 0x207   :  { %3743 = vmatpush.bf16.msra.mxu2 %v5085_v19  ;;  %3717 = vmatmul.bf16.vlgmr.msra.gmra.mxu0 %v6584_v57  ;;  %v3494_v19 = vpop.f32.mrf.mxu0 }
 0x208   :  { %3765 = vmatpush.bf16.msrb.mxu0 %v4529_v58  ;;  %3757 = vmatpush.bf16.msra.mxu3 %v5533_v26  ;;  %v4305_v58 = vor.u32 %v5966_v7, %v4304_v39  ;;  %v3439_v26 = vadd.f32 %v6734_v40, %v831_v54  ;;  %v4697_v40 = vor.u32 %v6064_v25, %v4696_v4  ;;  %v6127_v39 = vld [vmem:[#allocation8 + $0x6c4] sm:$0xf]  ;;  %v6113_v25 = vld [vmem:[#allocation8 + $0x654] sm:$0xf] }
 0x209   :  { %3779 = vmatpush.bf16.msrb.mxu1 %v4977_v18  ;;  %v6316_v18 = vld [vmem:[#allocation8 + $0xca4] sm:$0xf0]  ;;  %v3495_v53 = vadd.f32 %v3494_v19, %v832_v30  ;;  %v4585_v19 = vor.u32 %v6036_v2, %v4584_v22  ;;  %v4981_v4 = vor.u32 %v6127_v39, %v4978_v37  ;;  %v5370_v22 = vld [vmem:[#allocation8 + $0xa08] sm:$0xf0] }
 0x20a   :  { %3731 = vmatmul.bf16.vlgmr.msra.gmra.mxu1 %v6586_v62  ;;  %v5705_v63 = vor.u32 %v6316_v18, %v5704_v11  ;;  %v6274_v11 = vld [vmem:[#allocation8 + $0xb54] sm:$0xf0]  ;;  %v4810_v37 = vld [vmem:[#allocation8 + $0x5a8] sm:$0xf0] }
 0x20b   :  { %3744 = vmatpush.bf16.msra.mxu2 %v5029_v16  ;;  %v5648_v16 = vld [vmem:[#allocation8 + $0xc00] sm:$0xf] }
 0x20c   :  { %3766 = vmatpush.bf16.msrb.mxu0 %v4473_v34  ;;  %3758 = vmatpush.bf16.msra.mxu3 %v5477_v15  ;;  %v5200_v34 = vld [vmem:[#allocation8 + $0x880] sm:$0xf]  ;;  %v5938_v15 = vld [vmem:[#allocation8 + $0xd4] sm:$0xf0]  ;;  %v3508_v47 = vpop.f32.mrf.mxu1 }
 0x20d   :  { %3780 = vmatpush.bf16.msrb.mxu1 %v4921_v48  ;;  %v4249_v48 = vor.u32 %v5952_v24, %v4248_v23  ;;  %v5201_v46 = vor.u32 %v6190_v36, %v5200_v34  ;;  %v4193_v56 = vor.u32 %v5938_v15, %v4192_v44  ;;  %v6001_v23 = vld [vmem:[#allocation8 + $0x2d4] sm:$0xf]  ;;  %v4474_v24 = vld [vmem:[#allocation8 + $0x308] sm:$0xf0]  ;;  %v5032_v34 = vld [vmem:[#allocation8 + $0x730] sm:$0xf] }
 0x20e   :  { %3745 = vmatmul.bf16.vlgmr.msra.gmra.mxu2 %v6590_v21  ;;  %v6239_v15 = vld [vmem:[#allocation8 + $0xa44] sm:$0xf] }
 0x20f   :  { %3793 = vmatpush.bf16.msrb.mxu2 %v5425_v45  ;;  %3759 = vmatmul.bf16.vlgmr.msra.gmra.mxu3 %v6592_v27  ;;  %v3453_v45 = vadd.f32 %v6736_v42, %v3439_v26  ;;  %v3441_v42 = vadd.f32 %v6740_v51, %v831_v54  ;;  %v3496_v7 = vpop.f32.mrf.mxu0 }
 0x210   :  { %3807 = vmatpush.bf16.msrb.mxu3 %v5873_v28  ;;  %3767 = vmatpush.bf16.msrb.mxu0 %v4417_v49  ;;  %v4640_v28 = vld [vmem:[#allocation8 + $0x420] sm:$0xf]  ;;  %v5649_v49 = vor.u32 %v6302_v12, %v5648_v16  ;;  %v3497_v26 = vadd.f32 %v3496_v7, %v832_v30  ;;  %v5480_v16 = vld [vmem:[#allocation8 + $0xab0] sm:$0xf]  ;;  %v5973_v7 = vld [vmem:[#allocation8 + $0x1f4] sm:$0xf] }
 0x211   :  { %3781 = vmatpush.bf16.msrb.mxu1 %v4865_v33  ;;  %v3467_v33 = vadd.f32 %v6742_v55, %v3453_v45  ;;  %v4641_v0 = vor.u32 %v6050_v60, %v4640_v28  ;;  %v3522_v55 = vpop.f32.mrf.mxu2  ;;  %v3455_v18 = vadd.f32 %v6749_v14, %v3441_v42  ;;  %v6260_v14 = vld [vmem:[#allocation8 + $0xae4] sm:$0xf0]  ;;  %v4477_v45 = vor.u32 %v6001_v23, %v4474_v24  ;;  %v5874_v28 = vld [vmem:[#allocation8 + $0xdf8] sm:$0xf0] }
 0x212   :  { %v3536_v9 = vpop.f32.mrf.mxu3  ;;  %v4306_v23 = vld [vmem:[#allocation8 + $0x1b8] sm:$0xf0] }
 0x213   :  { %3794 = vmatpush.bf16.msrb.mxu2 %v5369_v43  ;;  %v6288_v43 = vld [vmem:[#allocation8 + $0xbc4] sm:$0xf0]  ;;  %v3481_v51 = vadd.f32 %v6744_v61, %v3467_v33  ;;  %v5481_v33 = vor.u32 %v6260_v14, %v5480_v16  ;;  %v5945_v16 = vld [vmem:[#allocation8 + $0x114] sm:$0xf]  ;;  %v4250_v14 = vld [vmem:[#allocation8 + $0x148] sm:$0xf0] }
 0x214   :  { %3808 = vmatpush.bf16.msrb.mxu3 %v5817_v1  ;;  %3768 = vmatpush.bf16.msrb.mxu0 %v4361_v3  ;;  %v5924_v1 = vld [vmem:[#allocation8 + $0x64] sm:$0xf0]  ;;  %v3509_v3 = vadd.f32 %v3508_v47, %v3495_v53  ;;  %v3510_v30 = vpop.f32.mrf.mxu1 }
 0x215   :  { %3782 = vmatpush.bf16.msrb.mxu1 %v4809_v29  ;;  %v4530_v29 = vld [vmem:[#allocation8 + $0x378] sm:$0xf0]  ;;  %v4137_v17 = vor.u32 %v5924_v1, %v4136_v38  ;;  %v3883_v12 = vmax.f32 %v3481_v51, 0.0  ;;  %v3511_v60 = vadd.f32 %v3510_v30, %v3497_v26  ;;  %v6225_v1 = vld [vmem:[#allocation8 + $0x9d4] sm:$0xf] }
 0x216   :  { %v3523_v54 = vadd.f32 %v3522_v55, %v3509_v3  ;;  %v4421_v3 = vor.u32 %v5987_v13, %v4418_v50  ;;  %v4362_v55 = vld [vmem:[#allocation8 + $0x228] sm:$0xf0]  ;;  %v6071_v26 = vld [vmem:[#allocation8 + $0x504] sm:$0xf]  ;;  %v5202_v30 = vld [vmem:[#allocation8 + $0x8b8] sm:$0xf0] }
 0x217   :  { %3795 = vmatpush.bf16.msrb.mxu2 %v5313_v10  ;;  %v5593_v10 = vor.u32 %v6288_v43, %v5592_v35  ;;  %v6099_v35 = vld [vmem:[#allocation8 + $0x5e4] sm:$0xf]  ;;  %v4866_v43 = vld [vmem:[#allocation8 + $0x618] sm:$0xf0] }
 0x218   :  { %3809 = vmatpush.bf16.msrb.mxu3 %v5761_v52  ;;  %3769 = vmatpush.bf16.msrb.mxu0 %v4305_v58  ;;  %v6162_v52 = vld [vmem:[#allocation8 + $0x7d4] sm:$0xf0]  ;;  %v5536_v58 = vld [vmem:[#allocation8 + $0xb20] sm:$0xf]  ;;  %v4869_v39 = vor.u32 %v6099_v35, %v4866_v43  ;;  %v6043_v13 = vld [vmem:[#allocation8 + $0x424] sm:$0xf] }
 0x219   :  { %3783 = vmatpush.bf16.msrb.mxu1 %v4753_v20  ;;  %v4533_v20 = vor.u32 %v6015_v6, %v4530_v29  ;;  %v5089_v61 = vor.u32 %v6162_v52, %v5088_v59  ;;  %v5537_v36 = vor.u32 %v6274_v11, %v5536_v58  ;;  %v5818_v6 = vld [vmem:[#allocation8 + $0xd88] sm:$0xf0]  ;;  %v6323_v58 = vld [vmem:[#allocation8 + $0xce4] sm:$0xf]  ;;  %v5762_v11 = vld [vmem:[#allocation8 + $0xd18] sm:$0xf0] }
 0x21a   :  { %v3538_v2 = vpop.f32.mrf.mxu3  ;;  %v4642_v50 = vld [vmem:[#allocation8 + $0x458] sm:$0xf0]  ;;  %v6281_v43 = vld [vmem:[#allocation8 + $0xb94] sm:$0xf] }
 0x21b   :  { %3796 = vmatpush.bf16.msrb.mxu2 %v5257_v31  ;;  %v3537_v31 = vadd.f32 %v3536_v9, %v3523_v54  ;;  %v6211_v54 = vld [vmem:[#allocation8 + $0x964] sm:$0xf]  ;;  %v5314_v9 = vld [vmem:[#allocation8 + $0x998] sm:$0xf0] }
 0x21c   :  { %3810 = vmatpush.bf16.msrb.mxu3 %v5705_v63  ;;  %3770 = vmatpush.bf16.msrb.mxu0 %v4249_v48  ;;  %v4922_v63 = vld [vmem:[#allocation8 + $0x688] sm:$0xf0]  ;;  %v6148_v48 = vld [vmem:[#allocation8 + $0x764] sm:$0xf0]  ;;  %v5317_v24 = vor.u32 %v6211_v54, %v5314_v9  ;;  %v6253_v54 = vld [vmem:[#allocation8 + $0xab4] sm:$0xf] }
 0x21d   :  { %3784 = vmatpush.bf16.msrb.mxu1 %v4697_v40  ;;  %v3469_v40 = vadd.f32 %v6753_v32, %v3455_v18  ;;  %v3884_v44 = vmax.f32 %v3537_v31, 0.0  ;;  %v4925_v53 = vor.u32 %v6113_v25, %v4922_v63  ;;  %v3524_v32 = vpop.f32.mrf.mxu2  ;;  %v4754_v31 = vld [vmem:[#allocation8 + $0x538] sm:$0xf0]  ;;  %v5258_v25 = vld [vmem:[#allocation8 + $0x928] sm:$0xf0] }
 0x21e   :  { %v3525_v42 = vadd.f32 %v3524_v32, %v3511_v60  ;;  %v5931_v60 = vld [vmem:[#allocation8 + $0xa4] sm:$0xf]  ;;  %v5482_v9 = vld [vmem:[#allocation8 + $0xae8] sm:$0xf0] }
 0x21f   :  { %3797 = vmatpush.bf16.msrb.mxu2 %v5201_v46  ;;  %v6351_v46 = vld [vmem:[#allocation8 + $0xdc4] sm:$0xf]  ;;  %v3908_v47 = vpack.c.bf16 %v3884_v44, %v3883_v12  ;;  %v3483_v38 = vadd.f32 %v6755_v41, %v3469_v40  ;;  %v5373_v41 = vor.u32 %v6225_v1, %v5370_v22  ;;  %v6057_v40 = vld [vmem:[#allocation8 + $0x494] sm:$0xf]  ;;  %v4698_v44 = vld [vmem:[#allocation8 + $0x4c8] sm:$0xf0] }
 0x220   :  { %3811 = vmatpush.bf16.msrb.mxu3 %v5649_v49  ;;  %3771 = vmatpush.bf16.msrb.mxu0 %v4193_v56  ;;  %v5033_v49 = vor.u32 %v6148_v48, %v5032_v34  ;;  %v5429_v56 = vor.u32 %v6239_v15, %v5426_v8  ;;  %v3539_v29 = vadd.f32 %v3538_v2, %v3525_v42  ;;  %v6309_v34 = vld [vmem:[#allocation8 + $0xc74] sm:$0xf]  ;;  %v6183_v8 = vld [vmem:[#allocation8 + $0x884] sm:$0xf]  ;;  %v4138_v1 = vld [vmem:[#allocation8 + $0x68] sm:$0xf0] }
 0x221   :  { %3785 = vmatpush.bf16.msrb.mxu1 %v4641_v0  ;;  %3922 = vst [vmem:[#allocation11 + $0x18] sm:$0xff] %v3908_v47  ;;  %v5877_v0 = vor.u32 %v6351_v46, %v5874_v28  ;;  %v3897_v59 = vmax.f32 %v3483_v38, 0.0  ;;  %v4757_v48 = vor.u32 %v6071_v26, %v4754_v31  ;;  %v5650_v46 = vld [vmem:[#allocation8 + $0xc38] sm:$0xf0]  ;;  %v4701_v28 = vor.u32 %v6057_v40, %v4698_v44  ;;  %v5594_v38 = vld [vmem:[#allocation8 + $0xbc8] sm:$0xf0] }
 0x222   :  { %v3898_v52 = vmax.f32 %v3539_v29, 0.0  ;;  %v4194_v47 = vld [vmem:[#allocation8 + $0xd8] sm:$0xf0]  ;;  %v4645_v42 = vor.u32 %v6043_v13, %v4642_v50  ;;  %v6029_v2 = vld [vmem:[#allocation8 + $0x3b4] sm:$0xf] }
 0x223   :  { %3798 = vmatpush.bf16.msrb.mxu2 %v5145_v5  ;;  %v6337_v5 = vld [vmem:[#allocation8 + $0xd54] sm:$0xf]  ;;  %v4197_v35 = vor.u32 %v5931_v60, %v4194_v47  ;;  %v5090_v29 = vld [vmem:[#allocation8 + $0x7d8] sm:$0xf0] }
 0x224   :  { %3812 = vmatpush.bf16.msrb.mxu3 %v5593_v10  ;;  %3772 = vmatpush.bf16.msrb.mxu0 %v4137_v17  ;;  %v6085_v10 = vld [vmem:[#allocation8 + $0x574] sm:$0xf]  ;;  %v5821_v51 = vor.u32 %v6337_v5, %v5818_v6  ;;  %v4365_v17 = vor.u32 %v5973_v7, %v4362_v55  ;;  %v3915_v18 = vpack.c.bf16 %v3898_v52, %v3897_v59  ;;  %v6155_v6 = vld [vmem:[#allocation8 + $0x7a4] sm:$0xf] }
 0x225   :  { %3786 = vmatpush.bf16.msrb.mxu1 %v4585_v19  ;;  %v4813_v19 = vor.u32 %v6085_v10, %v4810_v37  ;;  %v5597_v5 = vor.u32 %v6281_v43, %v5594_v38  ;;  %v6267_v55 = vld [vmem:[#allocation8 + $0xb24] sm:$0xf]  ;;  %v5093_v37 = vor.u32 %v6155_v6, %v5090_v29  ;;  %v6141_v52 = vld [vmem:[#allocation8 + $0x734] sm:$0xf] }
 0x226   :  { %3929 = vst [vmem:[#allocation11 + $0x50] sm:$0xff] %v3915_v18 }
 0x227   :  { %3799 = vmatpush.bf16.msrb.mxu2 %v5089_v61  ;;  %3773 = vmatmul.bf16.vlgmr.msrb.gmra.mxu0 %v6584_v57  ;;  %v6197_v61 = vld [vmem:[#allocation8 + $0x8f4] sm:$0xf] }
 0x228   :  { %3821 = vmatpush.bf16.msra.mxu0 %v4533_v20  ;;  %3813 = vmatpush.bf16.msrb.mxu3 %v5537_v36  ;;  %v5959_v20 = vld [vmem:[#allocation8 + $0x184] sm:$0xf]  ;;  %v5706_v36 = vld [vmem:[#allocation8 + $0xca8] sm:$0xf0]  ;;  %v5261_v12 = vor.u32 %v6197_v61, %v5258_v25 }
 0x229   :  { %3835 = vmatpush.bf16.msra.mxu1 %v4981_v4  ;;  %v5765_v4 = vor.u32 %v6323_v58, %v5762_v11  ;;  %v4309_v63 = vor.u32 %v5959_v20, %v4306_v23  ;;  %v5709_v15 = vor.u32 %v6309_v34, %v5706_v36  ;;  %v5485_v11 = vor.u32 %v6253_v54, %v5482_v9  ;;  %v6774_v23 = vld [vmem:[#allocation10 + $0x8] sm:$0x3f] }
 0x22a   :  { %3787 = vmatmul.bf16.vlgmr.msrb.gmra.mxu1 %v6586_v62  ;;  %v836_v6 = vperm.slane %v6774_v23, 3 }
 0x22b   :  { %3800 = vmatpush.bf16.msrb.mxu2 %v5033_v49  ;;  %v5205_v49 = vor.u32 %v6183_v8, %v5202_v30 }
 0x22c   :  { %3822 = vmatpush.bf16.msra.mxu0 %v4477_v45  ;;  %3814 = vmatpush.bf16.msrb.mxu3 %v5481_v33  ;;  %v4253_v45 = vor.u32 %v5945_v16, %v4250_v14  ;;  %v6169_v33 = vld [vmem:[#allocation8 + $0x814] sm:$0xf] }
 0x22d   :  { %3836 = vmatpush.bf16.msra.mxu1 %v4925_v53  ;;  %v6295_v53 = vld [vmem:[#allocation8 + $0xc04] sm:$0xf] }
 0x22e   :  { %3801 = vmatmul.bf16.vlgmr.msrb.gmra.mxu2 %v6590_v21  ;;  %v5653_v32 = vor.u32 %v6295_v53, %v5650_v46 }
 0x22f   :  { %3849 = vmatpush.bf16.msra.mxu2 %v5429_v56  ;;  %3815 = vmatmul.bf16.vlgmr.msrb.gmra.mxu3 %v6592_v27  ;;  %v5146_v56 = vld [vmem:[#allocation8 + $0x848] sm:$0xf0] }
 0x230   :  { %3863 = vmatpush.bf16.msra.mxu3 %v5877_v0  ;;  %3823 = vmatpush.bf16.msra.mxu0 %v4421_v3  ;;  %v5917_v0 = vld [vmem:[#allocation8 + $0x34] sm:$0xf]  ;;  %v5149_v22 = vor.u32 %v6169_v33, %v5146_v56  ;;  %v4586_v3 = vld [vmem:[#allocation8 + $0x3e8] sm:$0xf0] }
 0x231   :  { %3837 = vmatpush.bf16.msra.mxu1 %v4869_v39  ;;  %v3550_v39 = vpop.f32.mrf.mxu0  ;;  %v4141_v7 = vor.u32 %v5917_v0, %v4138_v1  ;;  %v4589_v10 = vor.u32 %v6029_v2, %v4586_v3 }
 0x232   :  { %v3592_v20 = vpop.f32.mrf.mxu3 }
 0x233   :  { %3850 = vmatpush.bf16.msra.mxu2 %v5373_v41  ;;  %v5538_v41 = vld [vmem:[#allocation8 + $0xb58] sm:$0xf0] }
 0x234   :  { %3864 = vmatpush.bf16.msra.mxu3 %v5821_v51  ;;  %3824 = vmatpush.bf16.msra.mxu0 %v4365_v17  ;;  %v5541_v59 = vor.u32 %v6267_v55, %v5538_v41  ;;  %v5034_v51 = vld [vmem:[#allocation8 + $0x768] sm:$0xf0]  ;;  %v3564_v17 = vpop.f32.mrf.mxu1 }
 0x235   :  { %3838 = vmatpush.bf16.msra.mxu1 %v4813_v19  ;;  %v5037_v58 = vor.u32 %v6141_v52, %v5034_v51  ;;  %v3578_v19 = vpop.f32.mrf.mxu2 }
 0x237   :  { %3851 = vmatpush.bf16.msra.mxu2 %v5317_v24  ;;  %v833_v24 = vperm.slane %v6774_v23, 0 }
 0x238   :  { %3865 = vmatpush.bf16.msra.mxu3 %v5765_v4  ;;  %3825 = vmatpush.bf16.msra.mxu0 %v4309_v63 }
 0x239   :  { %3839 = vmatpush.bf16.msra.mxu1 %v4757_v48  ;;  %v3552_v18 = vpop.f32.mrf.mxu0  ;;  %v3551_v4 = vadd.f32 %v3550_v39, %v833_v24 }
 0x23a   :  { %v3553_v48 = vadd.f32 %v3552_v18, %v833_v24 }
 0x23b   :  { %3852 = vmatpush.bf16.msra.mxu2 %v5261_v12  ;;  %v3565_v25 = vadd.f32 %v3564_v17, %v3551_v4 }
 0x23c   :  { %3866 = vmatpush.bf16.msra.mxu3 %v5709_v15  ;;  %3826 = vmatpush.bf16.msra.mxu0 %v4253_v45  ;;  %v3566_v26 = vpop.f32.mrf.mxu1 }
 0x23d   :  { %3840 = vmatpush.bf16.msra.mxu1 %v4701_v28  ;;  %v3580_v61 = vpop.f32.mrf.mxu2  ;;  %v3579_v36 = vadd.f32 %v3578_v19, %v3565_v25  ;;  %v3567_v44 = vadd.f32 %v3566_v26, %v3553_v48 }
 0x23f   :  { %3853 = vmatpush.bf16.msra.mxu2 %v5205_v49  ;;  %v3581_v45 = vadd.f32 %v3580_v61, %v3567_v44 }
 0x240   :  { %3867 = vmatpush.bf16.msra.mxu3 %v5653_v32  ;;  %3827 = vmatpush.bf16.msra.mxu0 %v4197_v35 }
 0x241   :  { %3841 = vmatpush.bf16.msra.mxu1 %v4645_v42 }
 0x243   :  { %3854 = vmatpush.bf16.msra.mxu2 %v5149_v22  ;;  %v835_v22 = vperm.slane %v6774_v23, 2 }
 0x244   :  { %3868 = vmatpush.bf16.msra.mxu3 %v5597_v5  ;;  %3828 = vmatpush.bf16.msra.mxu0 %v4141_v7  ;;  %v3606_v31 = vpop.f32.mrf.mxu0 }
 0x245   :  { %3842 = vmatpush.bf16.msra.mxu1 %v4589_v10 }
 0x247   :  { %3855 = vmatpush.bf16.msra.mxu2 %v5093_v37  ;;  %3829 = vmatmul.bf16.vlgmr.msra.gmra.mxu0 %v6584_v57  ;;  %v834_v57 = vperm.slane %v6774_v23, 1  ;;  %v3620_v34 = vpop.f32.mrf.mxu1 }
 0x248   :  { %3869 = vmatpush.bf16.msra.mxu3 %v5541_v59  ;;  %3843 = vmatmul.bf16.vlgmr.msra.gmra.mxu1 %v6586_v62  ;;  %v3594_v62 = vpop.f32.mrf.mxu3 }
 0x249   :  { %v3607_v63 = vadd.f32 %v3606_v31, %v834_v57  ;;  %v3595_v49 = vadd.f32 %v3594_v62, %v3581_v45 }
 0x24b   :  { %3856 = vmatpush.bf16.msra.mxu2 %v5037_v58  ;;  %v3621_v16 = vadd.f32 %v3620_v34, %v3607_v63  ;;  %v3899_v33 = vmax.f32 %v3595_v49, 0.0 }
 0x24c   :  { %3870 = vmatpush.bf16.msra.mxu3 %v5485_v11  ;;  %v3608_v14 = vpop.f32.mrf.mxu0 }
 0x24d   :  { %v3609_v15 = vadd.f32 %v3608_v14, %v834_v57 }
 0x24e   :  { %3857 = vmatmul.bf16.vlgmr.msra.gmra.mxu2 %v6590_v21  ;;  %v3593_v21 = vadd.f32 %v3592_v20, %v3579_v36 }
 0x24f   :  { %3871 = vmatmul.bf16.vlgmr.msra.gmra.mxu3 %v6592_v27  ;;  %v3622_v46 = vpop.f32.mrf.mxu1 }
 0x250   :  { %v3885_v30 = vmax.f32 %v3593_v21, 0.0  ;;  %v3623_v28 = vadd.f32 %v3622_v46, %v3609_v15 }
 0x251   :  { %v3634_v12 = vpop.f32.mrf.mxu2 }
 0x252   :  { %v3635_v40 = vadd.f32 %v3634_v12, %v3621_v16  ;;  %v3648_v27 = vpop.f32.mrf.mxu3 }
 0x254   :  { %v3649_v8 = vadd.f32 %v3648_v27, %v3635_v40  ;;  %v837_v27 = vperm.slane %v6774_v23, 4 }
 0x256   :  { %v3886_v53 = vmax.f32 %v3649_v8, 0.0 }
 0x258   :  { %v3909_v60 = vpack.c.bf16 %v3886_v53, %v3885_v30  ;;  %v838_v30 = vperm.slane %v6774_v23, 5 }
 0x259   :  { %v3636_v47 = vpop.f32.mrf.mxu2 }
 0x25a   :  { %3923 = vst [vmem:[#allocation11 + $0x20] sm:$0xff] %v3909_v60  ;;  %v3637_v13 = vadd.f32 %v3636_v47, %v3623_v28  ;;  %v3650_v50 = vpop.f32.mrf.mxu3 }
 0x25c   :  { %v3651_v32 = vadd.f32 %v3650_v50, %v3637_v13 }
 0x25e   :  { %v3900_v56 = vmax.f32 %v3651_v32, 0.0 }
 0x260   :  { %v3916_v35 = vpack.c.bf16 %v3900_v56, %v3899_v33 }
 0x262   :  { %3930 = vst [vmem:[#allocation11 + $0x58] sm:$0xff] %v3916_v35 }
 0x264   :  { %v3662_v43 = vpop.f32.mrf.mxu0 }
 0x265   :  { %v3663_v5 = vadd.f32 %v3662_v43, %v835_v22 }
 0x267   :  { %v3676_v38 = vpop.f32.mrf.mxu1 }
 0x268   :  { %v3677_v7 = vadd.f32 %v3676_v38, %v3663_v5 }
 0x26c   :  { %v3664_v42 = vpop.f32.mrf.mxu0 }
 0x26d   :  { %v3665_v37 = vadd.f32 %v3664_v42, %v835_v22 }
 0x26f   :  { %v3678_v2 = vpop.f32.mrf.mxu1 }
 0x270   :  { %v3679_v58 = vadd.f32 %v3678_v2, %v3665_v37 }
 0x271   :  { %v3690_v0 = vpop.f32.mrf.mxu2 }
 0x272   :  { %v3704_v1 = vpop.f32.mrf.mxu3  ;;  %v3691_v10 = vadd.f32 %v3690_v0, %v3677_v7 }
 0x274   :  { %v3705_v54 = vadd.f32 %v3704_v1, %v3691_v10 }
 0x276   :  { %v3887_v19 = vmax.f32 %v3705_v54, 0.0 }
 0x279   :  { %v3692_v29 = vpop.f32.mrf.mxu2 }
 0x27a   :  { %v3706_v39 = vpop.f32.mrf.mxu3  ;;  %v3693_v20 = vadd.f32 %v3692_v29, %v3679_v58 }
 0x27c   :  { %v3707_v61 = vadd.f32 %v3706_v39, %v3693_v20 }
 0x27e   :  { %v3901_v34 = vmax.f32 %v3707_v61, 0.0 }
 0x284   :  { %v3718_v3 = vpop.f32.mrf.mxu0 }
 0x285   :  { %v3719_v55 = vadd.f32 %v3718_v3, %v836_v6 }
 0x287   :  { %v3732_v41 = vpop.f32.mrf.mxu1 }
 0x288   :  { %v3733_v59 = vadd.f32 %v3732_v41, %v3719_v55 }
 0x28c   :  { %v3720_v52 = vpop.f32.mrf.mxu0 }
 0x28d   :  { %v3721_v11 = vadd.f32 %v3720_v52, %v836_v6 }
 0x28f   :  { %v3734_v26 = vpop.f32.mrf.mxu1 }
 0x290   :  { %v3735_v31 = vadd.f32 %v3734_v26, %v3721_v11 }
 0x291   :  { %v3746_v51 = vpop.f32.mrf.mxu2 }
 0x292   :  { %v3747_v9 = vadd.f32 %v3746_v51, %v3733_v59  ;;  %v3760_v17 = vpop.f32.mrf.mxu3 }
 0x294   :  { %v3761_v18 = vadd.f32 %v3760_v17, %v3747_v9 }
 0x296   :  { %v3888_v24 = vmax.f32 %v3761_v18, 0.0 }
 0x298   :  { %v3910_v4 = vpack.c.bf16 %v3888_v24, %v3887_v19 }
 0x299   :  { %v3748_v57 = vpop.f32.mrf.mxu2 }
 0x29a   :  { %3924 = vst [vmem:[#allocation11 + $0x28] sm:$0xff] %v3910_v4  ;;  %v3749_v62 = vadd.f32 %v3748_v57, %v3735_v31  ;;  %v3762_v25 = vpop.f32.mrf.mxu3 }
 0x29c   :  { %v3763_v63 = vadd.f32 %v3762_v25, %v3749_v62 }
 0x29e   :  { %v3902_v36 = vmax.f32 %v3763_v63, 0.0 }
 0x2a0   :  { %v3917_v48 = vpack.c.bf16 %v3902_v36, %v3901_v34 }
 0x2a2   :  { %3931 = vst [vmem:[#allocation11 + $0x60] sm:$0xff] %v3917_v48 }
 0x2a4   :  { %v3774_v16 = vpop.f32.mrf.mxu0 }
 0x2a5   :  { %v3775_v8 = vadd.f32 %v3774_v16, %v837_v27 }
 0x2a7   :  { %v3788_v14 = vpop.f32.mrf.mxu1 }
 0x2a8   :  { %v3789_v46 = vadd.f32 %v3788_v14, %v3775_v8 }
 0x2ac   :  { %v3776_v12 = vpop.f32.mrf.mxu0 }
 0x2ad   :  { %v3777_v49 = vadd.f32 %v3776_v12, %v837_v27 }
 0x2af   :  { %v3790_v44 = vpop.f32.mrf.mxu1 }
 0x2b0   :  { %v3791_v43 = vadd.f32 %v3790_v44, %v3777_v49 }
 0x2b1   :  { %v3802_v21 = vpop.f32.mrf.mxu2 }
 0x2b2   :  { %v3816_v40 = vpop.f32.mrf.mxu3  ;;  %v3803_v47 = vadd.f32 %v3802_v21, %v3789_v46 }
 0x2b4   :  { %v3817_v33 = vadd.f32 %v3816_v40, %v3803_v47 }
 0x2b6   :  { %v3889_v0 = vmax.f32 %v3817_v33, 0.0 }
 0x2b9   :  { %v3804_v45 = vpop.f32.mrf.mxu2 }
 0x2ba   :  { %v3818_v53 = vpop.f32.mrf.mxu3  ;;  %v3805_v1 = vadd.f32 %v3804_v45, %v3791_v43 }
 0x2bc   :  { %v3819_v6 = vadd.f32 %v3818_v53, %v3805_v1 }
 0x2be   :  { %v3903_v55 = vmax.f32 %v3819_v6, 0.0 }
 0x2c4   :  { %v3830_v15 = vpop.f32.mrf.mxu0 }
 0x2c5   :  { %v3831_v28 = vadd.f32 %v3830_v15, %v838_v30  ;;  %v3844_v60 = vpop.f32.mrf.mxu1 }
 0x2c7   :  { %v3845_v13 = vadd.f32 %v3844_v60, %v3831_v28 }
 0x2cc   :  { %v3832_v50 = vpop.f32.mrf.mxu0 }
 0x2cd   :  { %v3833_v38 = vadd.f32 %v3832_v50, %v838_v30  ;;  %v3846_v23 = vpop.f32.mrf.mxu1 }
 0x2cf   :  { %v3847_v2 = vadd.f32 %v3846_v23, %v3833_v38 }
 0x2d1   :  { %v3858_v32 = vpop.f32.mrf.mxu2 }
 0x2d2   :  { %v3859_v56 = vadd.f32 %v3858_v32, %v3845_v13  ;;  %v3872_v35 = vpop.f32.mrf.mxu3 }
 0x2d4   :  { %v3873_v42 = vadd.f32 %v3872_v35, %v3859_v56 }
 0x2d6   :  { %v3890_v22 = vmax.f32 %v3873_v42, 0.0 }
 0x2d8   :  { %v3911_v3 = vpack.c.bf16 %v3890_v22, %v3889_v0 }
 0x2d9   :  { %v3860_v5 = vpop.f32.mrf.mxu2 }
 0x2da   :  { %3925 = vst [vmem:[#allocation11 + $0x30] sm:$0xff] %v3911_v3  ;;  %v3861_v29 = vadd.f32 %v3860_v5, %v3847_v2  ;;  %v3874_v39 = vpop.f32.mrf.mxu3 }
 0x2dc   :  { %v3875_v7 = vadd.f32 %v3874_v39, %v3861_v29 }
 0x2de   :  { %v3904_v41 = vmax.f32 %v3875_v7, 0.0 }
 0x2e0   :  { %v3918_v10 = vpack.c.bf16 %v3904_v41, %v3903_v55 }
 0x2e2   :  { %3932 = vst [vmem:[#allocation11 + $0x68] sm:$0xff] %v3918_v10 }
 0x2e3   :  { %3945 = dma.vmem_to_hbm [thread:$0]  %s3938_s4, 1792, %s3940_s23, [#allocation4], %s6528_s30, %s6528_s30, %s6529_s6  }
 0x2e4   :  { %6522 = dma.done.wait [#allocation4], 1792  }
 0x2e5   :  { %6523 = vsyncadd [#allocation4], 4294965504 }
 0x2e6   :  { %3950 = vsyncpa [#allocation3], 1 }
 0x2e7   :  { %3951 = vsyncpa [#allocation6], 1 }
 0x2e8   :  { %3952 = vsyncpa [#allocation9], 1 }
 0x2e9   :  { %3953 = vsyncpa [#allocation4], 1 }

</bundles_post_ra>
